<compile_context>
chip_gen: v6e
topology: v6e:2x2x1
jax: 0.10.0
libtpu: 0.0.40
codegen_flags: <defaults>
</compile_context>

<pallas_src>
import functools

import jax
import jax.numpy as jnp
from jax import lax
from jax.experimental import pallas as pl
from jax.experimental.pallas import tpu as pltpu


def _round_up(n, m):
    return ((n + m - 1) // m) * m


def _resblock_kernel(x_ref, mask_ref, w1_ref, s1_ref, t1_ref,
                     w2_ref, s2_ref, t2_ref,
                     w3_ref, s3_ref, t3_ref,
                     o_ref, *, Wp, pad):
    """One grid step = one (spatially pre-padded, lane-padded) batch element."""
    x = x_ref[0]                                           # (ROWS, Cpad) bf16
    rows = x.shape[0]
    ppad = w1_ref.shape[1]

    # ---- conv1 (1x1) + bn1 + relu : channel matmul on the MXU --------------
    h1 = jnp.dot(x, w1_ref[...], preferred_element_type=jnp.float32)
    h1 = jnp.maximum(h1 * s1_ref[...] + t1_ref[...], 0.0)   # (ROWS, Ppad) f32
    # Zero the spatial pad pixels so they act as conv2's zero padding
    # (the BN offset would otherwise make them nonzero).
    h1 = h1 * mask_ref[...]

    # ---- conv2 (3x3, stride 1, "same") --------------------------------------
    # Tap windows are shifted, zero-bordered views of h1 built from values in
    # registers/VMEM (no scratch-ref store + unaligned reload round trip).
    # Wrap/border rows only ever land on spatial-pad output pixels, which the
    # wrapper discards.  Each tap is cast to bf16 BEFORE the lane concat, and
    # the contraction is split into 3 accumulating dots of K = 3*Ppad (one per
    # kernel row) to cap the live slab size.
    zblk = jnp.zeros((pad, ppad), jnp.float32)
    h1ext = jnp.concatenate([zblk, h1, zblk], axis=0)      # zero-bordered copy
    h1b = h1.astype(jnp.bfloat16)                          # reused center tap

    h2 = None
    for dy in range(3):
        taps = []
        for dx in range(3):
            s = (dy - 1) * Wp + (dx - 1)
            if s == 0:
                taps.append(h1b)                           # center tap: reuse vregs
            else:
                taps.append(
                    h1ext[pad + s:pad + s + rows, :].astype(jnp.bfloat16))
        slab = jnp.concatenate(taps, axis=1)               # (ROWS, 3*Ppad) bf16
        part = jnp.dot(slab, w2_ref[dy], preferred_element_type=jnp.float32)
        h2 = part if h2 is None else h2 + part
    h2 = jnp.maximum(h2 * s2_ref[...] + t2_ref[...], 0.0)  # (ROWS, Ppad) f32

    # ---- conv3 (1x1) + bn3 + residual add + relu ----------------------------
    h3 = jnp.dot(h2.astype(jnp.bfloat16), w3_ref[...],
                 preferred_element_type=jnp.float32)
    h3 = h3 * s3_ref[...] + t3_ref[...]                    # (ROWS, Cpad) f32
    o_ref[0] = jnp.maximum(h3 + x.astype(jnp.float32), 0.0).astype(o_ref.dtype)


def _vmem_limit_bytes():
    # Per-chip scoped-VMEM limit: ~3/4 of physical capacity, capped at 100 MiB.
    # v5e/v6e (128 MiB) -> 96 MiB, v7x (64 MiB) -> 48 MiB.  Fallback: 48 MiB.
    try:
        cap = getattr(pltpu.get_tpu_info(), "vmem_capacity_bytes", None)
        if cap:
            return int(min(cap * 3 // 4, 100 * 1024 * 1024))
    except Exception:
        pass
    return 48 * 1024 * 1024


def pack_input(x_nchw, cin_p):
    """NCHW -> packed (N, ROWS, cin_p) bf16 layout (spatial pre-pad + flatten)."""
    N, Cin, H, W = x_nchw.shape
    Hp, Wp = H + 2, W + 2
    rows = _round_up(Hp * Wp, 8)
    x = jnp.transpose(x_nchw, (0, 2, 3, 1)).astype(jnp.bfloat16)
    x = jnp.pad(x, ((0, 0), (1, 1), (1, 1), (0, cin_p - Cin)))
    x = x.reshape(N, Hp * Wp, cin_p)
    return jnp.pad(x, ((0, 0), (0, rows - Hp * Wp), (0, 0)))


def unpack_output(out_flat, H, W, Cout):
    """Packed (N, ROWS, cout_p) bf16 -> NCHW bf16."""
    N = out_flat.shape[0]
    Hp, Wp = H + 2, W + 2
    out = out_flat[:, :Hp * Wp, :].reshape(N, Hp, Wp, -1)
    out = out[:, 1:H + 1, 1:W + 1, :Cout]
    return jnp.transpose(out, (0, 3, 1, 2))


def res_block_pallas_packed(x_packed, kp, H, W):
    """Packed-layout forward: (N, ROWS, cin_p) bf16 -> (N, ROWS, cout_p) bf16."""
    N, rows, cin_p = x_packed.shape
    p_p = kp["w1"].shape[1]
    cout_p = kp["w3"].shape[1]
    assert cin_p == kp["w1"].shape[0]
    assert cin_p == cout_p, "identity shortcut requires matching padded channels"
    Hp, Wp = H + 2, W + 2
    hpwp = Hp * Wp
    assert rows == _round_up(hpwp, 8)
    pad = _round_up(Wp + 1, 8)   # zero border rows >= widest flattened tap shift

    # Lane-dense bf16 interior mask (zero on spatial-pad / alignment rows).
    idx = jnp.arange(rows, dtype=jnp.int32)
    row, col = idx // Wp, idx % Wp
    interior = (idx < hpwp) & (row >= 1) & (row <= H) & (col >= 1) & (col <= W)
    mask = jnp.broadcast_to(interior[:, None], (rows, p_p)).astype(jnp.bfloat16)

    def const_spec(a):
        nd = a.ndim
        return pl.BlockSpec(a.shape, lambda n, _nd=nd: (0,) * _nd)

    kern = functools.partial(_resblock_kernel, Wp=Wp, pad=pad)

    flops = 2 * N * rows * (cin_p * p_p + 9 * p_p * p_p + p_p * cout_p)
    bytes_accessed = (x_packed.size * 2 + N * rows * cout_p * 2 + mask.size * 2
                      + kp["w1"].size * 2 + kp["w2"].size * 2 + kp["w3"].size * 2)

    return pl.pallas_call(
        kern,
        out_shape=jax.ShapeDtypeStruct((N, rows, cout_p), jnp.bfloat16),
        grid_spec=pltpu.PrefetchScalarGridSpec(
            num_scalar_prefetch=0,
            grid=(N,),
            in_specs=[pl.BlockSpec((1, rows, cin_p), lambda n: (n, 0, 0)),
                      const_spec(mask),
                      const_spec(kp["w1"]), const_spec(kp["s1"]), const_spec(kp["t1"]),
                      const_spec(kp["w2"]), const_spec(kp["s2"]), const_spec(kp["t2"]),
                      const_spec(kp["w3"]), const_spec(kp["s3"]), const_spec(kp["t3"])],
            out_specs=pl.BlockSpec((1, rows, cout_p), lambda n: (n, 0, 0)),
        ),
        compiler_params=pltpu.CompilerParams(
            dimension_semantics=("parallel",),
            vmem_limit_bytes=_vmem_limit_bytes(),
        ),
        cost_estimate=pl.CostEstimate(flops=flops, transcendentals=0,
                                      bytes_accessed=bytes_accessed),
    )(x_packed, mask, kp["w1"], kp["s1"], kp["t1"],
      kp["w2"], kp["s2"], kp["t2"], kp["w3"], kp["s3"], kp["t3"])


def res_block_pallas(x_nchw, kp):
    """NCHW convenience wrapper around the packed-layout kernel."""
    N, Cin, H, W = x_nchw.shape
    assert Cin == kp["cin"]
    assert kp["cout"] == Cin, "identity shortcut requires inplanes == planes * expansion"
    x_packed = pack_input(x_nchw, kp["w1"].shape[0])
    out = res_block_pallas_packed(x_packed, kp, H, W)
    return unpack_output(out, H, W, kp["cout"])


def make_params(key, inplanes, planes, eps=1e-5, lane=128):
    """Deterministic synthetic parameters (PyTorch-shaped) + folded/padded kernel params."""
    exp = 4
    ks = jax.random.split(key, 9)

    def conv_w(k, cout, cin, kh, kw):
        fan_in = cin * kh * kw
        return jax.random.normal(k, (cout, cin, kh, kw), jnp.float32) / jnp.sqrt(
            jnp.float32(fan_in))

    def bn_params(k, c):
        kg, kb = jax.random.split(k)
        g = 1.0 + 0.1 * jax.random.normal(kg, (c,), jnp.float32)
        b = 0.1 * jax.random.normal(kb, (c,), jnp.float32)
        m = 0.05 * jnp.arange(c, dtype=jnp.float32) / c
        v = 1.0 + 0.1 * jnp.cos(jnp.arange(c, dtype=jnp.float32))
        return (g, b, m, v)

    w1 = conv_w(ks[0], planes, inplanes, 1, 1)
    b1 = 0.1 * jax.random.normal(ks[1], (planes,), jnp.float32)
    w2 = conv_w(ks[2], planes, planes, 3, 3)
    b2 = 0.1 * jax.random.normal(ks[3], (planes,), jnp.float32)
    w3 = conv_w(ks[4], planes * exp, planes, 1, 1)
    b3 = 0.1 * jax.random.normal(ks[5], (planes * exp,), jnp.float32)
    bn1 = bn_params(ks[6], planes)
    bn2 = bn_params(ks[7], planes)
    bn3 = bn_params(ks[8], planes * exp)

    torch_params = dict(w1=w1, b1=b1, bn1=bn1, w2=w2, b2=b2, bn2=bn2,
                        w3=w3, b3=b3, bn3=bn3)

    def fold(bias, bn):
        g, beta, m, v = bn
        s = g / jnp.sqrt(v + eps)
        t = beta + (bias - m) * s
        return s, t

    def rup(c):
        return _round_up(c, lane)

    cin, p, cout = inplanes, planes, planes * exp
    cin_p, p_p, cout_p = rup(cin), rup(p), rup(cout)

    def pad2(a, rows_, cols):
        return jnp.pad(a, ((0, rows_ - a.shape[0]), (0, cols - a.shape[1])))

    def pad_row(a, cols):
        return jnp.pad(a, (0, cols - a.shape[0]))[None, :]        # (1, cols) f32

    s1, t1 = fold(b1, bn1)
    s2, t2 = fold(b2, bn2)
    s3, t3 = fold(b3, bn3)

    # conv1: (Cpad_in, Ppad), conv3: (Ppad, Cpad_out), bf16 MXU operands.
    w1_k = pad2(w1.reshape(p, cin).T, cin_p, p_p).astype(jnp.bfloat16)
    w3_k = pad2(w3.reshape(cout, p).T, p_p, cout_p).astype(jnp.bfloat16)

    # conv2 im2col weight split into 3 kernel-row blocks: block dy holds taps
    # (dy, dx) at rows [dx*Ppad, dx*Ppad + P), matching the in-kernel slab.
    w2_t = jnp.transpose(w2, (2, 3, 1, 0))                        # (ky, kx, cin, cout)
    w2_k = jnp.zeros((3, 3 * p_p, p_p), jnp.float32)
    for dy in range(3):
        for dx in range(3):
            w2_k = w2_k.at[dy, dx * p_p:dx * p_p + p, :p].set(w2_t[dy, dx])
    w2_k = w2_k.astype(jnp.bfloat16)

    kernel_params = dict(
        w1=w1_k, s1=pad_row(s1, p_p), t1=pad_row(t1, p_p),
        w2=w2_k, s2=pad_row(s2, p_p), t2=pad_row(t2, p_p),
        w3=w3_k, s3=pad_row(s3, cout_p), t3=pad_row(t3, cout_p),
        cin=cin, cout=cout)
    return torch_params, kernel_params


def res_block_ref(x, prm, eps=1e-5):
    """Pure-JAX NCHW reference (inference-mode BatchNorm), full float32."""
    def conv(x, w, b, padding):
        y = lax.conv_general_dilated(
            x, w, window_strides=(1, 1),
            padding=[(padding, padding), (padding, padding)],
            dimension_numbers=("NCHW", "OIHW", "NCHW"))
        return y + b[None, :, None, None]

    def bn(x, params):
        g, b, m, v = params
        s = g / jnp.sqrt(v + eps)
        return (x - m[None, :, None, None]) * s[None, :, None, None] + b[None, :, None, None]

    out = jax.nn.relu(bn(conv(x, prm["w1"], prm["b1"], 0), prm["bn1"]))
    out = jax.nn.relu(bn(conv(out, prm["w2"], prm["b2"], 1), prm["bn2"]))
    out = bn(conv(out, prm["w3"], prm["b3"], 0), prm["bn3"])
    return jax.nn.relu(out + x)


if __name__ == "__main__":
    key = jax.random.PRNGKey(0)
    kx, kparam = jax.random.split(key)

    N, planes, H, W = 2, 4, 16, 16
    inplanes = planes * 4                      # identity shortcut: Cin == 4 * planes

    x = jax.random.normal(kx, (N, inplanes, H, W), jnp.float32)
    torch_params, kernel_params = make_params(kparam, inplanes, planes)

    out = jax.block_until_ready(res_block_pallas(x, kernel_params))
    ref = res_block_ref(x, torch_params)

    assert out.shape == (N, planes * 4, H, W), out.shape
    out_f32 = out.astype(jnp.float32)
    max_err = float(jnp.max(jnp.abs(out_f32 - ref)))
    ref_scale = float(jnp.max(jnp.abs(ref)))
    # bf16 activations + bf16 MXU operands with f32 accumulation vs the
    # full-f32 reference: scale-aware tolerance.
    tol = 2e-2 + 3e-2 * ref_scale
    assert max_err < tol, f"max abs err {max_err} (tol {tol})"

    print("KERNEL_OK")
</pallas_src>

<mosaic_0001>
module attributes {stable_mosaic.version = 11 : i64} {
  func.func @_resblock_kernel(%arg0: i32, %arg1: memref<1x328x128xbf16, #tpu.memory_space<vmem>>, %arg2: memref<328x128xbf16, #tpu.memory_space<vmem>>, %arg3: memref<128x128xbf16, #tpu.memory_space<vmem>>, %arg4: memref<1x128xf32, #tpu.memory_space<vmem>>, %arg5: memref<1x128xf32, #tpu.memory_space<vmem>>, %arg6: memref<3x384x128xbf16, #tpu.memory_space<vmem>>, %arg7: memref<1x128xf32, #tpu.memory_space<vmem>>, %arg8: memref<1x128xf32, #tpu.memory_space<vmem>>, %arg9: memref<128x128xbf16, #tpu.memory_space<vmem>>, %arg10: memref<1x128xf32, #tpu.memory_space<vmem>>, %arg11: memref<1x128xf32, #tpu.memory_space<vmem>>, %arg12: memref<1x328x128xbf16, #tpu.memory_space<vmem>>) attributes {dimension_semantics = [#tpu.dimension_semantics<parallel>], iteration_bounds = array<i64: 2>, scalar_prefetch = 0 : i64, scratch_operands = 0 : i64, tpu.core_type = #tpu.core_type<tc>, window_params = [{transform_indices = @transform_0, window_bounds = array<i64: 1, 328, 128>}, {pipeline_mode = #tpu.pipeline_mode<synchronous>, transform_indices = @transform_1, window_bounds = array<i64: 328, 128>}, {pipeline_mode = #tpu.pipeline_mode<synchronous>, transform_indices = @transform_2, window_bounds = array<i64: 128, 128>}, {pipeline_mode = #tpu.pipeline_mode<synchronous>, transform_indices = @transform_3, window_bounds = array<i64: 1, 128>}, {pipeline_mode = #tpu.pipeline_mode<synchronous>, transform_indices = @transform_4, window_bounds = array<i64: 1, 128>}, {pipeline_mode = #tpu.pipeline_mode<synchronous>, transform_indices = @transform_5, window_bounds = array<i64: 3, 384, 128>}, {pipeline_mode = #tpu.pipeline_mode<synchronous>, transform_indices = @transform_6, window_bounds = array<i64: 1, 128>}, {pipeline_mode = #tpu.pipeline_mode<synchronous>, transform_indices = @transform_7, window_bounds = array<i64: 1, 128>}, {pipeline_mode = #tpu.pipeline_mode<synchronous>, transform_indices = @transform_8, window_bounds = array<i64: 128, 128>}, {pipeline_mode = #tpu.pipeline_mode<synchronous>, transform_indices = @transform_9, window_bounds = array<i64: 1, 128>}, {pipeline_mode = #tpu.pipeline_mode<synchronous>, transform_indices = @transform_10, window_bounds = array<i64: 1, 128>}, {transform_indices = @transform_11, window_bounds = array<i64: 1, 328, 128>}]} {
    %c0 = arith.constant 0 : index
    %c0_0 = arith.constant 0 : index
    %c0_1 = arith.constant 0 : index
    %0 = vector.load %arg1[%c0, %c0_0, %c0_1] : memref<1x328x128xbf16, #tpu.memory_space<vmem>>, vector<1x328x128xbf16>
    %1 = vector.shape_cast %0 : vector<1x328x128xbf16> to vector<328x128xbf16>
    %c0_2 = arith.constant 0 : index
    %c0_3 = arith.constant 0 : index
    %2 = vector.load %arg3[%c0_2, %c0_3] : memref<128x128xbf16, #tpu.memory_space<vmem>>, vector<128x128xbf16>
    %cst = arith.constant dense<0.000000e+00> : vector<328x128xf32>
    %3 = tpu.matmul %1, %2, %cst {dimension_numbers = #tpu.dot_dimension_numbers<[1], [0], [0], [1], [0, 0, 1, 1], [], []>} : vector<328x128xbf16>, vector<128x128xbf16>, vector<328x128xf32> -> vector<328x128xf32>
    %c0_4 = arith.constant 0 : index
    %c0_5 = arith.constant 0 : index
    %4 = vector.load %arg4[%c0_4, %c0_5] : memref<1x128xf32, #tpu.memory_space<vmem>>, vector<1x128xf32>
    %5 = vector.broadcast %4 : vector<1x128xf32> to vector<328x128xf32>
    %6 = arith.mulf %3, %5 : vector<328x128xf32>
    %c0_6 = arith.constant 0 : index
    %c0_7 = arith.constant 0 : index
    %7 = vector.load %arg5[%c0_6, %c0_7] : memref<1x128xf32, #tpu.memory_space<vmem>>, vector<1x128xf32>
    %8 = vector.broadcast %7 : vector<1x128xf32> to vector<328x128xf32>
    %9 = arith.addf %6, %8 : vector<328x128xf32>
    %cst_8 = arith.constant 0.000000e+00 : f32
    %10 = vector.broadcast %cst_8 : f32 to vector<328x128xf32>
    %11 = arith.maximumf %9, %10 : vector<328x128xf32>
    %c0_9 = arith.constant 0 : index
    %c0_10 = arith.constant 0 : index
    %12 = vector.load %arg2[%c0_9, %c0_10] : memref<328x128xbf16, #tpu.memory_space<vmem>>, vector<328x128xbf16>
    %13 = arith.extf %12 : vector<328x128xbf16> to vector<328x128xf32>
    %14 = arith.mulf %11, %13 : vector<328x128xf32>
    %cst_11 = arith.constant 0.000000e+00 : f32
    %15 = vector.broadcast %cst_11 : f32 to vector<24x128xf32>
    %16 = tpu.concatenate %15, %14, %15 in 0 : vector<24x128xf32>, vector<328x128xf32>, vector<24x128xf32> -> vector<376x128xf32>
    %17 = arith.truncf %14 : vector<328x128xf32> to vector<328x128xbf16>
    %18 = vector.extract_strided_slice %16 {offsets = [5, 0], sizes = [328, 128], strides = [1, 1]} : vector<376x128xf32> to vector<328x128xf32>
    %19 = arith.truncf %18 : vector<328x128xf32> to vector<328x128xbf16>
    %20 = vector.extract_strided_slice %16 {offsets = [6, 0], sizes = [328, 128], strides = [1, 1]} : vector<376x128xf32> to vector<328x128xf32>
    %21 = arith.truncf %20 : vector<328x128xf32> to vector<328x128xbf16>
    %22 = vector.extract_strided_slice %16 {offsets = [7, 0], sizes = [328, 128], strides = [1, 1]} : vector<376x128xf32> to vector<328x128xf32>
    %23 = arith.truncf %22 : vector<328x128xf32> to vector<328x128xbf16>
    %24 = tpu.concatenate %19, %21, %23 in 1 : vector<328x128xbf16>, vector<328x128xbf16>, vector<328x128xbf16> -> vector<328x384xbf16>
    %c0_12 = arith.constant 0 : index
    %c0_13 = arith.constant 0 : index
    %c0_14 = arith.constant 0 : index
    %25 = vector.load %arg6[%c0_12, %c0_13, %c0_14] : memref<3x384x128xbf16, #tpu.memory_space<vmem>>, vector<1x384x128xbf16>
    %26 = vector.shape_cast %25 : vector<1x384x128xbf16> to vector<384x128xbf16>
    %cst_15 = arith.constant dense<0.000000e+00> : vector<328x128xf32>
    %27 = tpu.matmul %24, %26, %cst_15 {dimension_numbers = #tpu.dot_dimension_numbers<[1], [0], [0], [1], [0, 0, 1, 1], [], []>} : vector<328x384xbf16>, vector<384x128xbf16>, vector<328x128xf32> -> vector<328x128xf32>
    %28 = vector.extract_strided_slice %16 {offsets = [23, 0], sizes = [328, 128], strides = [1, 1]} : vector<376x128xf32> to vector<328x128xf32>
    %29 = arith.truncf %28 : vector<328x128xf32> to vector<328x128xbf16>
    %30 = vector.extract_strided_slice %16 {offsets = [25, 0], sizes = [328, 128], strides = [1, 1]} : vector<376x128xf32> to vector<328x128xf32>
    %31 = arith.truncf %30 : vector<328x128xf32> to vector<328x128xbf16>
    %32 = tpu.concatenate %29, %17, %31 in 1 : vector<328x128xbf16>, vector<328x128xbf16>, vector<328x128xbf16> -> vector<328x384xbf16>
    %c1 = arith.constant 1 : index
    %c0_16 = arith.constant 0 : index
    %c0_17 = arith.constant 0 : index
    %33 = vector.load %arg6[%c1, %c0_16, %c0_17] : memref<3x384x128xbf16, #tpu.memory_space<vmem>>, vector<1x384x128xbf16>
    %34 = vector.shape_cast %33 : vector<1x384x128xbf16> to vector<384x128xbf16>
    %cst_18 = arith.constant dense<0.000000e+00> : vector<328x128xf32>
    %35 = tpu.matmul %32, %34, %cst_18 {dimension_numbers = #tpu.dot_dimension_numbers<[1], [0], [0], [1], [0, 0, 1, 1], [], []>} : vector<328x384xbf16>, vector<384x128xbf16>, vector<328x128xf32> -> vector<328x128xf32>
    %36 = arith.addf %27, %35 : vector<328x128xf32>
    %37 = vector.extract_strided_slice %16 {offsets = [41, 0], sizes = [328, 128], strides = [1, 1]} : vector<376x128xf32> to vector<328x128xf32>
    %38 = arith.truncf %37 : vector<328x128xf32> to vector<328x128xbf16>
    %39 = vector.extract_strided_slice %16 {offsets = [42, 0], sizes = [328, 128], strides = [1, 1]} : vector<376x128xf32> to vector<328x128xf32>
    %40 = arith.truncf %39 : vector<328x128xf32> to vector<328x128xbf16>
    %41 = vector.extract_strided_slice %16 {offsets = [43, 0], sizes = [328, 128], strides = [1, 1]} : vector<376x128xf32> to vector<328x128xf32>
    %42 = arith.truncf %41 : vector<328x128xf32> to vector<328x128xbf16>
    %43 = tpu.concatenate %38, %40, %42 in 1 : vector<328x128xbf16>, vector<328x128xbf16>, vector<328x128xbf16> -> vector<328x384xbf16>
    %c2 = arith.constant 2 : index
    %c0_19 = arith.constant 0 : index
    %c0_20 = arith.constant 0 : index
    %44 = vector.load %arg6[%c2, %c0_19, %c0_20] : memref<3x384x128xbf16, #tpu.memory_space<vmem>>, vector<1x384x128xbf16>
    %45 = vector.shape_cast %44 : vector<1x384x128xbf16> to vector<384x128xbf16>
    %cst_21 = arith.constant dense<0.000000e+00> : vector<328x128xf32>
    %46 = tpu.matmul %43, %45, %cst_21 {dimension_numbers = #tpu.dot_dimension_numbers<[1], [0], [0], [1], [0, 0, 1, 1], [], []>} : vector<328x384xbf16>, vector<384x128xbf16>, vector<328x128xf32> -> vector<328x128xf32>
    %47 = arith.addf %36, %46 : vector<328x128xf32>
    %c0_22 = arith.constant 0 : index
    %c0_23 = arith.constant 0 : index
    %48 = vector.load %arg7[%c0_22, %c0_23] : memref<1x128xf32, #tpu.memory_space<vmem>>, vector<1x128xf32>
    %49 = vector.broadcast %48 : vector<1x128xf32> to vector<328x128xf32>
    %50 = arith.mulf %47, %49 : vector<328x128xf32>
    %c0_24 = arith.constant 0 : index
    %c0_25 = arith.constant 0 : index
    %51 = vector.load %arg8[%c0_24, %c0_25] : memref<1x128xf32, #tpu.memory_space<vmem>>, vector<1x128xf32>
    %52 = vector.broadcast %51 : vector<1x128xf32> to vector<328x128xf32>
    %53 = arith.addf %50, %52 : vector<328x128xf32>
    %cst_26 = arith.constant 0.000000e+00 : f32
    %54 = vector.broadcast %cst_26 : f32 to vector<328x128xf32>
    %55 = arith.maximumf %53, %54 : vector<328x128xf32>
    %56 = arith.truncf %55 : vector<328x128xf32> to vector<328x128xbf16>
    %c0_27 = arith.constant 0 : index
    %c0_28 = arith.constant 0 : index
    %57 = vector.load %arg9[%c0_27, %c0_28] : memref<128x128xbf16, #tpu.memory_space<vmem>>, vector<128x128xbf16>
    %cst_29 = arith.constant dense<0.000000e+00> : vector<328x128xf32>
    %58 = tpu.matmul %56, %57, %cst_29 {dimension_numbers = #tpu.dot_dimension_numbers<[1], [0], [0], [1], [0, 0, 1, 1], [], []>} : vector<328x128xbf16>, vector<128x128xbf16>, vector<328x128xf32> -> vector<328x128xf32>
    %c0_30 = arith.constant 0 : index
    %c0_31 = arith.constant 0 : index
    %59 = vector.load %arg10[%c0_30, %c0_31] : memref<1x128xf32, #tpu.memory_space<vmem>>, vector<1x128xf32>
    %60 = vector.broadcast %59 : vector<1x128xf32> to vector<328x128xf32>
    %61 = arith.mulf %58, %60 : vector<328x128xf32>
    %c0_32 = arith.constant 0 : index
    %c0_33 = arith.constant 0 : index
    %62 = vector.load %arg11[%c0_32, %c0_33] : memref<1x128xf32, #tpu.memory_space<vmem>>, vector<1x128xf32>
    %63 = vector.broadcast %62 : vector<1x128xf32> to vector<328x128xf32>
    %64 = arith.addf %61, %63 : vector<328x128xf32>
    %65 = arith.extf %1 : vector<328x128xbf16> to vector<328x128xf32>
    %66 = arith.addf %64, %65 : vector<328x128xf32>
    %cst_34 = arith.constant 0.000000e+00 : f32
    %67 = vector.broadcast %cst_34 : f32 to vector<328x128xf32>
    %68 = arith.maximumf %66, %67 : vector<328x128xf32>
    %69 = arith.truncf %68 : vector<328x128xf32> to vector<328x128xbf16>
    %c0_35 = arith.constant 0 : index
    %c0_36 = arith.constant 0 : index
    %c0_37 = arith.constant 0 : index
    %70 = vector.load %arg12[%c0_35, %c0_36, %c0_37] : memref<1x328x128xbf16, #tpu.memory_space<vmem>>, vector<1x328x128xbf16>
    %71 = vector.shape_cast %70 : vector<1x328x128xbf16> to vector<328x128xbf16>
    %72 = vector.shape_cast %69 : vector<328x128xbf16> to vector<1x328x128xbf16>
    tpu.vector_store %arg12[%c0_35, %c0_36, %c0_37], %72 {strides = array<i32>} : memref<1x328x128xbf16, #tpu.memory_space<vmem>>, vector<1x328x128xbf16>,
    return
  }
  func.func @transform_0(%arg0: i32) -> (i32, i32, i32) {
    %c0_i32 = arith.constant 0 : i32
    %c0_i32_0 = arith.constant 0 : i32
    %c0_i32_1 = arith.constant 0 : i32
    return %arg0, %c0_i32, %c0_i32_0 : i32, i32, i32
  }
  func.func @transform_1(%arg0: i32) -> (i32, i32) {
    %c0_i32 = arith.constant 0 : i32
    %c0_i32_0 = arith.constant 0 : i32
    %c0_i32_1 = arith.constant 0 : i32
    return %c0_i32, %c0_i32_0 : i32, i32
  }
  func.func @transform_2(%arg0: i32) -> (i32, i32) {
    %c0_i32 = arith.constant 0 : i32
    %c0_i32_0 = arith.constant 0 : i32
    %c0_i32_1 = arith.constant 0 : i32
    return %c0_i32, %c0_i32_0 : i32, i32
  }
  func.func @transform_3(%arg0: i32) -> (i32, i32) {
    %c0_i32 = arith.constant 0 : i32
    %c0_i32_0 = arith.constant 0 : i32
    %c0_i32_1 = arith.constant 0 : i32
    return %c0_i32, %c0_i32_0 : i32, i32
  }
  func.func @transform_4(%arg0: i32) -> (i32, i32) {
    %c0_i32 = arith.constant 0 : i32
    %c0_i32_0 = arith.constant 0 : i32
    %c0_i32_1 = arith.constant 0 : i32
    return %c0_i32, %c0_i32_0 : i32, i32
  }
  func.func @transform_5(%arg0: i32) -> (i32, i32, i32) {
    %c0_i32 = arith.constant 0 : i32
    %c0_i32_0 = arith.constant 0 : i32
    %c0_i32_1 = arith.constant 0 : i32
    %c0_i32_2 = arith.constant 0 : i32
    return %c0_i32, %c0_i32_0, %c0_i32_1 : i32, i32, i32
  }
  func.func @transform_6(%arg0: i32) -> (i32, i32) {
    %c0_i32 = arith.constant 0 : i32
    %c0_i32_0 = arith.constant 0 : i32
    %c0_i32_1 = arith.constant 0 : i32
    return %c0_i32, %c0_i32_0 : i32, i32
  }
  func.func @transform_7(%arg0: i32) -> (i32, i32) {
    %c0_i32 = arith.constant 0 : i32
    %c0_i32_0 = arith.constant 0 : i32
    %c0_i32_1 = arith.constant 0 : i32
    return %c0_i32, %c0_i32_0 : i32, i32
  }
  func.func @transform_8(%arg0: i32) -> (i32, i32) {
    %c0_i32 = arith.constant 0 : i32
    %c0_i32_0 = arith.constant 0 : i32
    %c0_i32_1 = arith.constant 0 : i32
    return %c0_i32, %c0_i32_0 : i32, i32
  }
  func.func @transform_9(%arg0: i32) -> (i32, i32) {
    %c0_i32 = arith.constant 0 : i32
    %c0_i32_0 = arith.constant 0 : i32
    %c0_i32_1 = arith.constant 0 : i32
    return %c0_i32, %c0_i32_0 : i32, i32
  }
  func.func @transform_10(%arg0: i32) -> (i32, i32) {
    %c0_i32 = arith.constant 0 : i32
    %c0_i32_0 = arith.constant 0 : i32
    %c0_i32_1 = arith.constant 0 : i32
    return %c0_i32, %c0_i32_0 : i32, i32
  }
  func.func @transform_11(%arg0: i32) -> (i32, i32, i32) {
    %c0_i32 = arith.constant 0 : i32
    %c0_i32_0 = arith.constant 0 : i32
    %c0_i32_1 = arith.constant 0 : i32
    return %arg0, %c0_i32, %c0_i32_0 : i32, i32, i32
  }
}

</mosaic_0001>

<bundles_post_ra>
// kernel: tpu_custom_call.1
= control target key start
LH: loop header
LB: loop body
LE: loop exit
PB: predicated region body
PF: predicated region fallthrough
CT: control target
= control target key end

     0   :  { %s10371_s0 = inlined_call_operand.hbm [shape: bf16[2,328,128], index: 0, kind: input, shape index: {}]   ;;  %s10372_s1 = inlined_call_operand.hbm [shape: bf16[328,128], index: 1, kind: input, shape index: {}]   ;;  %s10373_s2 = inlined_call_operand.hbm [shape: bf16[128,128], index: 2, kind: input, shape index: {}]   ;;  %s10374_s3 = inlined_call_operand.vmem [shape: f32[1,128], index: 3, kind: input, shape index: {}]   ;;  %s10375_s4 = inlined_call_operand.vmem [shape: f32[1,128], index: 4, kind: input, shape index: {}]   ;;  %s10376_s5 = inlined_call_operand.hbm [shape: bf16[3,384,128], index: 5, kind: input, shape index: {}]   ;;  %s10377_s6 = inlined_call_operand.vmem [shape: f32[1,128], index: 6, kind: input, shape index: {}]   ;;  %s10378_s7 = inlined_call_operand.vmem [shape: f32[1,128], index: 7, kind: input, shape index: {}]   ;;  %s10379_s8 = inlined_call_operand.hbm [shape: bf16[128,128], index: 8, kind: input, shape index: {}]   ;;  %s10380_s9 = inlined_call_operand.vmem [shape: f32[1,128], index: 9, kind: input, shape index: {}]   ;;  %s10381_s10 = inlined_call_operand.vmem [shape: f32[1,128], index: 10, kind: input, shape index: {}]   ;;  %s10382_s11 = inlined_call_operand.hbm [shape: bf16[2,328,128], index: 11, kind: output, shape index: {}]  }
   0x1   :  { %10521 = sst [smem:[#allocation71_spill]] %s10372_s1 }
   0x2   :  { %10522 = sst [smem:[#allocation72_spill]] %s10373_s2 }
   0x3   :  { %10523 = sst [smem:[#allocation73_spill]] %s10376_s5 }
   0x4   :  { %10524 = sst [smem:[#allocation74_spill]] %s10379_s8 }
   0x5   :  { %16 = vsyncpa [#allocation3], 0 }
   0x6   :  { %18 = vsyncpa [#allocation3 + $0x1], 0 }
   0x7   :  { %19 = vsyncpa [#allocation6], 0 }
   0x8   :  { %20 = vsyncpa [#allocation9], 0 }
   0x9   :  { %21 = vsyncpa [#allocation4], 0 }
   0xa   :  { %23 = vsyncpa [#allocation4 + $0x1], 0  ;;  %s7647_s17 = smov 0   ;;  %s7649_s18 = smov 0  }
   0xb   :  { %s7651_s19 = smov 0   ;;  %s7653_s20 = smov 0  }
   0xc LB: > { %s7668_s21 = sadd.s32 4294967295, %s7571_s20   ;;  %s6024_s22 = sadd.s32 4294967294, %s7571_s20   ;;  %s7571_s20 = sphi %s7653_s20, %s10810_s20   ;;  %s7567_s19 = sphi %s7651_s19, %s10809_s19   ;;  %s7563_s18 = sphi %s7649_s18, %s10808_s18   ;;  %s7559_s17 = sphi %s7647_s17, %s10807_s17  }
   0xd   : > { %p49_p0 = scmp.ne.s32.totalorder %s7563_s18, %s7559_s17  ;;  %p10383_p1 = scmp.eq.s32.totalorder %s7668_s21, 0 }
   0xe   : > { %p283_p2 = scmp.eq.s32.totalorder %s7668_s21, 1  ;;  %p289_p3 = scmp.eq.s32.totalorder %s6024_s22, 1 }
   0xf   : > { %p7677_p4 = por %p10383_p1, %p49_p0  ;;  %p6025_p5 = scmp.ge.s32.totalorder %s7571_s20, 1 }
  0x10   : > { %p7682_p6 = por %p289_p3, %p49_p0  ;;  %p296_p7 = scmp.lt.s32.totalorder %s7571_s20, 3 }
  0x11   : > { %s10525_s23 = scalar_select %p7677_p4, 1, 0 }
  0x12   : > { %s10526_s24 = scalar_select %p7682_p6, 1, 0 }
  0x13   : > { %p7687_p8 = pnand %p6025_p5, %p296_p7  ;;  %s7573_s26 = smov [#allocation5]  }
  0x14   : > { %s308_s27 = sshll.u32 %s7573_s26, 4  ;;  %s7574_s29 = smov [#allocation8]   ;;  %s309_s27 = int_to_ptr.vmem [resolvable:$true] %s308_s27 }
  0x15   : > { %s10527_s25 = scalar_select %p7687_p8, 1, 0 }
  0x16   : > { %p7140_p9 = pneg %p7687_p8  ;;  %s340_s30 = sshll.u32 %s7574_s29, 4  ;;  %s341_s30 = int_to_ptr.vmem [resolvable:$true] %s340_s30 }
  0x17   : > { %s7575_s12 = smov [#allocation7]   ;;  %s7378_s14 = scalar_lea.vmem %s309_s27, 2624 }
  0x18   : > { %p7696_p11 = pnand %p7140_p9, %p10383_p1  ;;  %s321_s13 = sshll.u32 %s7575_s12, 4  ;;  %s322_s13 = int_to_ptr.vmem [resolvable:$true] %s321_s13 }
  0x19   : > { %p7379_p13 = scmp.ne.s32.totalorder %s309_s27, %s7378_s14  ;;  %p7386_p5 = scmp.lt.s32.totalorder %s309_s27, %s309_s27 }
  0x1a   : > { %p7369_p12 = pneg %p7696_p11  ;;  %p7387_p7 = scmp.lt.s32.totalorder %s7378_s14, %s7378_s14 }
  0x1c   : > { %p7381_p0 = pnand %p7379_p13, %p7369_p12  ;;  %p7388_p9 = por %p7387_p7, %p7386_p5 }
  0x1e   : > { %p7382_p3 = pneg %p7381_p0 }
  0x20   : > { %p7389_p10 = pnand %p7388_p9, %p7382_p3 }
  0x22   : > { %7392 = shalt.err (!%p7389_p10)
}
  0x23   : > { %s10384_s15 = smov 64   ;;  %s10385_s16 = smov 4  }
  0x24   : > { %s10529_s1 = sld [smem:[#allocation71_spill]]  ;;  %s7404_s29 = scalar_lea.vmem %s341_s30, 9216 }
  0x25   : > { %p7405_p13 = scmp.ne.s32.totalorder %s341_s30, %s7404_s29  ;;  %p7412_p3 = scmp.lt.s32.totalorder %s341_s30, %s341_s30 }
  0x26   : > { %p7413_p10 = scmp.lt.s32.totalorder %s7404_s29, %s7404_s29 }
  0x27   : > { %p7407_p0 = pnand %p7405_p13, %p7369_p12 }
  0x28   : > { %p7414_p7 = por %p7413_p10, %p7412_p3 }
  0x29   : > { %p7408_p5 = pneg %p7407_p0 }
  0x2a   : > { %7143 = dma.hbm_to_vmem [thread:$0]  (!%p7696_p11), %s10529_s1, 2624, %s309_s27, [#allocation6], %s10384_s15, %s10384_s15, %s10385_s16  }
  0x2b   : > { %p7415_p9 = pnand %p7414_p7, %p7408_p5 }
  0x2d   : > { %7418 = shalt.err (!%p7415_p9)
}
  0x2e   : > { %s10530_s5 = sld [smem:[#allocation73_spill]]  ;;  %s7430_s27 = scalar_lea.vmem %s322_s13, 1024 }
  0x2f   : > { %p7431_p1 = scmp.ne.s32.totalorder %s322_s13, %s7430_s27  ;;  %p7438_p3 = scmp.lt.s32.totalorder %s322_s13, %s322_s13 }
  0x30   : > { %p7439_p5 = scmp.lt.s32.totalorder %s7430_s27, %s7430_s27 }
  0x31   : > { %p7433_p13 = pnand %p7431_p1, %p7369_p12 }
  0x32   : > { %p7440_p10 = por %p7439_p5, %p7438_p3 }
  0x33   : > { %p7434_p0 = pneg %p7433_p13 }
  0x34   : > { %7149 = dma.hbm_to_vmem [thread:$0]  (!%p7696_p11), %s10530_s5, 9216, %s341_s30, [#allocation9], %s10384_s15, %s10384_s15, %s10385_s16  }
  0x35   : > { %p7441_p7 = pnand %p7440_p10, %p7434_p0 }
  0x37   : > { %7444 = shalt.err (!%p7441_p7)
}
  0x38   : > { %s10531_s2 = sld [smem:[#allocation72_spill]]  ;;  %s7578_s30 = smov [#allocation10]  }
  0x39   : > { %s359_s29 = sshll.u32 %s7578_s30, 4  ;;  %s360_s29 = int_to_ptr.vmem [resolvable:$true] %s359_s29 }
  0x3a   : > { %s7456_s12 = scalar_lea.vmem %s360_s29, 1024  ;;  %p7464_p0 = scmp.lt.s32.totalorder %s360_s29, %s360_s29 }
  0x3b   : > { %p7457_p1 = scmp.ne.s32.totalorder %s360_s29, %s7456_s12  ;;  %p7465_p3 = scmp.lt.s32.totalorder %s7456_s12, %s7456_s12 }
  0x3d   : > { %p7459_p9 = pnand %p7457_p1, %p7369_p12  ;;  %p7466_p5 = por %p7465_p3, %p7464_p0 }
  0x3e   : > { %7146 = dma.hbm_to_vmem [thread:$0]  (!%p7696_p11), %s10531_s2, 1024, %s322_s13, [#allocation6], %s10384_s15, %s10384_s15, %s10385_s16  }
  0x3f   : > { %p7460_p13 = pneg %p7459_p9 }
  0x41   : > { %p7467_p10 = pnand %p7466_p5, %p7460_p13 }
  0x43   : > { %7470 = shalt.err (!%p7467_p10)
}
  0x44   : > { %s10532_s8 = sld [smem:[#allocation74_spill]]  ;;  %s7747_s27 = sadd.s32 1, %s7571_s20  }
  0x45   : > { %s36_s28 = sadd.s32 1, %s7567_s19  ;;  %s33_s22 = ssub.s32 %s7571_s20, %s7747_s27 }
  0x46   : > { %p43_p12 = scmp.ne.s32.totalorder %s7567_s19, %s7563_s18  ;;  %p34_p7 = scmp.eq.s32.totalorder %s33_s22, 0 }
  0x47   : > { %p44_p1 = scmp.eq.s32.totalorder %s7571_s20, 0  ;;  %p7165_p13 = scmp.lt.s32.totalorder %s7571_s20, 2 }
  0x48   : > { %p7757_p9 = por %p283_p2, %p43_p12  ;;  %s379_s12 = sand.u32 1, %s7567_s19  }
  0x49   : > { %s7763_s30 = scalar_select %p34_p7, %s7567_s19, %s36_s28  }
  0x4a   : > { %7152 = dma.hbm_to_vmem [thread:$0]  (!%p7696_p11), %s10532_s8, 1024, %s360_s29, [#allocation9], %s10384_s15, %s10384_s15, %s10385_s16  }
  0x4b   : > { %s10533_s26 = scalar_select %p7757_p9, 1, 0 }
  0x4c   : > { %10534 = sst [smem:[#allocation16_spill]] %s7763_s30  ;;  %p45_p0 = por %p44_p1, %p43_p12 }
  0x4d   : > { %s7116_s13 = smul.u32 164, %s379_s12  ;;  %s7778_s2 = scalar_lea.sflag [#allocation3], %s379_s12 }
  0x4e   : > { %s7117_s29 = smul.u32 2624, %s7571_s20  ;;  %p7767_p11 = pnand %p7165_p13, %p45_p0 }
  0x4f   : > { %s383_s1 = scalar_lea.vmem [#allocation2], %s7116_s13  ;;  %s7476_s16 = scalar_lea.hbm %s10371_s0, 5248 }
  0x50   : > { %s7774_s22 = scalar_lea.hbm %s10371_s0, %s7117_s29  ;;  %s390_s28 = sshll.u32 %s383_s1, 4  ;;  %s7776_s28 = int_to_ptr.vmem [resolvable:$true] %s390_s28 }
  0x51   : > { %s7471_s5 = scalar_lea.hbm %s7774_s22, 2624  ;;  %p7473_p3 = pneg %p7767_p11 }
  0x52   : > { %p7472_p2 = scmp.ne.s32.totalorder %s7774_s22, %s7471_s5  ;;  %p7477_p12 = scmp.lt.s32.totalorder %s7774_s22, %s10371_s0 }
  0x53   : > { %p7478_p7 = scmp.lt.s32.totalorder %s7476_s16, %s7471_s5 }
  0x54   : > { %p7474_p5 = pnand %p7473_p3, %p7472_p2 }
  0x55   : > { %p7479_p1 = por %p7478_p7, %p7477_p12 }
  0x56   : > { %p7475_p10 = pneg %p7474_p5 }
  0x58   : > { %p7480_p13 = pnand %p7479_p1, %p7475_p10 }
  0x5a   : > { %7483 = shalt.err (!%p7480_p13)
}
  0x5b   : > { %s7484_s1 = scalar_lea.vmem %s7776_s28, 2624  ;;  %s7579_s12 = smov [#allocation2]  }
  0x5c   : > { %p7485_p0 = scmp.ne.s32.totalorder %s7776_s28, %s7484_s1  ;;  %s7489_s13 = sshll.u32 %s7579_s12, 4  ;;  %s7490_s13 = int_to_ptr.vmem [resolvable:$false] %s7489_s13 }
  0x5d   : > { %s7491_s8 = scalar_lea.vmem %s7490_s13, 5248  ;;  %p7492_p5 = scmp.lt.s32.totalorder %s7776_s28, %s7490_s13 }
  0x5e   : > { %p7487_p6 = pnand %p7485_p0, %p7473_p3  ;;  %p7493_p9 = scmp.lt.s32.totalorder %s7491_s8, %s7484_s1 }
  0x60   : > { %p7488_p2 = pneg %p7487_p6  ;;  %p7494_p4 = por %p7493_p9, %p7492_p5 }
  0x62   : > { %p7495_p8 = pnand %p7494_p4, %p7488_p2 }
  0x64   : > { %7498 = shalt.err (!%p7495_p8)
}
  0x65   : > { %s10536_s5 = smov 4   ;;  %s10537_s30 = smov 64  }
  0x66   : > { %7156 = dma.hbm_to_vmem [thread:$0]  (!%p7767_p11), %s7774_s22, 2624, %s7776_s28, %s7778_s2, %s10537_s30, %s10537_s30, %s10536_s5  }
  0x67   : > { %p10538_p6 = scmp.ne.s32.totalorder %s10527_s25, 0 }
  0x69   : > { %402 = sbr.rel (%p10538_p6) target bundleno = 1342 (0x53e), region = 64 }
  0x6e   : > { %s7805_s15 = sand.u32 1, %s7563_s18   ;;  %p10539_p4 = scmp.ne.s32.totalorder %s10525_s23, 0 }
  0x6f   : > { %s7118_s16 = smul.u32 164, %s7805_s15  ;;  %s405_s29 = scalar_lea.sflag [#allocation3], %s7805_s15 }
  0x71   : > { %s7811_s14 = scalar_lea.vmem [#allocation2], %s7118_s16 }
  0x72   : > { %7542 = dma.done.wait (%p10539_p4), %s405_s29, 2624  }
  0x73   : > { %7544 = vsyncadd (%p10539_p4), %s405_s29, 4294964672  ;;  %p10540_p8 = scmp.eq.s32.totalorder %s7668_s21, 0 }
  0x75   : > { %7546 = dma.done.wait (%p10540_p8), [#allocation6], 3648   ;;  %p10541_p9 = pmov %p10540_p8 }
  0x76   : > { %p10542_p11 = pmov %p10540_p8 }
  0x77   : > { %7548 = vsyncadd (%p10541_p9), [#allocation6], 4294963648 }
  0x78   : > { %7550 = dma.done.wait (%p10542_p11), [#allocation9], 10240   ;;  %p10543_p3 = pmov %p10540_p8 }
  0x79   : > { %v10400_v0 = vmov 0.0   ;;  %vm7581_vm0 = vmmov 0   ;;  %v7215_v1 = vld [vmem:[#allocation7 + $0x38] sm:$0xff]   ;;  %v7216_v2 = vld [vmem:[#allocation7 + $0x30] sm:$0xff]   ;;  %v7217_v3 = vld [vmem:[#allocation7 + $0x28] sm:$0xff]   ;;  %v10402_v22 = vmov 0  }
  0x7a   : > { %7552 = vsyncadd (%p10543_p3), [#allocation9], 4294957056  ;;  %6600 = vmatprep.subr.bf16.mxu0 %v10400_v0  ;;  %6616 = vmatprep.mubr.msk.bf16.mxu0 %vm7581_vm0, %v10400_v0  ;;  %v7218_v4 = vld [vmem:[#allocation7 + $0x20] sm:$0xff]   ;;  %v7219_v5 = vld [vmem:[#allocation7 + $0x18] sm:$0xff]   ;;  %vm1384_vm1 = vcmask 1046528   ;;  %vm1686_vm2 = vcmask 1042432  }
  0x7b   : > { %6601 = vmatpush3.bf16.msra.mxu0 %v7215_v1  ;;  %v7220_v6 = vld [vmem:[#allocation7 + $0x10] sm:$0xff]   ;;  %v7221_v7 = vld [vmem:[#allocation7 + $0x8] sm:$0xff]   ;;  %v7222_v8 = vld [vmem:[#allocation7] sm:$0xff]   ;;  %2449 = vmatprep.subr.bf16.mxu1 %v10402_v22  ;;  %vm1476_vm3 = vsmask.f32 3328  ;;  %s10204_s28 = scalar_lea.vmem [#allocation11], %s7118_s16 }
  0x7c   : > { %6602 = vmatprep.subr.bf16.mxu0 %v10400_v0  ;;  %v464_v9 = vld [vmem:[%s7811_s14] sm:$0xff]   ;;  %v466_v11 = vld [vmem:[%s7811_s14 + $0x8] sm:$0xff]   ;;  %v7239_v13 = vld [vmem:[#allocation8 + $0x168] sm:$0xff]   ;;  %vm1777_vm4 = vsmask.f32 4352  ;;  %s7119_s16 = smul.u32 2624, %s7668_s21 }
  0x7d   : > { %v7231_v10 = vld [vmem:[#allocation8 + $0x178] sm:$0xff]   ;;  %v7235_v12 = vld [vmem:[#allocation8 + $0x170] sm:$0xff]   ;;  %v468_v14 = vld [vmem:[%s7811_s14 + $0x10] sm:$0xff]   ;;  %vm1195_vm5 = vsmask.f32 7424  ;;  %s5913_s1 = sshll.u32 %s10204_s28, 4  ;;  %s10327_s1 = int_to_ptr.vmem [resolvable:$true] %s5913_s1 }
  0x7e   : > { %v7242_v15 = vld [vmem:[#allocation8 + $0x160] sm:$0xff]   ;;  %v7246_v16 = vld [vmem:[#allocation8 + $0x158] sm:$0xff]   ;;  %v470_v17 = vld [vmem:[%s7811_s14 + $0x18] sm:$0xff]   ;;  %vm2849_vm6 = vsmask.f32 5376  ;;  %s10325_s13 = scalar_lea.hbm %s10382_s11, %s7119_s16  ;;  %s5900_s8 = scalar_lea.sflag [#allocation4], %s7805_s15 }
  0x7f   : > { %6603 = vmatpush3.bf16.msra.mxu0 %v7216_v2  ;;  %v472_v18 = vld [vmem:[%s7811_s14 + $0x20] sm:$0xff]   ;;  %v474_v21 = vld [vmem:[%s7811_s14 + $0x28] sm:$0xff]   ;;  %v7256_v24 = vld [vmem:[#allocation8 + $0x148] sm:$0xff]   ;;  %s7499_s21 = scalar_lea.vmem %s10327_s1, 2624  ;;  %p10803_p12 = scmp.ne.s32.totalorder %s10533_s26, 0 }
  0x80   : > { %6604 = vmatprep.subr.bf16.mxu0 %v10400_v0  ;;  %v7249_v19 = vld [vmem:[#allocation8 + $0xf8] sm:$0xff]   ;;  %v7250_v20 = vld [vmem:[#allocation8 + $0x150] sm:$0xff]   ;;  %v7252_v25 = vld [vmem:[#allocation8 + $0xe8] sm:$0xff]   ;;  %p7500_p10 = scmp.ne.s32.totalorder %s10327_s1, %s7499_s21  ;;  %s7584_s5 = smov [#allocation11]  }
  0x81   : > { %2450 = vmatpush1.bf16.msra.mxu1 %v7249_v19  ;;  %v7251_v23 = vld [vmem:[#allocation8 + $0xf0] sm:$0xff]   ;;  %v476_v26 = vld [vmem:[%s7811_s14 + $0x30] sm:$0xff]   ;;  %v7254_v28 = vld [vmem:[#allocation8 + $0xd8] sm:$0xff]   ;;  %s7503_s30 = sshll.u32 %s7584_s5, 4  ;;  %s7504_s30 = int_to_ptr.vmem [resolvable:$false] %s7503_s30 }
  0x82   : > { %2451 = vmatprep.subr.bf16.mxu1 %v10402_v22  ;;  %v7253_v27 = vld [vmem:[#allocation8 + $0xe0] sm:$0xff]   ;;  %v478_v29 = vld [vmem:[%s7811_s14 + $0x38] sm:$0xff]   ;;  %v480_v32 = vld [vmem:[%s7811_s14 + $0x40] sm:$0xff]   ;;  %p7501_p7 = pnand %p7500_p10, %p10803_p12  ;;  %s7505_s29 = scalar_lea.vmem %s7504_s30, 5248 }
  0x83   : > { %6605 = vmatpush3.bf16.msra.mxu0 %v7217_v3  ;;  %v7255_v30 = vld [vmem:[#allocation8 + $0xd0] sm:$0xff]   ;;  %v7257_v31 = vld [vmem:[#allocation8 + $0xc8] sm:$0xff]   ;;  %v482_v33 = vld [vmem:[%s7811_s14 + $0x48] sm:$0xff]   ;;  %p7506_p13 = scmp.lt.s32.totalorder %s10327_s1, %s7504_s30  ;;  %p7507_p0 = scmp.lt.s32.totalorder %s7505_s29, %s7499_s21 }
  0x84   : > { %6606 = vmatprep.subr.bf16.mxu0 %v10400_v0  ;;  %v7258_v34 = vld [vmem:[#allocation8 + $0xc0] sm:$0xff]   ;;  %v7259_v35 = vld [vmem:[#allocation8 + $0x138] sm:$0xff]   ;;  %v7260_v37 = vld [vmem:[#allocation8 + $0x130] sm:$0xff]   ;;  %p7502_p1 = pneg %p7501_p7 }
  0x85   : > { %2452 = vmatpush1.bf16.msra.mxu1 %v7251_v23  ;;  %v484_v36 = vld [vmem:[%s7811_s14 + $0x50] sm:$0xff]   ;;  %v486_v39 = vld [vmem:[%s7811_s14 + $0x58] sm:$0xff]   ;;  %v7264_v41 = vld [vmem:[#allocation8 + $0x118] sm:$0xff]   ;;  %p7508_p2 = por %p7507_p0, %p7506_p13 }
  0x86   : > { %2453 = vmatprep.subr.bf16.mxu1 %v10402_v22  ;;  %v7261_v38 = vld [vmem:[#allocation8 + $0x128] sm:$0xff]   ;;  %v7263_v40 = vld [vmem:[#allocation8 + $0x120] sm:$0xff]   ;;  %v488_v42 = vld [vmem:[%s7811_s14 + $0x60] sm:$0xff]  }
  0x87   : > { %6607 = vmatpush3.bf16.msra.mxu0 %v7218_v4  ;;  %v7265_v43 = vld [vmem:[#allocation8 + $0x110] sm:$0xff]   ;;  %v7262_v44 = vld [vmem:[#allocation8 + $0x140] sm:$0xff]   ;;  %v7266_v45 = vld [vmem:[#allocation8 + $0x108] sm:$0xff]   ;;  %p7509_p5 = pnand %p7508_p2, %p7502_p1 }
  0x88   : > { %6608 = vmatprep.subr.bf16.mxu0 %v10400_v0  ;;  %v490_v46 = vld [vmem:[%s7811_s14 + $0x68] sm:$0xff]   ;;  %v492_v48 = vld [vmem:[%s7811_s14 + $0x70] sm:$0xff]   ;;  %v494_v49 = vld [vmem:[%s7811_s14 + $0x78] sm:$0xff]  }
  0x89   : > { %2454 = vmatpush1.bf16.msra.mxu1 %v7252_v25  ;;  %v7267_v47 = vld [vmem:[#allocation8 + $0x100] sm:$0xff]   ;;  %v496_v50 = vld [vmem:[%s7811_s14 + $0x80] sm:$0xff]   ;;  %v502_v53 = vld [vmem:[%s7811_s14 + $0x98] sm:$0xff]  }
  0x8a   : > { %2455 = vmatprep.subr.bf16.mxu1 %v10402_v22  ;;  %v498_v51 = vld [vmem:[%s7811_s14 + $0x88] sm:$0xff]   ;;  %v500_v52 = vld [vmem:[%s7811_s14 + $0x90] sm:$0xff]   ;;  %v504_v54 = vld [vmem:[%s7811_s14 + $0xa0] sm:$0xf] }
  0x8b   : > { %6609 = vmatpush3.bf16.msra.mxu0 %v7219_v5  ;;  %v6057_v55 = vcombine.low %v504_v54, %v504_v54  ;;  %v7927_v56 = vld [vmem:[%s10374_s3] ss:$0 sm:$0xff]  ;;  %v6238_v62 = vld [vmem:[#allocation5] sm:$0xff]  }
  0x8c   : > { %6610 = vmatprep.subr.bf16.mxu0 %v10400_v0  ;;  %v7932_v58 = vld [vmem:[%s10375_s4] ss:$0 sm:$0xff]  ;;  %v6239_v4 = vunpack.c.l.bf16 %v6238_v62 }
  0x8d   : > { %2456 = vmatpush1.bf16.msra.mxu1 %v7253_v27 }
  0x8e   : > { %2457 = vmatprep.subr.bf16.mxu1 %v10402_v22 }
  0x8f   : > { %6611 = vmatpush3.bf16.msra.mxu0 %v7220_v6  ;;  %v6240_v6 = vunpack.c.h.bf16 %v6238_v62 }
  0x90   : > { %6612 = vmatprep.subr.bf16.mxu0 %v10400_v0 }
  0x91   : > { %2458 = vmatpush1.bf16.msra.mxu1 %v7254_v28 }
  0x92   : > { %2459 = vmatprep.subr.bf16.mxu1 %v10402_v22 }
  0x93   : > { %6613 = vmatpush3.bf16.msra.mxu0 %v7221_v7 }
  0x94   : > { %6614 = vmatprep.subr.bf16.mxu0 %v10400_v0 }
  0x95   : > { %2460 = vmatpush1.bf16.msra.mxu1 %v7255_v30 }
  0x96   : > { %2461 = vmatprep.subr.bf16.mxu1 %v10402_v22 }
  0x97   : > { %6615 = vmatpush3.bf16.msra.mxu0 %v7222_v8 }
  0x98   : > { %6700 = vmatprep.subr.bf16.mxu0 %v10400_v0 }
  0x99   : > { %2462 = vmatpush1.bf16.msra.mxu1 %v7257_v31 }
  0x9a   : > { %6617 = vmatmul.mubr.bf16.vlgmr.msra.gmra.mxu0 %v464_v9  ;;  %2463 = vmatprep.subr.bf16.mxu1 %v10402_v22 }
  0x9b   : > { %6620 = vmatprep.mubr.msk.bf16.mxu0 %vm7581_vm0, %v10400_v0  ;;  %6701 = vmatpush3.bf16.msra.mxu0 %v7231_v10  ;;  %v6417_v10 = vld [vmem:[#allocation5 + $0x8] sm:$0xff]  }
  0x9c   : > { %6702 = vmatprep.subr.bf16.mxu0 %v10400_v0 }
  0x9d   : > { %2464 = vmatpush1.bf16.msra.mxu1 %v7258_v34  ;;  %v7952_v34 = vld [vmem:[#allocation5 + $0x28] sm:$0xff]  }
  0x9e   : > { %2465 = vmatprep.subr.bf16.mxu1 %v10402_v22 }
  0x9f   : > { %6703 = vmatpush3.bf16.msra.mxu0 %v7235_v12  ;;  %v7939_v12 = vld [vmem:[#allocation5 + $0x10] sm:$0xff]  }
  0xa0   : > { %6704 = vmatprep.subr.bf16.mxu0 %v10400_v0  ;;  %v6247_v23 = vunpack.c.l.bf16 %v7939_v12  ;;  %v6248_v27 = vunpack.c.h.bf16 %v7939_v12 }
  0xa1   : > { %2466 = vmatpush2.bf16.msra.mxu1 %v7259_v35  ;;  %v7954_v35 = vld [vmem:[#allocation5 + $0x30] sm:$0xff]  }
  0xa2   : > { %6621 = vmatmul.mubr.bf16.gmra.mxu0 %v466_v11  ;;  %2467 = vmatprep.subr.bf16.mxu1 %v10402_v22 }
  0xa3   : > { %6624 = vmatprep.mubr.msk.bf16.mxu0 %vm7581_vm0, %v10400_v0  ;;  %6705 = vmatpush3.bf16.msra.mxu0 %v7239_v13 }
  0xa4   : > { %6706 = vmatprep.subr.bf16.mxu0 %v10400_v0 }
  0xa5   : > { %2468 = vmatpush2.bf16.msra.mxu1 %v7260_v37 }
  0xa6   : > { %2469 = vmatprep.subr.bf16.mxu1 %v10402_v22 }
  0xa7   : > { %6707 = vmatpush3.bf16.msra.mxu0 %v7242_v15  ;;  %v7941_v15 = vld [vmem:[#allocation5 + $0x18] sm:$0xff]  }
  0xa8   : > { %6708 = vmatprep.subr.bf16.mxu0 %v10400_v0  ;;  %v6251_v28 = vunpack.c.l.bf16 %v7941_v15 }
  0xa9   : > { %2470 = vmatpush2.bf16.msra.mxu1 %v7261_v38 }
  0xaa   : > { %6625 = vmatmul.mubr.bf16.gmra.mxu0 %v468_v14  ;;  %2471 = vmatprep.subr.bf16.mxu1 %v10402_v22 }
  0xab   : > { %6628 = vmatprep.mubr.msk.bf16.mxu0 %vm7581_vm0, %v10400_v0  ;;  %6709 = vmatpush3.bf16.msra.mxu0 %v7246_v16 }
  0xac   : > { %6710 = vmatprep.subr.bf16.mxu0 %v10400_v0 }
  0xad   : > { %2472 = vmatpush2.bf16.msra.mxu1 %v7263_v40 }
  0xae   : > { %2473 = vmatprep.subr.bf16.mxu1 %v10402_v22 }
  0xaf   : > { %6711 = vmatpush3.bf16.msra.mxu0 %v7250_v20 }
  0xb0   : > { %6712 = vmatprep.subr.bf16.mxu0 %v10400_v0 }
  0xb1   : > { %2474 = vmatpush2.bf16.msra.mxu1 %v7264_v41 }
  0xb2   : > { %6629 = vmatmul.mubr.bf16.gmra.mxu0 %v470_v17  ;;  %2475 = vmatprep.subr.bf16.mxu1 %v10402_v22  ;;  %v6243_v17 = vunpack.c.l.bf16 %v6417_v10 }
  0xb3   : > { %6632 = vmatprep.mubr.msk.bf16.mxu0 %vm7581_vm0, %v10400_v0  ;;  %6713 = vmatpush3.bf16.msra.mxu0 %v7256_v24  ;;  %v7946_v24 = vld [vmem:[#allocation5 + $0x20] sm:$0xff]  }
  0xb4   : > { %6714 = vmatprep.subr.bf16.mxu0 %v10400_v0  ;;  %v6256_v40 = vunpack.c.h.bf16 %v7946_v24 }
  0xb5   : > { %2476 = vmatpush2.bf16.msra.mxu1 %v7265_v43 }
  0xb6   : > { %2477 = vmatprep.subr.bf16.mxu1 %v10402_v22 }
  0xb7   : > { %6715 = vmatpush3.bf16.msra.mxu0 %v7262_v44 }
  0xb8   : > { %6800 = vmatprep.subr.bf16.mxu0 %v10400_v0 }
  0xb9   : > { %2478 = vmatpush2.bf16.msra.mxu1 %v7266_v45 }
  0xba   : > { %6633 = vmatmul.mubr.bf16.gmra.mxu0 %v472_v18  ;;  %2479 = vmatprep.subr.bf16.mxu1 %v10402_v22 }
  0xbb   : > { %6636 = vmatprep.mubr.msk.bf16.mxu0 %vm7581_vm0, %v10400_v0 }
  0xbd   : > { %2480 = vmatpush2.bf16.msra.mxu1 %v7267_v47  ;;  %v6259_v47 = vunpack.c.l.bf16 %v7952_v34 }
  0xbe   : > { %3516 = vmatprep.subr.bf16.mxu1 %v10402_v22 }
  0xc2   : > { %6637 = vmatmul.mubr.bf16.gmra.mxu0 %v474_v21  ;;  %v6244_v21 = vunpack.c.h.bf16 %v6417_v10 }
  0xc3   : > { %6640 = vmatprep.mubr.msk.bf16.mxu0 %vm7581_vm0, %v10400_v0 }
  0xca   : > { %6641 = vmatmul.mubr.bf16.gmra.mxu0 %v476_v26 }
  0xcb   : > { %6644 = vmatprep.mubr.msk.bf16.mxu0 %vm7581_vm0, %v10400_v0 }
  0xd2   : > { %6645 = vmatmul.mubr.bf16.gmra.mxu0 %v478_v29  ;;  %v6252_v29 = vunpack.c.h.bf16 %v7941_v15 }
  0xd3   : > { %6648 = vmatprep.mubr.msk.bf16.mxu0 %vm7581_vm0, %v10400_v0 }
  0xda   : > { %6649 = vmatmul.mubr.bf16.gmra.mxu0 %v480_v32 }
  0xdb   : > { %6652 = vmatprep.mubr.msk.bf16.mxu0 %vm7581_vm0, %v10400_v0 }
  0xe2   : > { %6653 = vmatmul.mubr.bf16.gmra.mxu0 %v482_v33 }
  0xe3   : > { %6656 = vmatprep.mubr.msk.bf16.mxu0 %vm7581_vm0, %v10400_v0 }
  0xea   : > { %6657 = vmatmul.mubr.bf16.gmra.mxu0 %v484_v36 }
  0xeb   : > { %6660 = vmatprep.mubr.msk.bf16.mxu0 %vm7581_vm0, %v10400_v0 }
  0xf2   : > { %6661 = vmatmul.mubr.bf16.gmra.mxu0 %v486_v39  ;;  %v6255_v39 = vunpack.c.l.bf16 %v7946_v24 }
  0xf3   : > { %6664 = vmatprep.mubr.msk.bf16.mxu0 %vm7581_vm0, %v10400_v0 }
  0xfa   : > { %6665 = vmatmul.mubr.bf16.gmra.mxu0 %v488_v42 }
  0xfb   : > { %6668 = vmatprep.mubr.msk.bf16.mxu0 %vm7581_vm0, %v10400_v0 }
 0x102   : > { %6669 = vmatmul.mubr.bf16.gmra.mxu0 %v490_v46 }
 0x103   : > { %6672 = vmatprep.mubr.msk.bf16.mxu0 %vm7581_vm0, %v10400_v0 }
 0x10a   : > { %6673 = vmatmul.mubr.bf16.gmra.mxu0 %v492_v48  ;;  %v6260_v48 = vunpack.c.h.bf16 %v7952_v34 }
 0x10b   : > { %6676 = vmatprep.mubr.msk.bf16.mxu0 %vm7581_vm0, %v10400_v0 }
 0x112   : > { %6677 = vmatmul.mubr.bf16.gmra.mxu0 %v494_v49  ;;  %v6263_v49 = vunpack.c.l.bf16 %v7954_v35 }
 0x113   : > { %6680 = vmatprep.mubr.msk.bf16.mxu0 %vm7581_vm0, %v10400_v0 }
 0x11a   : > { %6681 = vmatmul.mubr.bf16.gmra.mxu0 %v496_v50 }
 0x11b   : > { %6684 = vmatprep.mubr.msk.bf16.mxu0 %vm7581_vm0, %v10400_v0 }
 0x122   : > { %6685 = vmatmul.mubr.bf16.gmra.mxu0 %v498_v51 }
 0x123   : > { %6688 = vmatprep.mubr.msk.bf16.mxu0 %vm7581_vm0, %v10400_v0 }
 0x12a   : > { %6689 = vmatmul.mubr.bf16.gmra.mxu0 %v500_v52 }
 0x12b   : > { %6692 = vmatprep.mubr.msk.bf16.mxu0 %vm7581_vm0, %v10400_v0 }
 0x132   : > { %6693 = vmatmul.mubr.bf16.gmra.mxu0 %v502_v53  ;;  %v6264_v53 = vunpack.c.h.bf16 %v7954_v35 }
 0x133   : > { %6696 = vmatprep.mubr.msk.bf16.mxu0 %vm7581_vm0, %v10400_v0 }
 0x13a   : > { %6697 = vmatmul.mubr.bf16.gmra.mxu0 %v6057_v55 }
 0x13b   : > { %6716 = vmatprep.mubr.msk.bf16.mxu0 %vm7581_vm0, %v10400_v0 }
 0x15a   : > { %v727_v57 = vpop.f32.mrf.mxu0 }
 0x15b   : > { %v900_v59 = vmul.f32 %v7927_v56, %v727_v57 }
 0x15c   : > { %v6618_v60 = vpop.f32.mrf.mxu0 }
 0x15d   : > { %v948_v61 = vadd.f32 %v7932_v58, %v900_v59 }
 0x15e   : > { %v730_v63 = vpop.f32.mrf.mxu0 }
 0x15f   : > { %v901_v1 = vmul.f32 %v7927_v56, %v730_v63  ;;  %v989_v3 = vmax.f32 %v948_v61, 0.0 }
 0x160   : > { %v6619_v2 = vpop.f32.mrf.mxu0 }
 0x161   : > { %v949_v5 = vadd.f32 %v7932_v58, %v901_v1  ;;  %v1112_v13 = vmul.f32 %v6239_v4, %v989_v3 }
 0x162   : > { %v735_v7 = vpop.f32.mrf.mxu0 }
 0x163   : > { %v990_v8 = vmax.f32 %v949_v5, 0.0  ;;  %v902_v9 = vmul.f32 %v7927_v56, %v735_v7  ;;  %v7957_v36 = vpack.c.bf16 %v1112_v13, %v10400_v0 }
 0x164   : > { %v6622_v11 = vpop.f32.mrf.mxu0 }
 0x165   : > { %v1113_v14 = vmul.f32 %v6240_v6, %v990_v8  ;;  %v950_v16 = vadd.f32 %v7932_v58, %v902_v9  ;;  %v10394_v54 = vrot.slane %v7957_v36, 1  ;;  %v7972_v61 = vshll.u32 %v7957_v36, 16 }
 0x166   : > { %v738_v18 = vpop.f32.mrf.mxu0  ;;  %v7975_v62 = vshrl.u32 %v7957_v36, 16 }
 0x167   : > { %v1153_v19 = vpack.c.bf16 %v1113_v14, %v1112_v13  ;;  %v903_v20 = vmul.f32 %v7927_v56, %v738_v18  ;;  %v991_v25 = vmax.f32 %v950_v16, 0.0 }
 0x168   : > { %v6623_v26 = vpop.f32.mrf.mxu0 }
 0x169   : > { %v1478_v30 = vshrl.u32 %v1153_v19, 16  ;;  %v1481_v31 = vshll.u32 %v1153_v19, 16  ;;  %v1687_v32 = vrot.slane %v1153_v19, 5  ;;  %v951_v33 = vadd.f32 %v7932_v58, %v903_v20 }
 0x16a   : > { %v1114_v37 = vmul.f32 %v6243_v17, %v991_v25  ;;  %v743_v38 = vpop.f32.mrf.mxu0 }
 0x16b   : > { %v1480_v41 = vrot.slane %v1478_v30, 4  ;;  %v1483_v42 = vrot.slane %v1481_v31, 5  ;;  %v992_v43 = vmax.f32 %v951_v33, 0.0  ;;  %v904_v44 = vmul.f32 %v7927_v56, %v743_v38 }
 0x16c   : > { %v7962_v45 = vpack.c.bf16 %v1114_v37, %v1113_v14  ;;  %v6626_v46 = vpop.f32.mrf.mxu0  ;;  %v1803_v52 = vshrl.u32 %v1687_v32, 16  ;;  %v1806_v59 = vshll.u32 %v1687_v32, 16 }
 0x16d   : > { %v1115_v50 = vmul.f32 %v6244_v21, %v992_v43  ;;  %v952_v51 = vadd.f32 %v7932_v58, %v904_v44  ;;  %v1484_v60 = vor.u32 %v1483_v42, %v1480_v41  ;;  %v1778_v41 = vrot.slane %v7975_v62, 3 }
 0x16e   : > { %v10393_v55 = vrot.slane %v7962_v45, 1  ;;  %v746_v57 = vpop.f32.mrf.mxu0  ;;  %v7981_v2 = vshll.u32 %v7962_v45, 16  ;;  %v7984_v3 = vshrl.u32 %v7962_v45, 16  ;;  %v1805_v10 = vrot.slane %v1803_v52, 3 }
 0x16f   : > { %v7977_v63 = vpack.c.bf16 %v1115_v50, %v1114_v37  ;;  %v905_v1 = vmul.f32 %v7927_v56, %v746_v57  ;;  %v993_v5 = vmax.f32 %v952_v51, 0.0  ;;  %v1808_v14 = vrot.slane %v1806_v59, 4 }
 0x170   : > { %v7991_v4 = vsel %vm1384_vm1, %v10394_v54, %v10393_v55  ;;  %v6627_v6 = vpop.f32.mrf.mxu0  ;;  %v1786_v16 = vshrl.u32 %v1484_v60, 16  ;;  %v1789_v17 = vshll.u32 %v1484_v60, 16  ;;  %v1779_v42 = vrot.slane %v7972_v61, 4  ;;  %v7278_v54 = vld [vmem:[#allocation8 + $0xa0] sm:$0xff]  }
 0x171   : > { %10544 = vst [vmem:[#allocation17_spill] sm:$0xff] %v7977_v63  ;;  %v10390_v7 = vshrl.u32 %v7977_v63, 16  ;;  %v10392_v8 = vshll.u32 %v7977_v63, 16  ;;  %v1688_v9 = vrot.slane %v7977_v63, 5  ;;  %v953_v11 = vadd.f32 %v7932_v58, %v905_v1  ;;  %v8016_v1 = vld [vmem:[#allocation5 + $0x38] sm:$0xff]  }
 0x172   : > { %v751_v13 = vpop.f32.mrf.mxu0  ;;  %v1116_v25 = vmul.f32 %v6247_v23, %v993_v5  ;;  %v1809_v44 = vor.u32 %v1808_v14, %v1805_v10  ;;  %v1788_v46 = vrot.slane %v1786_v16, 3  ;;  %v1781_v23 = vrot.slane %v7984_v3, 3 }
 0x173   : > { %v906_v18 = vmul.f32 %v7927_v56, %v751_v13  ;;  %v1689_v19 = vsel %vm1686_vm2, %v1687_v32, %v1688_v9  ;;  %v1488_v20 = vrot.slane %v10390_v7, 4  ;;  %v1491_v21 = vrot.slane %v10392_v8, 5  ;;  %v7270_v7 = vld [vmem:[#allocation8 + $0x30] sm:$0xff]  }
 0x174   : > { %v994_v26 = vmax.f32 %v953_v11, 0.0  ;;  %v6630_v30 = vpop.f32.mrf.mxu0  ;;  %v1811_v31 = vshrl.u32 %v1689_v19, 16  ;;  %v1814_v33 = vshll.u32 %v1689_v19, 16  ;;  %v1791_v59 = vrot.slane %v1789_v17, 4  ;;  %v7269_v17 = vld [vmem:[#allocation8 + $0xb8] sm:$0xff]  }
 0x175   : > { %v954_v37 = vadd.f32 %v7932_v58, %v906_v18  ;;  %v8006_v38 = vor.u32 %v1491_v21, %v1488_v20  ;;  %v8018_v5 = vpack.c.bf16 %v1116_v25, %v1115_v50  ;;  %v1782_v10 = vrot.slane %v7981_v2, 4 }
 0x176   : > { %v8012_v32 = vmul.f32 %v6248_v27, %v994_v26  ;;  %v754_v43 = vpop.f32.mrf.mxu0  ;;  %v1813_v52 = vrot.slane %v1811_v31, 3  ;;  %v1816_v57 = vrot.slane %v1814_v33, 4  ;;  %v1780_v20 = vor.u32 %v1779_v42, %v1778_v41 }
 0x177   : > { %v907_v51 = vmul.f32 %v7927_v56, %v754_v43  ;;  %v1493_v27 = vsel %vm1476_vm3, %v1484_v60, %v8006_v38  ;;  %v995_v11 = vmax.f32 %v954_v37, 0.0  ;;  %v1792_v30 = vor.u32 %v1791_v59, %v1788_v46  ;;  %v7272_v46 = vld [vmem:[#allocation8 + $0xb0] sm:$0xff]  }
 0x178   : > { %v8021_v6 = vpack.c.bf16 %v8012_v32, %v1116_v25  ;;  %v6631_v12 = vpop.f32.mrf.mxu0  ;;  %v8027_v14 = vor.u32 %v1816_v57, %v1813_v52  ;;  %v1794_v16 = vshrl.u32 %v1493_v27, 16  ;;  %v1797_v19 = vshll.u32 %v1493_v27, 16  ;;  %v8049_v57 = vld [vmem:[#allocation5 + $0x40] sm:$0xff]  }
 0x179   : > { %v955_v13 = vadd.f32 %v7932_v58, %v907_v51  ;;  %v8037_v52 = vshrl.u32 %v8018_v5, 16  ;;  %v1118_v41 = vmul.f32 %v6251_v28, %v995_v11 }
 0x17a   : > { %10545 = vst [vmem:[#allocation18_spill] sm:$0xff] %v8021_v6  ;;  %v10389_v18 = vshrl.u32 %v8021_v6, 16  ;;  %v759_v50 = vpop.f32.mrf.mxu0  ;;  %v1818_v60 = vsel %vm1777_vm4, %v1809_v44, %v8027_v14  ;;  %v10391_v31 = vshll.u32 %v8021_v6, 16  ;;  %v1796_v37 = vrot.slane %v1794_v16, 3  ;;  %v8068_v16 = vld [vmem:[#allocation5 + $0x48] sm:$0xff]  }
 0x17b   : > { %v996_v25 = vmax.f32 %v955_v13, 0.0  ;;  %v908_v26 = vmul.f32 %v7927_v56, %v759_v50  ;;  %6717 = vmatmul.mubr.bf16.vlgmr.msra.gmra.mxu0 %v1818_v60  ;;  %v1799_v43 = vrot.slane %v1797_v19, 4  ;;  %v1690_v51 = vrot.slane %v8021_v6, 5 }
 0x17c   : > { %v6634_v33 = vpop.f32.mrf.mxu0  ;;  %v8045_v44 = vor.u32 %v1782_v10, %v1781_v23  ;;  %6801 = vmatpush3.bf16.msra.mxu0 %v7269_v17  ;;  %6720 = vmatprep.mubr.msk.bf16.mxu0 %vm7581_vm0, %v10400_v0  ;;  %v1497_v28 = vrot.slane %v10389_v18, 4  ;;  %v7268_v10 = vld [vmem:[#allocation8 + $0x38] sm:$0xff]  }
 0x17d   : > { %v8043_v42 = vmul.f32 %v6252_v29, %v996_v25  ;;  %v8052_v59 = vadd.f32 %v7932_v58, %v908_v26  ;;  %v8054_v27 = vor.u32 %v1799_v43, %v1796_v37  ;;  %v1691_v15 = vsel %vm1686_vm2, %v1688_v9, %v1690_v51  ;;  %6802 = vmatprep.subr.bf16.mxu0 %v10400_v0  ;;  %v7275_v37 = vld [vmem:[#allocation8 + $0xa8] sm:$0xff]  }
 0x17e   : > { %v762_v12 = vpop.f32.mrf.mxu0  ;;  %v1833_v11 = vshrl.u32 %v1691_v15, 16  ;;  %v1836_v13 = vshll.u32 %v1691_v15, 16  ;;  %v1500_v9 = vrot.slane %v10391_v31, 5  ;;  %v8077_v26 = vshll.u32 %v8018_v5, 16 }
 0x17f   : > { %v8065_v29 = vpack.c.bf16 %v8043_v42, %v1118_v41  ;;  %v909_v23 = vmul.f32 %v7927_v56, %v762_v12  ;;  %v1801_v17 = vsel %vm1777_vm4, %v1792_v30, %v8054_v27  ;;  %v1784_v33 = vsel %vm1777_vm4, %v1780_v20, %v8045_v44 }
 0x180   : > { %v6635_v50 = vpop.f32.mrf.mxu0  ;;  %2481 = vmatprep.mubr.bf16.mxu1 %v1801_v17  ;;  %6803 = vmatpush3.bf16.msra.mxu0 %v7272_v46  ;;  %v1835_v12 = vrot.slane %v1833_v11, 3  ;;  %v1838_v15 = vrot.slane %v1836_v13, 4  ;;  %v997_v20 = vmax.f32 %v8052_v59, 0.0  ;;  %v1819_v46 = vrot.slane %v8037_v52, 3 }
 0x181   : > { %10546 = vst [vmem:[#allocation19_spill] sm:$0xff] %v8065_v29  ;;  %v957_v60 = vadd.f32 %v7932_v58, %v909_v23  ;;  %2482 = vmatmul.mubr.bf16.vlgmr.msra.gmra.mxu1 %v1784_v33  ;;  %v8083_v50 = vor.u32 %v1500_v9, %v1497_v28  ;;  %6804 = vmatprep.subr.bf16.mxu0 %v10400_v0  ;;  %v10395_v23 = vshrl.u32 %v8065_v29, 16  ;;  %v10396_v17 = vshll.u32 %v8065_v29, 16  ;;  %v8091_v33 = vld [vmem:[#allocation5 + $0x50] sm:$0xff]  }
 0x182   : > { %v767_v43 = vpop.f32.mrf.mxu0  ;;  %3517 = vmatpush1.bf16.msra.mxu1 %v7268_v10  ;;  %v8093_v13 = vor.u32 %v1838_v15, %v1835_v12  ;;  %v1692_v31 = vrot.slane %v8065_v29, 5  ;;  %v1820_v55 = vrot.slane %v8077_v26, 4 }
 0x183   : > { %v998_v11 = vmax.f32 %v957_v60, 0.0  ;;  %v1502_v9 = vsel %vm1476_vm3, %v8006_v38, %v8083_v50  ;;  %3518 = vmatprep.subr.bf16.mxu1 %v10402_v22  ;;  %v910_v59 = vmul.f32 %v7927_v56, %v767_v43  ;;  %v8103_v60 = vpack.c.bf16 %v1118_v41, %v8012_v32  ;;  %v7271_v41 = vld [vmem:[#allocation8 + $0x28] sm:$0xff]  }
 0x184   : > { %v6638_v28 = vpop.f32.mrf.mxu0  ;;  %v1824_v10 = vshrl.u32 %v1502_v9, 16  ;;  %v1827_v8 = vshll.u32 %v1502_v9, 16  ;;  %6805 = vmatpush3.bf16.msra.mxu0 %v7275_v37  ;;  %v1840_v12 = vsel %vm1777_vm4, %v8027_v14, %v8093_v13  ;;  %v1506_v32 = vrot.slane %v10395_v23, 4 }
 0x185   : > { %6806 = vmatprep.subr.bf16.mxu0 %v10400_v0  ;;  %6721 = vmatmul.mubr.bf16.gmra.mxu0 %v1840_v12  ;;  %v8117_v14 = vmul.f32 %v6256_v40, %v998_v11  ;;  %v8129_v12 = vld [vmem:[#allocation5 + $0x58] sm:$0xff]   ;;  %v1120_v40 = vmul.f32 %v6255_v39, %v997_v20  ;;  %v8135_v11 = vor.u32 %v1820_v55, %v1819_v46  ;;  %v8144_v24 = vshll.u32 %v8103_v60, 16  ;;  %v7273_v55 = vld [vmem:[#allocation8 + $0x20] sm:$0xff]  }
 0x186   : > { %v770_v38 = vpop.f32.mrf.mxu0  ;;  %v1826_v9 = vrot.slane %v1824_v10, 3  ;;  %3519 = vmatpush1.bf16.msra.mxu1 %v7270_v7  ;;  %v1829_v15 = vrot.slane %v1827_v8, 4  ;;  %6724 = vmatprep.mubr.msk.bf16.mxu0 %vm7581_vm0, %v10400_v0  ;;  %v1693_v7 = vsel %vm1686_vm2, %v1690_v51, %v1692_v31  ;;  %v1509_v10 = vrot.slane %v10396_v17, 5 }
 0x187   : > { %v911_v43 = vmul.f32 %v7927_v56, %v770_v38  ;;  %3520 = vmatprep.subr.bf16.mxu1 %v10402_v22  ;;  %v958_v8 = vadd.f32 %v7932_v58, %v910_v59  ;;  %v7281_v38 = vld [vmem:[#allocation8 + $0x98] sm:$0xff]   ;;  %v8138_v51 = vshrl.u32 %v8103_v60, 16  ;;  %v1855_v37 = vshrl.u32 %v1693_v7, 16 }
 0x188   : > { %v6639_v18 = vpop.f32.mrf.mxu0  ;;  %6807 = vmatpush3.bf16.msra.mxu0 %v7278_v54  ;;  %v8140_v23 = vor.u32 %v1829_v15, %v1826_v9  ;;  %v1858_v28 = vshll.u32 %v1693_v7, 16  ;;  %v8146_v20 = vor.u32 %v1509_v10, %v1506_v32  ;;  %v8150_v46 = vpack.c.bf16 %v8117_v14, %v1120_v40 }
 0x189   : > { %v959_v18 = vadd.f32 %v7932_v58, %v911_v43  ;;  %10547 = vst [vmem:[#allocation20_spill] sm:$0xff] %v8138_v51  ;;  %6808 = vmatprep.subr.bf16.mxu0 %v10400_v0  ;;  %v1857_v15 = vrot.slane %v1855_v37, 3  ;;  %v8157_v7 = vpack.c.bf16 %v1120_v40, %v8043_v42  ;;  %v999_v32 = vmax.f32 %v958_v8, 0.0 }
 0x18a   : > { %v775_v17 = vpop.f32.mrf.mxu0  ;;  %3521 = vmatpush1.bf16.msra.mxu1 %v7271_v41  ;;  %10548 = vst [vmem:[#allocation21_spill] sm:$0xff] %v8150_v46  ;;  %v1831_v59 = vsel %vm1777_vm4, %v8054_v27, %v8140_v23  ;;  %v1860_v43 = vrot.slane %v1858_v28, 4  ;;  %v1822_v41 = vsel %vm1777_vm4, %v8045_v44, %v8135_v11  ;;  %v1511_v42 = vsel %vm1476_vm3, %v8083_v50, %v8146_v20  ;;  %v7284_v44 = vld [vmem:[#allocation8 + $0x90] sm:$0xff]  }
 0x18b   : > { %v1000_v39 = vmax.f32 %v959_v18, 0.0  ;;  %3522 = vmatprep.subr.bf16.mxu1 %v10402_v22  ;;  %2489 = vmatprep.mubr.bf16.mxu1 %v1831_v59  ;;  %v912_v10 = vmul.f32 %v7927_v56, %v775_v17  ;;  %v1841_v40 = vrot.slane %v8138_v51, 3  ;;  %v1846_v8 = vshrl.u32 %v1511_v42, 16 }
 0x18c   : > { %v6642_v9 = vpop.f32.mrf.mxu0  ;;  %6809 = vmatpush3.bf16.msra.mxu0 %v7281_v38  ;;  %2490 = vmatmul.mubr.bf16.gmra.mxu1 %v1822_v41  ;;  %v8167_v28 = vor.u32 %v1860_v43, %v1857_v15  ;;  %v1849_v18 = vshll.u32 %v1511_v42, 16  ;;  %v7274_v38 = vld [vmem:[#allocation8 + $0x18] sm:$0xff]   ;;  %v10398_v59 = vshll.u32 %v8150_v46, 16  ;;  %v1694_v43 = vrot.slane %v8150_v46, 5 }
 0x18d   : > { %v8165_v27 = vmul.f32 %v6260_v48, %v1000_v39  ;;  %6810 = vmatprep.subr.bf16.mxu0 %v10400_v0  ;;  %v1842_v48 = vrot.slane %v8144_v24, 4  ;;  %v10397_v39 = vshrl.u32 %v8150_v46, 16  ;;  %v1122_v9 = vmul.f32 %v6259_v47, %v999_v32 }
 0x18e   : > { %v778_v37 = vpop.f32.mrf.mxu0  ;;  %3523 = vmatpush1.bf16.msra.mxu1 %v7273_v55  ;;  %v1862_v50 = vsel %vm1777_vm4, %v8093_v13, %v8167_v28  ;;  %v960_v41 = vadd.f32 %v7932_v58, %v912_v10  ;;  %v8188_v42 = vshrl.u32 %v8157_v7, 16  ;;  %v1851_v54 = vrot.slane %v1849_v18, 4  ;;  %v8201_v18 = vld [vmem:[#allocation5 + $0x60] sm:$0xff]  }
 0x18f   : > { %v913_v17 = vmul.f32 %v7927_v56, %v778_v37  ;;  %3524 = vmatprep.subr.bf16.mxu1 %v10402_v22  ;;  %6725 = vmatmul.mubr.bf16.gmra.mxu0 %v1862_v50  ;;  %v1848_v37 = vrot.slane %v1846_v8, 3  ;;  %v1695_v13 = vsel %vm1686_vm2, %v1692_v31, %v1694_v43  ;;  %v8197_v47 = vpack.c.bf16 %v8165_v27, %v1122_v9  ;;  %v7276_v8 = vld [vmem:[#allocation8 + $0x10] sm:$0xff]  }
 0x190   : > { %v6643_v15 = vpop.f32.mrf.mxu0  ;;  %10549 = vst [vmem:[#allocation22_spill] sm:$0xff] %v8188_v42  ;;  %6728 = vmatprep.mubr.msk.bf16.mxu0 %vm7581_vm0, %v10400_v0  ;;  %6811 = vmatpush3.bf16.msra.mxu0 %v7284_v44  ;;  %v8199_v32 = vor.u32 %v1842_v48, %v1841_v40  ;;  %v1877_v10 = vshrl.u32 %v1695_v13, 16  ;;  %v1515_v44 = vrot.slane %v10397_v39, 4  ;;  %v1518_v34 = vrot.slane %v10398_v59, 5  ;;  %v8211_v40 = vld [vmem:[#allocation5 + $0x68] sm:$0xff]  }
 0x191   : > { %v961_v55 = vadd.f32 %v7932_v58, %v913_v17  ;;  %10550 = vst [vmem:[#allocation23_spill] sm:$0xff] %v8197_v47  ;;  %v1880_v17 = vshll.u32 %v1695_v13, 16  ;;  %6812 = vmatprep.subr.bf16.mxu0 %v10400_v0  ;;  %v8204_v15 = vor.u32 %v1851_v54, %v1848_v37  ;;  %v1001_v48 = vmax.f32 %v960_v41, 0.0 }
 0x192   : > { %v783_v25 = vpop.f32.mrf.mxu0  ;;  %3525 = vmatpush1.bf16.msra.mxu1 %v7274_v38  ;;  %v1879_v13 = vrot.slane %v1877_v10, 3  ;;  %v1844_v41 = vsel %vm1777_vm4, %v8135_v11, %v8199_v32  ;;  %v10555_v46 = vshrl.u32 %v8197_v47, 16 }
 0x193   : > { %v1002_v50 = vmax.f32 %v961_v55, 0.0  ;;  %3526 = vmatprep.subr.bf16.mxu1 %v10402_v22  ;;  %v914_v38 = vmul.f32 %v7927_v56, %v783_v25  ;;  %v1882_v30 = vrot.slane %v1880_v17, 4  ;;  %v8215_v55 = vshll.u32 %v8157_v7, 16  ;;  %v7277_v17 = vld [vmem:[#allocation8 + $0x8] sm:$0xff]  }
 0x194   : > { %v6646_v31 = vpop.f32.mrf.mxu0  ;;  %v1853_v54 = vsel %vm1777_vm4, %v8140_v23, %v8204_v15  ;;  %v8230_v23 = vpack.c.bf16 %v1122_v9, %v8117_v14  ;;  %v8242_v11 = vmul.f32 %v6263_v49, %v1001_v48 }
 0x195   : > { %2497 = vmatprep.mubr.bf16.mxu1 %v1853_v54  ;;  %v8225_v25 = vor.u32 %v1882_v30, %v1879_v13  ;;  %v8234_v31 = vmul.f32 %v6264_v53, %v1002_v50  ;;  %v8236_v54 = vor.u32 %v1518_v34, %v1515_v44  ;;  %v10399_v30 = vrot.slane %v8197_v47, 5  ;;  %v7287_v13 = vld [vmem:[#allocation8 + $0x88] sm:$0xff]  }
 0x196   : > { %v786_v37 = vpop.f32.mrf.mxu0  ;;  %3527 = vmatpush1.bf16.msra.mxu1 %v7276_v8  ;;  %v962_v8 = vadd.f32 %v7932_v58, %v914_v38  ;;  %v1863_v53 = vrot.slane %v8188_v42, 3  ;;  %v1864_v34 = vrot.slane %v8215_v55, 4  ;;  %v7279_v38 = vld [vmem:[#allocation8] sm:$0xff]   ;;  %6813 = vmatpush3.bf16.msra.mxu0 %v7287_v13  ;;  %v7280_v13 = vld [vmem:[#allocation8 + $0x78] sm:$0xff]  }
 0x197   : > { %v915_v10 = vmul.f32 %v7927_v56, %v786_v37  ;;  %2498 = vmatmul.mubr.bf16.gmra.mxu1 %v1844_v41  ;;  %3528 = vmatprep.subr.bf16.mxu1 %v10402_v22  ;;  %v1884_v14 = vsel %vm1777_vm4, %v8167_v28, %v8225_v25  ;;  %v1697_v49 = vsel %vm1686_vm2, %v1694_v43, %v10399_v30  ;;  %v8272_v30 = vld [vmem:[#allocation5 + $0x70] sm:$0xff]  }
 0x198   : > { %v6647_v39 = vpop.f32.mrf.mxu0  ;;  %6729 = vmatmul.mubr.bf16.gmra.mxu0 %v1884_v14  ;;  %v8266_v37 = vpack.c.bf16 %v8234_v31, %v8242_v11  ;;  %v1899_v43 = vshrl.u32 %v1697_v49, 16  ;;  %v1902_v41 = vshll.u32 %v1697_v49, 16  ;;  %v8270_v14 = vshrl.u32 %v8230_v23, 16 }
 0x199   : > { %v963_v9 = vadd.f32 %v7932_v58, %v915_v10  ;;  %v1520_v39 = vsel %vm1476_vm3, %v8146_v20, %v8236_v54  ;;  %6732 = vmatprep.mubr.msk.bf16.mxu0 %vm7581_vm0, %v10400_v0  ;;  %v8262_v20 = vshll.u32 %v8230_v23, 16  ;;  %v8274_v21 = vor.u32 %v1864_v34, %v1863_v53 }
 0x19a   : > { %v791_v35 = vpop.f32.mrf.mxu0  ;;  %v1868_v44 = vshrl.u32 %v1520_v39, 16  ;;  %v1871_v48 = vshll.u32 %v1520_v39, 16  ;;  %3529 = vmatpush1.bf16.msra.mxu1 %v7277_v17  ;;  %10552 = vst [vmem:[#allocation25_spill] sm:$0xff] %v8266_v37  ;;  %10553 = vst [vmem:[#allocation26_spill] sm:$0xff] %v8270_v14  ;;  %v1003_v39 = vmax.f32 %v962_v8, 0.0  ;;  %v1901_v50 = vrot.slane %v1899_v43, 3 }
 0x19b   : > { %10551 = vst [vmem:[#allocation24_spill] sm:$0xff] %v8262_v20  ;;  %3530 = vmatprep.subr.bf16.mxu1 %v10402_v22  ;;  %v1004_v59 = vmax.f32 %v963_v9, 0.0  ;;  %v916_v28 = vmul.f32 %v7927_v56, %v791_v35  ;;  %v10554_v49 = vmov 0.0   ;;  %v1524_v8 = vrot.slane %v10555_v46, 4 }
 0x19c   : > { %v6650_v10 = vpop.f32.mrf.mxu0  ;;  %v1870_v17 = vrot.slane %v1868_v44, 3  ;;  %v1873_v19 = vrot.slane %v1871_v48, 4  ;;  %6814 = vmatprep.subr.bf16.mxu0 %v10554_v49  ;;  %v10556_v9 = vshll.u32 %v8197_v47, 16  ;;  %v10414_v53 = vshrl.u32 %v8266_v37, 16 }
 0x19d   : > { %v1904_v10 = vrot.slane %v1902_v41, 4  ;;  %v10557_v41 = vmov 0   ;;  %v10559_v46 = vunpack.c.h.bf16 %v8016_v1  ;;  %v10561_v43 = vrot.slane %v8197_v47, 5 }
 0x19e   : > { %v794_v0 = vpop.f32.mrf.mxu0  ;;  %v1527_v44 = vrot.slane %v10556_v9, 5  ;;  %3531 = vmatpush1.bf16.msra.mxu1 %v7279_v38  ;;  %v8284_v34 = vor.u32 %v1873_v19, %v1870_v17  ;;  %v1866_v17 = vsel %vm1777_vm4, %v8199_v32, %v8274_v21  ;;  %v1886_v32 = vrot.slane %v8262_v20, 4 }
 0x19f   : > { %v917_v22 = vmul.f32 %v7927_v56, %v794_v0  ;;  %3532 = vmatprep.subr.bf16.mxu1 %v10557_v41  ;;  %v10558_v0 = vunpack.c.l.bf16 %v8016_v1  ;;  %v8293_v29 = vmul.f32 %v10559_v46, %v1004_v59  ;;  %v8295_v38 = vor.u32 %v1904_v10, %v1901_v50  ;;  %v8307_v1 = vld [vmem:[#allocation5 + $0x78] sm:$0xff]  }
 0x1a0   : > { %v6651_v35 = vpop.f32.mrf.mxu0  ;;  %v8297_v9 = vor.u32 %v1527_v44, %v1524_v8  ;;  %v1875_v19 = vsel %vm1777_vm4, %v8204_v15, %v8284_v34  ;;  %v1885_v50 = vrot.slane %v8270_v14, 3  ;;  %v10566_v47 = vunpack.c.l.bf16 %v8049_v57 }
 0x1a1   : > { %v1126_v63 = vmul.f32 %v10558_v0, %v1003_v39  ;;  %v964_v35 = vadd.f32 %v7932_v58, %v916_v28  ;;  %v965_v39 = vadd.f32 %v7932_v58, %v917_v22  ;;  %2505 = vmatprep.mubr.bf16.mxu1 %v1875_v19  ;;  %v1906_v59 = vsel %vm1777_vm4, %v8225_v25, %v8295_v38  ;;  %v7282_v28 = vld [vmem:[#allocation8 + $0x70] sm:$0xff]   ;;  %v7283_v19 = vld [vmem:[#allocation8 + $0x68] sm:$0xff]  }
 0x1a2   : > { %v799_v0 = vpop.f32.mrf.mxu0  ;;  %v1529_v15 = vsel %vm1476_vm3, %v8236_v54, %v8297_v9  ;;  %3533 = vmatpush2.bf16.msra.mxu1 %v7280_v13  ;;  %6733 = vmatmul.mubr.bf16.gmra.mxu0 %v1906_v59  ;;  %v8321_v25 = vpack.c.bf16 %v8242_v11, %v8165_v27  ;;  %v1698_v13 = vrot.slane %v8266_v37, 5  ;;  %v8332_v11 = vor.u32 %v1886_v32, %v1885_v50 }
 0x1a3   : > { %2506 = vmatmul.mubr.bf16.gmra.mxu1 %v1866_v17  ;;  %v1890_v10 = vshrl.u32 %v1529_v15, 16  ;;  %v1893_v8 = vshll.u32 %v1529_v15, 16  ;;  %v8324_v54 = vpack.c.bf16 %v8293_v29, %v1126_v63  ;;  %6736 = vmatprep.mubr.msk.bf16.mxu0 %vm7581_vm0, %v10554_v49  ;;  %v1005_v17 = vmax.f32 %v964_v35, 0.0 }
 0x1a4   : > { %v6654_v44 = vpop.f32.mrf.mxu0  ;;  %3534 = vmatprep.subr.bf16.mxu1 %v10557_v41  ;;  %v1006_v59 = vmax.f32 %v965_v39, 0.0  ;;  %v1699_v48 = vsel %vm1686_vm2, %v10561_v43, %v1698_v13  ;;  %v1533_v22 = vrot.slane %v10414_v53, 4  ;;  %v10562_v39 = vshll.u32 %v8266_v37, 16 }
 0x1a5   : > { %10560 = vst [vmem:[#allocation27_spill] sm:$0xff] %v8324_v54  ;;  %v1892_v15 = vrot.slane %v1890_v10, 3  ;;  %v918_v44 = vmul.f32 %v7927_v56, %v799_v0  ;;  %v1895_v27 = vrot.slane %v1893_v8, 4  ;;  %v1921_v6 = vshrl.u32 %v1699_v48, 16 }
 0x1a6   : > { %v802_v46 = vpop.f32.mrf.mxu0  ;;  %3535 = vmatpush2.bf16.msra.mxu1 %v7282_v28  ;;  %v1924_v14 = vshll.u32 %v1699_v48, 16  ;;  %v1536_v0 = vrot.slane %v10562_v39, 5  ;;  %v8344_v50 = vshll.u32 %v8321_v25, 16  ;;  %v8347_v43 = vshrl.u32 %v8321_v25, 16 }
 0x1a7   : > { %v919_v35 = vmul.f32 %v7927_v56, %v802_v46  ;;  %3536 = vmatprep.subr.bf16.mxu1 %v10557_v41  ;;  %v8349_v32 = vor.u32 %v1895_v27, %v1892_v15  ;;  %v10565_v48 = vunpack.c.h.bf16 %v8049_v57  ;;  %v966_v46 = vadd.f32 %v7932_v58, %v918_v44 }
 0x1a8   : > { %v6655_v10 = vpop.f32.mrf.mxu0  ;;  %10563 = vst [vmem:[#allocation28_spill] sm:$0xff] %v8344_v50  ;;  %10564 = vst [vmem:[#allocation29_spill] sm:$0xff] %v8347_v43  ;;  %v1923_v39 = vrot.slane %v1921_v6, 3  ;;  %v8358_v37 = vpack.c.bf16 %v1126_v63, %v8234_v31  ;;  %v1128_v42 = vmul.f32 %v10566_v47, %v1005_v17  ;;  %v8365_v27 = vor.u32 %v1536_v0, %v1533_v22 }
 0x1a9   : > { %v8354_v8 = vmul.f32 %v10565_v48, %v1006_v59  ;;  %v1926_v10 = vrot.slane %v1924_v14, 4  ;;  %v1897_v15 = vsel %vm1777_vm4, %v8284_v34, %v8349_v32  ;;  %v7285_v59 = vld [vmem:[#allocation8 + $0x60] sm:$0xff]   ;;  %v1888_v6 = vsel %vm1777_vm4, %v8274_v21, %v8332_v11 }
 0x1aa   : > { %v807_v53 = vpop.f32.mrf.mxu0  ;;  %3537 = vmatpush2.bf16.msra.mxu1 %v7283_v19  ;;  %2513 = vmatprep.mubr.bf16.mxu1 %v1897_v15  ;;  %v967_v57 = vadd.f32 %v7932_v58, %v919_v35  ;;  %v1538_v31 = vsel %vm1476_vm3, %v8297_v9, %v8365_v27  ;;  %v1907_v14 = vrot.slane %v8347_v43, 3  ;;  %v1908_v34 = vrot.slane %v8344_v50, 4  ;;  %v7286_v15 = vld [vmem:[#allocation8 + $0x58] sm:$0xff]  }
 0x1ab   : > { %v8371_v63 = vor.u32 %v1926_v10, %v1923_v39  ;;  %3538 = vmatprep.subr.bf16.mxu1 %v10557_v41  ;;  %2514 = vmatmul.mubr.bf16.gmra.mxu1 %v1888_v6  ;;  %v1700_v22 = vrot.slane %v8324_v54, 5  ;;  %v8382_v21 = vpack.c.bf16 %v8354_v8, %v1128_v42  ;;  %v1007_v19 = vmax.f32 %v966_v46, 0.0 }
 0x1ac   : > { %v6658_v47 = vpop.f32.mrf.mxu0  ;;  %v1912_v44 = vshrl.u32 %v1538_v31, 16  ;;  %v8388_v0 = vshll.u32 %v8358_v37, 16  ;;  %v1915_v9 = vshll.u32 %v1538_v31, 16  ;;  %v920_v39 = vmul.f32 %v7927_v56, %v807_v53  ;;  %v7290_v53 = vld [vmem:[#allocation8 + $0x80] sm:$0xff]  }
 0x1ad   : > { %10567 = vst [vmem:[#allocation30_spill] sm:$0xff] %v8382_v21  ;;  %v1928_v17 = vsel %vm1777_vm4, %v8295_v38, %v8371_v63  ;;  %v1701_v10 = vsel %vm1686_vm2, %v1698_v13, %v1700_v22  ;;  %v8393_v6 = vshrl.u32 %v8358_v37, 16  ;;  %v8397_v38 = vpack.c.bf16 %v1128_v42, %v8293_v29  ;;  %6815 = vmatpush3.bf16.msra.mxu0 %v7290_v53 }
 0x1ae   : > { %v810_v35 = vpop.f32.mrf.mxu0  ;;  %10568 = vst [vmem:[#allocation31_spill] sm:$0xff] %v8388_v0  ;;  %6737 = vmatmul.mubr.bf16.gmra.mxu0 %v1928_v17  ;;  %3539 = vmatpush2.bf16.msra.mxu1 %v7285_v59  ;;  %v1008_v47 = vmax.f32 %v967_v57, 0.0  ;;  %v1914_v31 = vrot.slane %v1912_v44, 3  ;;  %v1917_v13 = vrot.slane %v1915_v9, 4  ;;  %v8402_v59 = vor.u32 %v1908_v34, %v1907_v14 }
 0x1af   : > { %10569 = vst [vmem:[#allocation32_spill] sm:$0xff] %v8393_v6  ;;  %10570 = vst [vmem:[#allocation33_spill] sm:$0xff] %v8397_v38  ;;  %6740 = vmatprep.mubr.msk.bf16.mxu0 %vm7581_vm0, %v10554_v49  ;;  %3540 = vmatprep.subr.bf16.mxu1 %v10557_v41  ;;  %v1943_v28 = vshrl.u32 %v1701_v10, 16  ;;  %v10428_v48 = vrot.slane %v8382_v21, 5  ;;  %v10571_v46 = vunpack.c.l.bf16 %v8068_v16  ;;  %v1946_v29 = vshll.u32 %v1701_v10, 16 }
 0x1b0   : > { %v6659_v17 = vpop.f32.mrf.mxu0  ;;  %v10572_v42 = vshrl.u32 %v8324_v54, 16  ;;  %v968_v20 = vadd.f32 %v7932_v58, %v920_v39  ;;  %v921_v14 = vmul.f32 %v7927_v56, %v810_v35  ;;  %6900 = vmatprep.subr.bf16.mxu0 %v10554_v49  ;;  %v8415_v34 = vshll.u32 %v8397_v38, 16 }
 0x1b1   : > { %v1130_v43 = vmul.f32 %v10571_v46, %v1007_v19  ;;  %v8409_v17 = vor.u32 %v1917_v13, %v1914_v31  ;;  %v1945_v44 = vrot.slane %v1943_v28, 3  ;;  %v10427_v19 = vshrl.u32 %v8382_v21, 16  ;;  %v7288_v31 = vld [vmem:[#allocation8 + $0x50] sm:$0xff]  }
 0x1b2   : > { %v1542_v57 = vrot.slane %v10572_v42, 4  ;;  %v815_v50 = vpop.f32.mrf.mxu0  ;;  %3541 = vmatpush2.bf16.msra.mxu1 %v7286_v15  ;;  %10573 = vst [vmem:[#allocation34_spill] sm:$0xff] %v8415_v34  ;;  %v1948_v9 = vrot.slane %v1946_v29, 4  ;;  %v10574_v10 = vshll.u32 %v8324_v54, 16  ;;  %v10575_v28 = vunpack.c.h.bf16 %v8068_v16 }
 0x1b3   : > { %3542 = vmatprep.subr.bf16.mxu1 %v10557_v41  ;;  %v1919_v35 = vsel %vm1777_vm4, %v8349_v32, %v8409_v17  ;;  %v1910_v15 = vsel %vm1777_vm4, %v8332_v11, %v8402_v59  ;;  %v969_v13 = vadd.f32 %v7932_v58, %v921_v14  ;;  %v1703_v16 = vsel %vm1686_vm2, %v1700_v22, %v10428_v48 }
 0x1b4   : > { %v1545_v46 = vrot.slane %v10574_v10, 5  ;;  %v6662_v53 = vpop.f32.mrf.mxu0  ;;  %v8423_v39 = vmul.f32 %v10575_v28, %v1008_v47  ;;  %2521 = vmatprep.mubr.bf16.mxu1 %v1919_v35  ;;  %v1949_v29 = vor.u32 %v1948_v9, %v1945_v44  ;;  %v922_v10 = vmul.f32 %v7927_v56, %v815_v50  ;;  %v7289_v9 = vld [vmem:[#allocation8 + $0x48] sm:$0xff]  }
 0x1b5   : > { %v8439_v53 = vshrl.u32 %v8397_v38, 16  ;;  %v10435_v32 = vshll.u32 %v8382_v21, 16  ;;  %v8443_v11 = vpack.c.bf16 %v1130_v43, %v8354_v8  ;;  %2522 = vmatmul.mubr.bf16.gmra.mxu1 %v1910_v15  ;;  %v1009_v14 = vmax.f32 %v968_v20, 0.0 }
 0x1b6   : > { %v8432_v42 = vor.u32 %v1545_v46, %v1542_v57  ;;  %v818_v47 = vpop.f32.mrf.mxu0  ;;  %v1950_v57 = vsel %vm1777_vm4, %v8371_v63, %v1949_v29  ;;  %v1929_v50 = vrot.slane %v8393_v6, 3  ;;  %v1930_v22 = vrot.slane %v8388_v0, 4  ;;  %3543 = vmatpush2.bf16.msra.mxu1 %v7288_v31 }
 0x1b7   : > { %10576 = vst [vmem:[#allocation35_spill] sm:$0xff] %v8439_v53  ;;  %10577 = vst [vmem:[#allocation36_spill] sm:$0xff] %v8443_v11  ;;  %6741 = vmatmul.mubr.bf16.gmra.mxu0 %v1950_v57  ;;  %v1010_v46 = vmax.f32 %v969_v13, 0.0  ;;  %v1965_v35 = vshrl.u32 %v1703_v16, 16  ;;  %3544 = vmatprep.subr.bf16.mxu1 %v10557_v41  ;;  %v8454_v20 = vpack.c.bf16 %v8423_v39, %v1130_v43  ;;  %v1551_v31 = vrot.slane %v10427_v19, 4 }
 0x1b8   : > { %v1547_v56 = vsel %vm1476_vm3, %v8365_v27, %v8432_v42  ;;  %v6663_v44 = vpop.f32.mrf.mxu0  ;;  %v970_v63 = vadd.f32 %v7932_v58, %v922_v10  ;;  %6744 = vmatprep.mubr.msk.bf16.mxu0 %vm7581_vm0, %v10554_v49  ;;  %v1968_v27 = vshll.u32 %v1703_v16, 16  ;;  %v8468_v58 = vshll.u32 %v8443_v11, 16 }
 0x1b9   : > { %v1934_v8 = vshrl.u32 %v1547_v56, 16  ;;  %v1937_v28 = vshll.u32 %v1547_v56, 16  ;;  %10578 = vst [vmem:[#allocation37_spill] sm:$0xff] %v8454_v20  ;;  %v1967_v44 = vrot.slane %v1965_v35, 3  ;;  %v8464_v56 = vld [vmem:[%s10374_s3] ss:$0 sm:$0xff]  ;;  %v8470_v10 = vor.u32 %v1930_v22, %v1929_v50 }
 0x1ba   : > { %v823_v15 = vpop.f32.mrf.mxu0  ;;  %v923_v43 = vmul.f32 %v8464_v56, %v818_v47  ;;  %10579 = vst [vmem:[#allocation38_spill] sm:$0xff] %v8468_v58  ;;  %v1970_v16 = vrot.slane %v1968_v27, 4  ;;  %v1554_v19 = vrot.slane %v10435_v32, 5  ;;  %3545 = vmatpush2.bf16.msra.mxu1 %v7289_v9  ;;  %v10581_v35 = vunpack.c.l.bf16 %v8091_v33 }
 0x1bb   : > { %v1936_v57 = vrot.slane %v1934_v8, 3  ;;  %v1939_v13 = vrot.slane %v1937_v28, 4  ;;  %v7291_v8 = vld [vmem:[#allocation8 + $0x40] sm:$0xff]   ;;  %v8475_v28 = vshrl.u32 %v8443_v11, 16  ;;  %v10582_v47 = vunpack.c.h.bf16 %v8091_v33  ;;  %3546 = vmatprep.subr.bf16.mxu1 %v10557_v41  ;;  %v8493_v33 = vld [vmem:[%s10375_s4] ss:$0 sm:$0xff] }
 0x1bc   : > { %v6666_v48 = vpop.f32.mrf.mxu0  ;;  %v1132_v54 = vmul.f32 %v10581_v35, %v1009_v14  ;;  %v1704_v50 = vrot.slane %v8454_v20, 5  ;;  %v1011_v22 = vmax.f32 %v970_v63, 0.0  ;;  %v8483_v27 = vor.u32 %v1970_v16, %v1967_v44 }
 0x1bd   : > { %10580 = vst [vmem:[#allocation39_spill] sm:$0xff] %v8475_v28  ;;  %v1133_v6 = vmul.f32 %v10582_v47, %v1010_v46  ;;  %v1940_v0 = vor.u32 %v1939_v13, %v1936_v57  ;;  %v8485_v48 = vor.u32 %v1554_v19, %v1551_v31  ;;  %v971_v14 = vadd.f32 %v8493_v33, %v923_v43 }
 0x1be   : > { %v826_v9 = vpop.f32.mrf.mxu0  ;;  %v924_v46 = vmul.f32 %v8464_v56, %v823_v15  ;;  %v1932_v19 = vsel %vm1777_vm4, %v8402_v59, %v8470_v10  ;;  %v1972_v63 = vsel %vm1777_vm4, %v1949_v29, %v8483_v27  ;;  %v1951_v31 = vrot.slane %v8439_v53, 3  ;;  %3547 = vmatpush2.bf16.msra.mxu1 %v7291_v8 }
 0x1bf   : > { %v1941_v11 = vsel %vm1777_vm4, %v8409_v17, %v1940_v0  ;;  %v1952_v17 = vrot.slane %v8415_v34, 4  ;;  %v8506_v44 = vpack.c.bf16 %v1132_v54, %v8423_v39  ;;  %v8508_v15 = vpack.c.bf16 %v1133_v6, %v1132_v54  ;;  %6745 = vmatmul.mubr.bf16.gmra.mxu0 %v1972_v63  ;;  %4611 = vmatprep.subr.bf16.mxu1 %v10557_v41 }
 0x1c0   : > { %2529 = vmatprep.mubr.bf16.mxu1 %v1941_v11  ;;  %v6667_v57 = vpop.f32.mrf.mxu0  ;;  %v1556_v59 = vsel %vm1476_vm3, %v8432_v42, %v8485_v48  ;;  %v10585_v29 = vunpack.c.l.bf16 %v8129_v12  ;;  %6748 = vmatprep.mubr.msk.bf16.mxu0 %vm7581_vm0, %v10554_v49  ;;  %v10586_v8 = vrot.slane %v8382_v21, 5  ;;  %v1012_v35 = vmax.f32 %v971_v14, 0.0 }
 0x1c1   : > { %10583 = vst [vmem:[#allocation40_spill] sm:$0xff] %v8506_v44  ;;  %10584 = vst [vmem:[#allocation41_spill] sm:$0xff] %v8508_v15  ;;  %2530 = vmatmul.mubr.bf16.gmra.mxu1 %v1932_v19  ;;  %v1956_v43 = vshrl.u32 %v1556_v59, 16  ;;  %v1959_v16 = vshll.u32 %v1556_v59, 16  ;;  %v972_v47 = vadd.f32 %v8493_v33, %v924_v46  ;;  %v925_v59 = vmul.f32 %v8464_v56, %v826_v9 }
 0x1c2   : > { %v1134_v11 = vmul.f32 %v10585_v29, %v1011_v22  ;;  %v1705_v39 = vsel %vm1686_vm2, %v10586_v8, %v1704_v50  ;;  %v831_v54 = vpop.f32.mrf.mxu0  ;;  %v8522_v22 = vor.u32 %v1952_v17, %v1951_v31  ;;  %v8526_v13 = vshll.u32 %v8506_v44, 16 }
 0x1c3   : > { %v1987_v19 = vshrl.u32 %v1705_v39, 16  ;;  %v1990_v42 = vshll.u32 %v1705_v39, 16  ;;  %v1958_v63 = vrot.slane %v1956_v43, 3  ;;  %v1961_v57 = vrot.slane %v1959_v16, 4 }
 0x1c4   : > { %v6670_v29 = vpop.f32.mrf.mxu0  ;;  %10587 = vst [vmem:[#allocation42_spill] sm:$0xff] %v8526_v13  ;;  %v10588_v21 = vshrl.u32 %v8454_v20, 16  ;;  %v8532_v53 = vpack.c.bf16 %v1134_v11, %v1133_v6  ;;  %v10590_v17 = vunpack.c.h.bf16 %v8129_v12  ;;  %v1013_v39 = vmax.f32 %v972_v47, 0.0 }
 0x1c5   : > { %v1989_v32 = vrot.slane %v1987_v19, 3  ;;  %v1962_v43 = vor.u32 %v1961_v57, %v1958_v63  ;;  %v1992_v16 = vrot.slane %v1990_v42, 4  ;;  %v973_v29 = vadd.f32 %v8493_v33, %v925_v59 }
 0x1c6   : > { %v1560_v14 = vrot.slane %v10588_v21, 4  ;;  %10589 = vst [vmem:[#allocation43_spill] sm:$0xff] %v8532_v53  ;;  %v834_v31 = vpop.f32.mrf.mxu0  ;;  %v1135_v9 = vmul.f32 %v10590_v17, %v1012_v35  ;;  %v10591_v34 = vshll.u32 %v8454_v20, 16  ;;  %v1954_v21 = vsel %vm1777_vm4, %v8470_v10, %v8522_v22 }
 0x1c7   : > { %v1963_v19 = vsel %vm1777_vm4, %v1940_v0, %v1962_v43  ;;  %v1993_v6 = vor.u32 %v1992_v16, %v1989_v32  ;;  %v1973_v63 = vrot.slane %v8475_v28, 3  ;;  %v1974_v12 = vrot.slane %v8468_v58, 4 }
 0x1c8   : > { %v1563_v8 = vrot.slane %v10591_v34, 5  ;;  %v6671_v42 = vpop.f32.mrf.mxu0  ;;  %2537 = vmatprep.mubr.bf16.mxu1 %v1963_v19  ;;  %v926_v35 = vmul.f32 %v8464_v56, %v831_v54  ;;  %v10592_v47 = vrot.slane %v8508_v15, 5  ;;  %v8550_v0 = vshrl.u32 %v8506_v44, 16 }
 0x1c9   : > { %v8554_v32 = vshll.u32 %v8532_v53, 16  ;;  %2538 = vmatmul.mubr.bf16.gmra.mxu1 %v1954_v21  ;;  %v1994_v10 = vsel %vm1777_vm4, %v8483_v27, %v1993_v6  ;;  %v10596_v54 = vunpack.c.l.bf16 %v8201_v18  ;;  %v8566_v27 = vor.u32 %v1974_v12, %v1973_v63 }
 0x1ca   : > { %v1564_v57 = vor.u32 %v1563_v8, %v1560_v14  ;;  %v1707_v34 = vsel %vm1686_vm2, %v1704_v50, %v10592_v47  ;;  %10593 = vst [vmem:[#allocation44_spill] sm:$0xff] %v8550_v0  ;;  %v839_v8 = vpop.f32.mrf.mxu0  ;;  %v8558_v14 = vpack.c.bf16 %v1135_v9, %v1134_v11  ;;  %6749 = vmatmul.mubr.bf16.gmra.mxu0 %v1994_v10  ;;  %v1014_v50 = vmax.f32 %v973_v29, 0.0 }
 0x1cb   : > { %10594 = vst [vmem:[#allocation45_spill] sm:$0xff] %v8554_v32  ;;  %v1136_v16 = vmul.f32 %v10596_v54, %v1013_v39  ;;  %6752 = vmatprep.mubr.msk.bf16.mxu0 %vm7581_vm0, %v10554_v49  ;;  %v2009_v21 = vshrl.u32 %v1707_v34, 16  ;;  %v2012_v47 = vshll.u32 %v1707_v34, 16  ;;  %v974_v11 = vadd.f32 %v8493_v33, %v926_v35 }
 0x1cc   : > { %10595 = vst [vmem:[#allocation46_spill] sm:$0xff] %v8558_v14  ;;  %v1565_v17 = vsel %vm1476_vm3, %v8485_v48, %v1564_v57  ;;  %v6674_v59 = vpop.f32.mrf.mxu0  ;;  %v927_v46 = vmul.f32 %v8464_v56, %v834_v31  ;;  %v10597_v39 = vshrl.u32 %v8508_v15, 16  ;;  %v10449_v34 = vrot.slane %v8558_v14, 5 }
 0x1cd   : > { %v1978_v19 = vshrl.u32 %v1565_v17, 16  ;;  %v1981_v42 = vshll.u32 %v1565_v17, 16  ;;  %v2011_v48 = vrot.slane %v2009_v21, 3  ;;  %v2014_v20 = vrot.slane %v2012_v47, 4 }
 0x1ce   : > { %v1569_v29 = vrot.slane %v10597_v39, 4  ;;  %v842_v17 = vpop.f32.mrf.mxu0  ;;  %v10598_v63 = vunpack.c.h.bf16 %v8201_v18  ;;  %v975_v31 = vadd.f32 %v8493_v33, %v927_v46  ;;  %v10599_v39 = vshll.u32 %v8508_v15, 16 }
 0x1cf   : > { %v1980_v10 = vrot.slane %v1978_v19, 3  ;;  %v1983_v54 = vrot.slane %v1981_v42, 4  ;;  %v2015_v59 = vor.u32 %v2014_v20, %v2011_v48  ;;  %v8580_v21 = vpack.c.bf16 %v1136_v16, %v1135_v9 }
 0x1d0   : > { %v1137_v12 = vmul.f32 %v10598_v63, %v1014_v50  ;;  %v1572_v19 = vrot.slane %v10599_v39, 5  ;;  %v6675_v42 = vpop.f32.mrf.mxu0  ;;  %v1976_v47 = vsel %vm1777_vm4, %v8522_v22, %v8566_v27  ;;  %v1015_v58 = vmax.f32 %v974_v11, 0.0 }
 0x1d1   : > { %v1984_v35 = vor.u32 %v1983_v54, %v1980_v10  ;;  %10600 = vst [vmem:[#allocation47_spill] sm:$0xff] %v8580_v21  ;;  %v1995_v28 = vrot.slane %v8550_v0, 3  ;;  %v2016_v50 = vsel %vm1777_vm4, %v1993_v6, %v2015_v59  ;;  %v1016_v20 = vmax.f32 %v975_v31, 0.0 }
 0x1d2   : > { %v1573_v10 = vor.u32 %v1572_v19, %v1569_v29  ;;  %v847_v46 = vpop.f32.mrf.mxu0  ;;  %6753 = vmatmul.mubr.bf16.gmra.mxu0 %v2016_v50  ;;  %v1996_v54 = vrot.slane %v8526_v13, 4  ;;  %v928_v9 = vmul.f32 %v8464_v56, %v839_v8  ;;  %v10601_v22 = vrot.slane %v8508_v15, 5 }
 0x1d3   : > { %v1985_v18 = vsel %vm1777_vm4, %v1962_v43, %v1984_v35  ;;  %v929_v48 = vmul.f32 %v8464_v56, %v842_v17  ;;  %v8596_v43 = vpack.c.bf16 %v1137_v12, %v1136_v16  ;;  %6756 = vmatprep.mubr.msk.bf16.mxu0 %vm7581_vm0, %v10554_v49  ;;  %v10603_v8 = vunpack.c.l.bf16 %v8211_v40 }
 0x1d4   : > { %2545 = vmatprep.mubr.bf16.mxu1 %v1985_v18  ;;  %v1709_v11 = vsel %vm1686_vm2, %v10601_v22, %v10449_v34  ;;  %v1574_v6 = vsel %vm1476_vm3, %v1564_v57, %v1573_v10  ;;  %v6678_v31 = vpop.f32.mrf.mxu0  ;;  %v976_v18 = vadd.f32 %v8493_v33, %v928_v9  ;;  %v10604_v17 = vunpack.c.h.bf16 %v8211_v40 }
 0x1d5   : > { %10602 = vst [vmem:[#allocation48_spill] sm:$0xff] %v8596_v43  ;;  %2546 = vmatmul.mubr.bf16.gmra.mxu1 %v1976_v47  ;;  %v2031_v29 = vshrl.u32 %v1709_v11, 16  ;;  %v2034_v63 = vshll.u32 %v1709_v11, 16  ;;  %v1138_v39 = vmul.f32 %v10603_v8, %v1015_v58  ;;  %v2000_v19 = vshrl.u32 %v1574_v6, 16 }
 0x1d6   : > { %v2003_v42 = vshll.u32 %v1574_v6, 16  ;;  %v1139_v16 = vmul.f32 %v10604_v17, %v1016_v20  ;;  %v8606_v50 = vor.u32 %v1996_v54, %v1995_v28  ;;  %v850_v22 = vpop.f32.mrf.mxu0  ;;  %v1017_v0 = vmax.f32 %v976_v18, 0.0 }
 0x1d7   : > { %v2033_v47 = vrot.slane %v2031_v29, 3  ;;  %v2036_v57 = vrot.slane %v2034_v63, 4  ;;  %v2002_v34 = vrot.slane %v2000_v19, 3  ;;  %v977_v11 = vadd.f32 %v8493_v33, %v929_v48 }
 0x1d8   : > { %v2005_v15 = vrot.slane %v2003_v42, 4  ;;  %v8610_v31 = vshrl.u32 %v8532_v53, 16  ;;  %v8613_v58 = vshll.u32 %v8580_v21, 16  ;;  %v10454_v9 = vrot.slane %v8596_v43, 5  ;;  %v6679_v28 = vpop.f32.mrf.mxu0 }
 0x1d9   : > { %v8616_v40 = vor.u32 %v2036_v57, %v2033_v47  ;;  %v10468_v20 = vshrl.u32 %v8596_v43, 16  ;;  %v8619_v54 = vpack.c.bf16 %v1138_v39, %v1137_v12  ;;  %v10608_v29 = vshrl.u32 %v8558_v14, 16 }
 0x1da   : > { %10605 = vst [vmem:[#allocation49_spill] sm:$0xff] %v8610_v31  ;;  %10606 = vst [vmem:[#allocation50_spill] sm:$0xff] %v8613_v58  ;;  %v2006_v6 = vor.u32 %v2005_v15, %v2002_v34  ;;  %v8623_v48 = vpack.c.bf16 %v1139_v16, %v1138_v39  ;;  %v1998_v8 = vsel %vm1777_vm4, %v8566_v27, %v8606_v50  ;;  %v10610_v42 = vshll.u32 %v8558_v14, 16  ;;  %v855_v17 = vpop.f32.mrf.mxu0 }
 0x1db   : > { %10607 = vst [vmem:[#allocation51_spill] sm:$0xff] %v8619_v54  ;;  %v1578_v63 = vrot.slane %v10608_v29, 4  ;;  %v2038_v19 = vsel %vm1777_vm4, %v2015_v59, %v8616_v40  ;;  %v10611_v15 = vunpack.c.l.bf16 %v8272_v30  ;;  %v1018_v47 = vmax.f32 %v977_v11, 0.0 }
 0x1dc   : > { %10609 = vst [vmem:[#allocation52_spill] sm:$0xff] %v8623_v48  ;;  %v1581_v18 = vrot.slane %v10610_v42, 5  ;;  %v2007_v12 = vsel %vm1777_vm4, %v1984_v35, %v2006_v6  ;;  %6757 = vmatmul.mubr.bf16.gmra.mxu0 %v2038_v19  ;;  %v930_v39 = vmul.f32 %v8464_v56, %v847_v46  ;;  %v2017_v27 = vrot.slane %v8610_v31, 3 }
 0x1dd   : > { %v1140_v34 = vmul.f32 %v10611_v15, %v1017_v0  ;;  %2553 = vmatprep.mubr.bf16.mxu1 %v2007_v12  ;;  %v2018_v28 = vrot.slane %v8554_v32, 4  ;;  %6760 = vmatprep.mubr.msk.bf16.mxu0 %vm7581_vm0, %v10554_v49  ;;  %v10612_v35 = vrot.slane %v8558_v14, 5  ;;  %v6682_v0 = vpop.f32.mrf.mxu0  ;;  %v8646_v11 = vshrl.u32 %v8580_v21, 16 }
 0x1de   : > { %v1582_v57 = vor.u32 %v1581_v18, %v1578_v63  ;;  %v8650_v29 = vshll.u32 %v8619_v54, 16  ;;  %v8653_v63 = vshrl.u32 %v8619_v54, 16  ;;  %2554 = vmatmul.mubr.bf16.gmra.mxu1 %v1998_v8  ;;  %v978_v18 = vadd.f32 %v8493_v33, %v930_v39 }
 0x1df   : > { %v1711_v59 = vsel %vm1686_vm2, %v10612_v35, %v10454_v9  ;;  %10613 = vst [vmem:[#allocation53_spill] sm:$0xff] %v8646_v11  ;;  %v858_v15 = vpop.f32.mrf.mxu0  ;;  %v8658_v35 = vpack.c.bf16 %v1140_v34, %v1139_v16  ;;  %v10617_v0 = vunpack.c.h.bf16 %v8272_v30  ;;  %v1587_v14 = vrot.slane %v10468_v20, 4 }
 0x1e0   : > { %10614 = vst [vmem:[#allocation54_spill] sm:$0xff] %v8650_v29  ;;  %10615 = vst [vmem:[#allocation55_spill] sm:$0xff] %v8653_v63  ;;  %v1583_v42 = vsel %vm1476_vm3, %v1573_v10, %v1582_v57  ;;  %v2053_v12 = vshrl.u32 %v1711_v59, 16  ;;  %v8664_v32 = vor.u32 %v2018_v28, %v2017_v27  ;;  %v2056_v19 = vshll.u32 %v1711_v59, 16 }
 0x1e1   : > { %10616 = vst [vmem:[#allocation56_spill] sm:$0xff] %v8658_v35  ;;  %v1141_v9 = vmul.f32 %v10617_v0, %v1018_v47  ;;  %v2022_v46 = vshrl.u32 %v1583_v42, 16  ;;  %v2025_v31 = vshll.u32 %v1583_v42, 16  ;;  %v6683_v13 = vpop.f32.mrf.mxu0  ;;  %v1019_v54 = vmax.f32 %v978_v18, 0.0 }
 0x1e2   : > { %v2055_v8 = vrot.slane %v2053_v12, 3  ;;  %v931_v39 = vmul.f32 %v8464_v56, %v850_v22  ;;  %v10618_v16 = vshll.u32 %v8596_v43, 16  ;;  %v2058_v53 = vrot.slane %v2056_v19, 4 }
 0x1e3   : > { %v2024_v10 = vrot.slane %v2022_v46, 3  ;;  %v2027_v0 = vrot.slane %v2025_v31, 4  ;;  %v8671_v20 = vpop.f32.mrf.mxu0  ;;  %v8674_v27 = vshll.u32 %v8658_v35, 16  ;;  %v932_v22 = vmul.f32 %v8464_v56, %v855_v17 }
 0x1e4   : > { %v1590_v21 = vrot.slane %v10618_v16, 5  ;;  %v979_v13 = vadd.f32 %v8493_v33, %v931_v39  ;;  %v8680_v59 = vpack.c.bf16 %v1141_v9, %v1140_v34  ;;  %v2020_v42 = vsel %vm1777_vm4, %v8606_v50, %v8664_v32 }
 0x1e5   : > { %10619 = vst [vmem:[#allocation57_spill] sm:$0xff] %v8674_v27  ;;  %v2028_v46 = vor.u32 %v2027_v0, %v2024_v10  ;;  %v2059_v31 = vor.u32 %v2058_v53, %v2055_v8  ;;  %v6686_v19 = vpop.f32.mrf.mxu0  ;;  %v10621_v18 = vunpack.c.l.bf16 %v8307_v1  ;;  %v10623_v17 = vrot.slane %v8596_v43, 5 }
 0x1e6   : > { %v8677_v28 = vor.u32 %v1590_v21, %v1587_v14  ;;  %10620 = vst [vmem:[#allocation58_spill] sm:$0xff] %v8680_v59  ;;  %v1020_v16 = vmax.f32 %v979_v13, 0.0  ;;  %v6432_v14 = vld [vmem:[#allocation5 + $0x80] sm:$0xff]   ;;  %v10622_v21 = vrot.slane %v8623_v48, 5  ;;  %v2039_v50 = vrot.slane %v8646_v11, 3 }
 0x1e7   : > { %v1142_v12 = vmul.f32 %v10621_v18, %v1019_v54  ;;  %v2029_v10 = vsel %vm1777_vm4, %v2006_v6, %v2028_v46  ;;  %v2040_v53 = vrot.slane %v8613_v58, 4  ;;  %v980_v8 = vadd.f32 %v8493_v33, %v932_v22  ;;  %v866_v54 = vpop.f32.mrf.mxu0 }
 0x1e8   : > { %v1592_v39 = vsel %vm1476_vm3, %v1582_v57, %v8677_v28  ;;  %v1713_v34 = vsel %vm1686_vm2, %v10623_v17, %v10622_v21  ;;  %2561 = vmatprep.mubr.bf16.mxu1 %v2029_v10  ;;  %v2060_v57 = vsel %vm1777_vm4, %v8616_v40, %v2059_v31  ;;  %v10624_v0 = vunpack.c.h.bf16 %v8307_v1 }
 0x1e9   : > { %v2044_v19 = vshrl.u32 %v1592_v39, 16  ;;  %v2047_v18 = vshll.u32 %v1592_v39, 16  ;;  %v8703_v21 = vshrl.u32 %v8658_v35, 16  ;;  %2562 = vmatmul.mubr.bf16.gmra.mxu1 %v2020_v42  ;;  %6761 = vmatmul.mubr.bf16.gmra.mxu0 %v2060_v57  ;;  %v6303_v6 = vunpack.c.l.bf16 %v6432_v14  ;;  %v6687_v30 = vpop.f32.mrf.mxu0 }
 0x1ea   : > { %v1143_v13 = vmul.f32 %v10624_v0, %v1020_v16  ;;  %v2075_v17 = vshrl.u32 %v1713_v34, 16  ;;  %v2078_v47 = vshll.u32 %v1713_v34, 16  ;;  %v8705_v22 = vpack.c.bf16 %v1142_v12, %v1141_v9  ;;  %6764 = vmatprep.mubr.msk.bf16.mxu0 %vm7581_vm0, %v10554_v49 }
 0x1eb   : > { %10625 = vst [vmem:[#allocation59_spill] sm:$0xff] %v8703_v21  ;;  %v2046_v10 = vrot.slane %v2044_v19, 3  ;;  %v2049_v43 = vrot.slane %v2047_v18, 4  ;;  %v933_v1 = vmul.f32 %v8464_v56, %v858_v15  ;;  %v8710_v40 = vor.u32 %v2040_v53, %v2039_v50  ;;  %v8712_v42 = vpop.f32.mrf.mxu0 }
 0x1ec   : > { %10626 = vst [vmem:[#allocation60_spill] sm:$0xff] %v8705_v22  ;;  %v1021_v16 = vmax.f32 %v980_v8, 0.0  ;;  %v2077_v39 = vrot.slane %v2075_v17, 3  ;;  %v2080_v0 = vrot.slane %v2078_v47, 4  ;;  %v8716_v9 = vpack.c.bf16 %v1143_v13, %v1142_v12 }
 0x1ed   : > { %v2050_v34 = vor.u32 %v2049_v43, %v2046_v10  ;;  %v10477_v19 = vrot.slane %v8680_v59, 5  ;;  %v981_v11 = vadd.f32 %v8493_v33, %v933_v1  ;;  %v10628_v15 = vshrl.u32 %v8623_v48, 16  ;;  %v6690_v53 = vpop.f32.mrf.mxu0 }
 0x1ee   : > { %10627 = vst [vmem:[#allocation61_spill] sm:$0xff] %v8716_v9  ;;  %v2081_v18 = vor.u32 %v2080_v0, %v2077_v39  ;;  %v8723_v47 = vshll.u32 %v8705_v22, 16  ;;  %v6304_v17 = vunpack.c.h.bf16 %v6432_v14  ;;  %v10629_v30 = vshll.u32 %v8623_v48, 16  ;;  %v6433_v0 = vld [vmem:[#allocation5 + $0x88] sm:$0xff]  }
 0x1ef   : > { %v1596_v50 = vrot.slane %v10628_v15, 4  ;;  %v2051_v8 = vsel %vm1777_vm4, %v2028_v46, %v2050_v34  ;;  %v8729_v43 = vshrl.u32 %v8705_v22, 16  ;;  %v2042_v10 = vsel %vm1777_vm4, %v8664_v32, %v8710_v40  ;;  %v8735_v15 = vpop.f32.mrf.mxu0 }
 0x1f0   : > { %v1599_v12 = vrot.slane %v10629_v30, 5  ;;  %2569 = vmatprep.mubr.bf16.mxu1 %v2051_v8  ;;  %v1144_v1 = vmul.f32 %v6303_v6, %v1021_v16  ;;  %v2082_v39 = vsel %vm1777_vm4, %v2059_v31, %v2081_v18  ;;  %v1022_v14 = vmax.f32 %v981_v11, 0.0 }
 0x1f1   : > { %v934_v30 = vmul.f32 %v8464_v56, %v8671_v20  ;;  %2570 = vmatmul.mubr.bf16.gmra.mxu1 %v2042_v10  ;;  %6765 = vmatmul.mubr.bf16.gmra.mxu0 %v2082_v39  ;;  %v2061_v8 = vrot.slane %v8653_v63, 3  ;;  %v2062_v57 = vrot.slane %v8650_v29, 4  ;;  %v10630_v32 = vrot.slane %v8623_v48, 5  ;;  %v6691_v16 = vpop.f32.mrf.mxu0 }
 0x1f2   : > { %v1600_v53 = vor.u32 %v1599_v12, %v1596_v50  ;;  %v935_v6 = vmul.f32 %v8464_v56, %v866_v54  ;;  %v1145_v11 = vmul.f32 %v6304_v17, %v1022_v14  ;;  %v6307_v12 = vunpack.c.l.bf16 %v6433_v0  ;;  %6768 = vmatprep.mubr.msk.bf16.mxu0 %vm7581_vm0, %v10554_v49 }
 0x1f3   : > { %v1715_v31 = vsel %vm1686_vm2, %v10630_v32, %v10477_v19  ;;  %v982_v20 = vadd.f32 %v8493_v33, %v934_v30  ;;  %v8753_v48 = vpop.f32.mrf.mxu0  ;;  %v8755_v32 = vpack.c.bf16 %v1144_v1, %v1143_v13  ;;  %v10631_v14 = vshrl.u32 %v8680_v59, 16 }
 0x1f4   : > { %v1601_v50 = vsel %vm1476_vm3, %v8677_v28, %v1600_v53  ;;  %v2097_v46 = vshrl.u32 %v1715_v31, 16  ;;  %v2100_v63 = vshll.u32 %v1715_v31, 16  ;;  %v983_v17 = vadd.f32 %v8493_v33, %v935_v6 }
 0x1f5   : > { %v2066_v10 = vshrl.u32 %v1601_v50, 16  ;;  %v2069_v39 = vshll.u32 %v1601_v50, 16  ;;  %v1023_v54 = vmax.f32 %v982_v20, 0.0  ;;  %v1605_v28 = vrot.slane %v10631_v14, 4  ;;  %v6694_v58 = vpop.f32.mrf.mxu0 }
 0x1f6   : > { %v2099_v19 = vrot.slane %v2097_v46, 3  ;;  %v2102_v29 = vrot.slane %v2100_v63, 4  ;;  %v8760_v22 = vpack.c.bf16 %v1145_v11, %v1144_v1  ;;  %v8762_v50 = vor.u32 %v2062_v57, %v2061_v8 }
 0x1f7   : > { %v2068_v16 = vrot.slane %v2066_v10, 3  ;;  %v2071_v30 = vrot.slane %v2069_v39, 4  ;;  %v1146_v31 = vmul.f32 %v6307_v12, %v1023_v54  ;;  %v6308_v35 = vunpack.c.h.bf16 %v6433_v0  ;;  %v8768_v51 = vpop.f32.mrf.mxu0 }
 0x1f8   : > { %10632 = vst [vmem:[#allocation62_spill] sm:$0xff] %v8760_v22  ;;  %v8764_v13 = vor.u32 %v2102_v29, %v2099_v19  ;;  %v1024_v20 = vmax.f32 %v983_v17, 0.0  ;;  %v10633_v6 = vshll.u32 %v8680_v59, 16  ;;  %v10491_v63 = vrot.slane %v8716_v9, 5 }
 0x1f9   : > { %v2072_v44 = vor.u32 %v2071_v30, %v2068_v16  ;;  %v8773_v58 = vshll.u32 %v8755_v32, 16  ;;  %v936_v57 = vmul.f32 %v8464_v56, %v8712_v42  ;;  %v8778_v29 = vpack.c.bf16 %v1146_v31, %v1145_v11  ;;  %v6695_v46 = vpop.f32.mrf.mxu0 }
 0x1fa   : > { %v1608_v38 = vrot.slane %v10633_v6, 5  ;;  %v2104_v19 = vsel %vm1777_vm4, %v2081_v18, %v8764_v13  ;;  %v8783_v8 = vshrl.u32 %v8755_v32, 16  ;;  %v2064_v39 = vsel %vm1777_vm4, %v8710_v40, %v8762_v50 }
 0x1fb   : > { %v2073_v1 = vsel %vm1777_vm4, %v2050_v34, %v2072_v44  ;;  %6769 = vmatmul.mubr.bf16.gmra.mxu0 %v2104_v19  ;;  %v2083_v42 = vrot.slane %v8703_v21, 3  ;;  %v6434_v34 = vld [vmem:[#allocation5 + $0x90] sm:$0xff]   ;;  %v1147_v11 = vmul.f32 %v6308_v35, %v1024_v20  ;;  %v984_v54 = vadd.f32 %v8493_v33, %v936_v57  ;;  %v8795_v17 = vpop.f32.mrf.mxu0 }
 0x1fc   : > { %v1609_v0 = vor.u32 %v1608_v38, %v1605_v28  ;;  %10634 = vst [vmem:[#allocation63_spill] sm:$0xff] %v8783_v8  ;;  %2577 = vmatprep.mubr.bf16.mxu1 %v2073_v1  ;;  %v2084_v38 = vrot.slane %v8674_v27, 4  ;;  %6772 = vmatprep.mubr.msk.bf16.mxu0 %vm7581_vm0, %v10554_v49  ;;  %v10635_v16 = vrot.slane %v8680_v59, 5  ;;  %v8805_v30 = vshll.u32 %v8778_v29, 16 }
 0x1fd   : > { %2578 = vmatmul.mubr.bf16.gmra.mxu1 %v2064_v39  ;;  %v1025_v20 = vmax.f32 %v984_v54, 0.0  ;;  %v6311_v6 = vunpack.c.l.bf16 %v6434_v34  ;;  %v6698_v57 = vpop.f32.mrf.mxu0  ;;  %v8807_v14 = vpack.c.bf16 %v1147_v11, %v1146_v31  ;;  %v937_v12 = vmul.f32 %v8464_v56, %v8735_v15 }
 0x1fe   : > { %v1610_v18 = vsel %vm1476_vm3, %v1600_v53, %v1609_v0  ;;  %v1717_v35 = vsel %vm1686_vm2, %v10635_v16, %v10491_v63  ;;  %v10637_v16 = vshrl.u32 %v8716_v9, 16  ;;  %v10638_v54 = vshll.u32 %v8716_v9, 16 }
 0x1ff   : > { %v2088_v40 = vshrl.u32 %v1610_v18, 16  ;;  %v2091_v28 = vshll.u32 %v1610_v18, 16  ;;  %v2119_v46 = vshrl.u32 %v1717_v35, 16  ;;  %v2122_v39 = vshll.u32 %v1717_v35, 16  ;;  %10636 = vst [vmem:[#allocation64_spill] sm:$0xff] %v8807_v14  ;;  %v890_v53 = vpop.f32.mrf.mxu0 }
 0x200   : > { %v2085_v18 = vor.u32 %v2084_v38, %v2083_v42  ;;  %v1614_v63 = vrot.slane %v10637_v16, 4  ;;  %v1617_v57 = vrot.slane %v10638_v54, 5  ;;  %v985_v31 = vadd.f32 %v8493_v33, %v937_v12 }
 0x201   : > { %v2090_v1 = vrot.slane %v2088_v40, 3  ;;  %v2093_v19 = vrot.slane %v2091_v28, 4  ;;  %v2121_v59 = vrot.slane %v2119_v46, 3  ;;  %v2124_v21 = vrot.slane %v2122_v39, 4  ;;  %v6699_v38 = vpop.f32.mrf.mxu0 }
 0x202   : > { %v8816_v40 = vshrl.u32 %v8778_v29, 16  ;;  %v1148_v28 = vmul.f32 %v6311_v6, %v1025_v20  ;;  %v6312_v42 = vunpack.c.h.bf16 %v6434_v34  ;;  %v1618_v27 = vor.u32 %v1617_v57, %v1614_v63 }
 0x203   : > { %v2094_v10 = vor.u32 %v2093_v19, %v2090_v1  ;;  %v2125_v35 = vor.u32 %v2124_v21, %v2121_v59  ;;  %v938_v53 = vmul.f32 %v8464_v56, %v8753_v48  ;;  %v6435_v1 = vld [vmem:[#allocation5 + $0x98] sm:$0xff]   ;;  %v10504_v19 = vshrl.u32 %v8807_v14, 16 }
 0x204   : > { %10639 = vst [vmem:[#allocation65_spill] sm:$0xff] %v8816_v40  ;;  %v2086_v46 = vsel %vm1777_vm4, %v8762_v50, %v2085_v18  ;;  %v1026_v39 = vmax.f32 %v985_v31, 0.0  ;;  %v2105_v20 = vrot.slane %v8729_v43, 3  ;;  %v2106_v59 = vrot.slane %v8723_v47, 4 }
 0x205   : > { %v2095_v15 = vsel %vm1777_vm4, %v2072_v44, %v2094_v10  ;;  %v2126_v12 = vsel %vm1777_vm4, %v8764_v13, %v2125_v35  ;;  %v1619_v44 = vsel %vm1476_vm3, %v1609_v0, %v1618_v27  ;;  %v986_v48 = vadd.f32 %v8493_v33, %v938_v53 }
 0x206   : > { %2585 = vmatprep.mubr.bf16.mxu1 %v2095_v15  ;;  %v8831_v21 = vpack.c.bf16 %v1148_v28, %v1147_v11  ;;  %6773 = vmatmul.mubr.bf16.gmra.mxu0 %v2126_v12  ;;  %v2110_v63 = vshrl.u32 %v1619_v44, 16  ;;  %v2113_v34 = vshll.u32 %v1619_v44, 16  ;;  %v6315_v6 = vunpack.c.l.bf16 %v6435_v1 }
 0x207   : > { %2586 = vmatmul.mubr.bf16.gmra.mxu1 %v2086_v46  ;;  %v1149_v50 = vmul.f32 %v6312_v42, %v1026_v39  ;;  %v1027_v16 = vmax.f32 %v986_v48, 0.0  ;;  %6776 = vmatprep.mubr.msk.bf16.mxu0 %vm7581_vm0, %v10554_v49  ;;  %v10640_v54 = vrot.slane %v8760_v22, 5  ;;  %v10641_v13 = vrot.slane %v8716_v9, 5 }
 0x208   : > { %v939_v57 = vmul.f32 %v8464_v56, %v8768_v51  ;;  %v2112_v31 = vrot.slane %v2110_v63, 3  ;;  %v2115_v38 = vrot.slane %v2113_v34, 4  ;;  %v8843_v53 = vor.u32 %v2106_v59, %v2105_v20 }
 0x209   : > { %v1719_v0 = vsel %vm1686_vm2, %v10641_v13, %v10640_v54  ;;  %v1150_v42 = vmul.f32 %v6315_v6, %v1027_v16  ;;  %v1720_v12 = vrot.slane %v8807_v14, 5  ;;  %v8848_v44 = vshll.u32 %v8831_v21, 16 }
 0x20a   : > { %v2141_v15 = vshrl.u32 %v1719_v0, 16  ;;  %v2144_v46 = vshll.u32 %v1719_v0, 16  ;;  %v987_v39 = vadd.f32 %v8493_v33, %v939_v57  ;;  %v2116_v48 = vor.u32 %v2115_v38, %v2112_v31  ;;  %v1070_v38 = vld [vmem:[#allocation5 + $0xa0] sm:$0xf] }
 0x20b   : > { %v6316_v54 = vunpack.c.h.bf16 %v6435_v1  ;;  %v8850_v13 = vpack.c.bf16 %v1149_v50, %v1148_v28  ;;  %v8853_v34 = vshrl.u32 %v8831_v21, 16  ;;  %v10643_v59 = vshrl.u32 %v8760_v22, 16 }
 0x20c   : > { %v2143_v51 = vrot.slane %v2141_v15, 3  ;;  %v2146_v11 = vrot.slane %v2144_v46, 4  ;;  %v1028_v63 = vmax.f32 %v987_v39, 0.0  ;;  %v2117_v20 = vsel %vm1777_vm4, %v2094_v10, %v2116_v48 }
 0x20d   : > { %10642 = vst [vmem:[#allocation66_spill] sm:$0xff] %v8850_v13  ;;  %v1623_v6 = vrot.slane %v10643_v59, 4  ;;  %v10644_v16 = vshll.u32 %v8760_v22, 16  ;;  %2593 = vmatprep.mubr.bf16.mxu1 %v2117_v20  ;;  %v2108_v1 = vsel %vm1777_vm4, %v2085_v18, %v8843_v53  ;;  %v8862_v28 = vpack.c.bf16 %v1150_v42, %v1149_v50 }
 0x20e   : > { %v2147_v57 = vor.u32 %v2146_v11, %v2143_v51  ;;  %v2127_v31 = vrot.slane %v8783_v8, 3  ;;  %v8865_v15 = vmul.f32 %v6316_v54, %v1028_v63  ;;  %v2128_v46 = vrot.slane %v8773_v58, 4 }
 0x20f   : > { %v1626_v0 = vrot.slane %v10644_v16, 5  ;;  %2594 = vmatmul.mubr.bf16.gmra.mxu1 %v2108_v1  ;;  %v940_v39 = vmul.f32 %v8464_v56, %v8795_v17  ;;  %v1722_v59 = vrot.slane %v8850_v13, 5  ;;  %v10645_v50 = vrot.slane %v8760_v22, 5 }
 0x210   : > { %v2148_v18 = vsel %vm1777_vm4, %v2125_v35, %v2147_v57  ;;  %v8877_v54 = vpack.c.bf16 %v8865_v15, %v1150_v42  ;;  %v8885_v1 = vshrl.u32 %v8862_v28, 16  ;;  %v1632_v42 = vrot.slane %v10504_v19, 4 }
 0x211   : > { %v1627_v10 = vor.u32 %v1626_v0, %v1623_v6  ;;  %v1721_v11 = vsel %vm1686_vm2, %v10645_v50, %v1720_v12  ;;  %6777 = vmatmul.mubr.bf16.gmra.mxu0 %v2148_v18  ;;  %v988_v63 = vadd.f32 %v8493_v33, %v940_v39  ;;  %v1111_v6 = vunpack.c.l.bf16 %v1070_v38 }
 0x212   : > { %10646 = vst [vmem:[#allocation67_spill] sm:$0xff] %v8877_v54  ;;  %6780 = vmatprep.mubr.msk.bf16.mxu0 %vm7581_vm0, %v10554_v49  ;;  %v2163_v16 = vshrl.u32 %v1721_v11, 16  ;;  %v2166_v35 = vshll.u32 %v1721_v11, 16  ;;  %v2129_v18 = vor.u32 %v2128_v46, %v2127_v31  ;;  %v2149_v22 = vrot.slane %v8816_v40, 3 }
 0x213   : > { %v1628_v51 = vsel %vm1476_vm3, %v1618_v27, %v1627_v10  ;;  %v1029_v33 = vmax.f32 %v988_v63, 0.0  ;;  %v2150_v11 = vrot.slane %v8805_v30, 4  ;;  %v1723_v31 = vsel %vm1686_vm2, %v1720_v12, %v1722_v59 }
 0x214   : > { %v2132_v56 = vshrl.u32 %v1628_v51, 16  ;;  %v2135_v17 = vshll.u32 %v1628_v51, 16  ;;  %v2165_v38 = vrot.slane %v2163_v16, 3  ;;  %v2168_v39 = vrot.slane %v2166_v35, 4 }
 0x215   : > { %v10647_v51 = vshll.u32 %v8807_v14, 16  ;;  %v8894_v8 = vmul.f32 %v1111_v6, %v1029_v33  ;;  %v1724_v16 = vrot.slane %v8877_v54, 5  ;;  %v8902_v19 = vor.u32 %v2150_v11, %v2149_v22 }
 0x216   : > { %v2134_v27 = vrot.slane %v2132_v56, 3  ;;  %v2137_v50 = vrot.slane %v2135_v17, 4  ;;  %v2169_v56 = vor.u32 %v2168_v39, %v2165_v38  ;;  %v2185_v17 = vshrl.u32 %v1723_v31, 16 }
 0x217   : > { %v1635_v20 = vrot.slane %v10647_v51, 5  ;;  %v1173_v51 = vpack.c.bf16 %v8894_v8, %v8894_v8  ;;  %v2130_v6 = vsel %vm1777_vm4, %v8843_v53, %v2129_v18  ;;  %v8912_v22 = vpack.c.bf16 %v10554_v49, %v8894_v8 }
 0x218   : > { %v2138_v9 = vor.u32 %v2137_v50, %v2134_v27  ;;  %v2170_v12 = vsel %vm1777_vm4, %v2147_v57, %v2169_v56  ;;  %v2187_v53 = vrot.slane %v2185_v17, 3  ;;  %v2188_v57 = vshll.u32 %v1723_v31, 16 }
 0x219   : > { %v1636_v63 = vor.u32 %v1635_v20, %v1632_v42  ;;  %v10648_v20 = vshrl.u32 %v8850_v13, 16  ;;  %v1657_v50 = vshrl.u32 %v1173_v51, 16  ;;  %v1660_v33 = vshll.u32 %v1173_v51, 16  ;;  %6781 = vmatmul.mubr.bf16.gmra.mxu0 %v2170_v12  ;;  %10649 = vst [vmem:[#allocation68_spill] sm:$0xff] %v8912_v22 }
 0x21a   : > { %v2139_v35 = vsel %vm1777_vm4, %v2116_v48, %v2138_v9  ;;  %6784 = vmatprep.mubr.msk.bf16.mxu0 %vm7581_vm0, %v10554_v49  ;;  %v2152_v51 = vsel %vm1777_vm4, %v2129_v18, %v8902_v19  ;;  %v1725_v46 = vsel %vm1686_vm2, %v1722_v59, %v1724_v16  ;;  %v2171_v14 = vrot.slane %v8853_v34, 3 }
 0x21b   : > { %2601 = vmatprep.mubr.bf16.mxu1 %v2139_v35  ;;  %v1637_v27 = vsel %vm1476_vm3, %v1627_v10, %v1636_v63  ;;  %v1641_v42 = vrot.slane %v10648_v20, 4  ;;  %v10650_v10 = vshll.u32 %v8850_v13, 16  ;;  %v1659_v11 = vrot.slane %v1657_v50, 4 }
 0x21c   : > { %2602 = vmatmul.mubr.bf16.gmra.mxu1 %v2130_v6  ;;  %v2154_v48 = vshrl.u32 %v1637_v27, 16  ;;  %v2157_v38 = vshll.u32 %v1637_v27, 16  ;;  %v1662_v12 = vrot.slane %v1660_v33, 5  ;;  %v2190_v27 = vrot.slane %v2188_v57, 4 }
 0x21d   : > { %v1644_v39 = vrot.slane %v10650_v10, 5  ;;  %v2207_v40 = vshrl.u32 %v1725_v46, 16  ;;  %v2210_v17 = vshll.u32 %v1725_v46, 16  ;;  %v2172_v50 = vrot.slane %v8848_v44, 4 }
 0x21e   : > { %v2156_v35 = vrot.slane %v2154_v48, 3  ;;  %v2159_v6 = vrot.slane %v2157_v38, 4  ;;  %v2191_v31 = vor.u32 %v2190_v27, %v2187_v53  ;;  %v10651_v48 = vshrl.u32 %v8877_v54, 16 }
 0x21f   : > { %v1645_v20 = vor.u32 %v1644_v39, %v1641_v42  ;;  %v2209_v42 = vrot.slane %v2207_v40, 3  ;;  %v1663_v10 = vor.u32 %v1662_v12, %v1659_v11  ;;  %v2212_v39 = vrot.slane %v2210_v17, 4 }
 0x220   : > { %v2160_v0 = vor.u32 %v2159_v6, %v2156_v35  ;;  %v1650_v38 = vrot.slane %v10651_v48, 4  ;;  %v2192_v59 = vsel %vm1777_vm4, %v2169_v56, %v2191_v31  ;;  %v10652_v46 = vshll.u32 %v8877_v54, 16 }
 0x221   : > { %v1646_v13 = vsel %vm1476_vm3, %v1636_v63, %v1645_v20  ;;  %v8931_v63 = vshll.u32 %v8862_v28, 16  ;;  %6785 = vmatmul.mubr.bf16.gmra.mxu0 %v2192_v59  ;;  %v7583_v27 = vmov 0.0|0.0   ;;  %v2213_v40 = vor.u32 %v2212_v39, %v2209_v42 }
 0x222   : > { %v2161_v18 = vsel %vm1777_vm4, %v2138_v9, %v2160_v0  ;;  %v2176_v33 = vshrl.u32 %v1646_v13, 16  ;;  %v2179_v57 = vshll.u32 %v1646_v13, 16  ;;  %v1653_v53 = vrot.slane %v10652_v46, 5  ;;  %6788 = vmatprep.mubr.msk.bf16.mxu0 %vm7581_vm0, %v10554_v49 }
 0x223   : > { %2609 = vmatprep.mubr.bf16.mxu1 %v2161_v18  ;;  %v1726_v9 = vrot.slane %v8912_v22, 5  ;;  %v8934_v13 = vrot.slane %v7583_v27, 1  ;;  %v2173_v12 = vor.u32 %v2172_v50, %v2171_v14  ;;  %v1206_v48 = vrot.slane %v7972_v61, 1 }
 0x224   : > { %2610 = vmatmul.mubr.bf16.gmra.mxu1 %v2152_v51  ;;  %v2178_v35 = vrot.slane %v2176_v33, 3  ;;  %v2181_v6 = vrot.slane %v2179_v57, 4  ;;  %v1654_v56 = vor.u32 %v1653_v53, %v1650_v38  ;;  %v2193_v18 = vrot.slane %v8885_v1, 3 }
 0x225   : > { %10653 = vst [vmem:[#allocation69_spill] sm:$0xff] %v8934_v13  ;;  %v1727_v17 = vsel %vm1686_vm2, %v1724_v16, %v1726_v9  ;;  %v2194_v42 = vrot.slane %v8931_v63, 4  ;;  %v2214_v14 = vsel %vm1777_vm4, %v2191_v31, %v2213_v40  ;;  %v2174_v39 = vsel %vm1777_vm4, %v8902_v19, %v2173_v12 }
 0x226   : > { %v2182_v11 = vor.u32 %v2181_v6, %v2178_v35  ;;  %v1655_v51 = vsel %vm1476_vm3, %v1645_v20, %v1654_v56  ;;  %v1664_v33 = vsel %vm1476_vm3, %v1654_v56, %v1663_v10  ;;  %v2234_v57 = vshrl.u32 %v1727_v17, 16 }
 0x227   : > { %v2198_v46 = vshrl.u32 %v1655_v51, 16  ;;  %v2201_v27 = vshll.u32 %v1655_v51, 16  ;;  %v2225_v50 = vshrl.u32 %v1664_v33, 16  ;;  %v2228_v16 = vshll.u32 %v1664_v33, 16 }
 0x228   : > { %v2183_v59 = vsel %vm1777_vm4, %v2160_v0, %v2182_v11  ;;  %v2237_v38 = vshll.u32 %v1727_v17, 16  ;;  %v1474_v20 = vpack.c.bf16 %v8894_v8, %v8865_v15  ;;  %v2236_v6 = vrot.slane %v2234_v57, 3 }
 0x229   : > { %2617 = vmatprep.mubr.bf16.mxu1 %v2183_v59  ;;  %v2200_v10 = vrot.slane %v2198_v46, 3  ;;  %v2203_v53 = vrot.slane %v2201_v27, 4  ;;  %v2227_v35 = vrot.slane %v2225_v50, 3  ;;  %v2230_v0 = vrot.slane %v2228_v16, 4  ;;  %6789 = vmatmul.mubr.bf16.gmra.mxu0 %v2214_v14 }
 0x22a   : > { %v2239_v9 = vrot.slane %v2237_v38, 4  ;;  %v10654_v31 = vrot.slane %v7957_v36, 1  ;;  %v2195_v51 = vor.u32 %v2194_v42, %v2193_v18  ;;  %6792 = vmatprep.mubr.msk.bf16.mxu0 %vm7581_vm0, %v10554_v49  ;;  %v1214_v8 = vrot.slane %v7981_v2, 1 }
 0x22b   : > { %v2204_v56 = vor.u32 %v2203_v53, %v2200_v10  ;;  %v2231_v15 = vor.u32 %v2230_v0, %v2227_v35  ;;  %v8959_v33 = vrot.slane %v10557_v41, 1  ;;  %v2216_v59 = vshrl.u32 %v1474_v20, 16 }
 0x22c   : > { %2618 = vmatmul.mubr.bf16.gmra.mxu1 %v2174_v39  ;;  %v1387_v17 = vsel %vm1384_vm1, %v8934_v13, %v10654_v31  ;;  %v2240_v57 = vor.u32 %v2239_v9, %v2236_v6  ;;  %v2219_v46 = vshll.u32 %v1474_v20, 16  ;;  %v1210_v36 = vor.u32 %v7975_v62, %v1206_v48 }
 0x22d   : > { %v2205_v19 = vsel %vm1777_vm4, %v2182_v11, %v2204_v56  ;;  %10655 = vst [vmem:[#allocation70_spill] sm:$0xff] %v8959_v33  ;;  %v2875_v27 = vshrl.u32 %v1387_v17, 16  ;;  %v2878_v18 = vshll.u32 %v1387_v17, 16  ;;  %v2883_v42 = vshrl.u32 %v7991_v4, 16 }
 0x22e   : > { %2625 = vmatprep.mubr.bf16.mxu1 %v2205_v19  ;;  %v1390_v14 = vrot.slane %v8018_v5, 1  ;;  %v2196_v50 = vsel %vm1777_vm4, %v2173_v12, %v2195_v51  ;;  %v1215_v11 = vsel %vm1195_vm5, %v1210_v36, %v1214_v8  ;;  %v2886_v16 = vshll.u32 %v7991_v4, 16 }
 0x22f   : > { %v2232_v38 = vsel %vm1777_vm4, %v2204_v56, %v2231_v15  ;;  %v2877_v39 = vrot.slane %v2875_v27, 2  ;;  %v2880_v10 = vrot.slane %v2878_v18, 3  ;;  %v2885_v20 = vrot.slane %v2883_v42, 2 }
 0x230   : > { %v2241_v53 = vsel %vm1777_vm4, %v2213_v40, %v2240_v57  ;;  %v2218_v35 = vrot.slane %v2216_v59, 3  ;;  %v2221_v0 = vrot.slane %v2219_v46, 4  ;;  %v2888_v6 = vrot.slane %v2886_v16, 3 }
 0x231   : > { %v1392_v9 = vrot.slane %v8103_v60, 1  ;;  %6793 = vmatmul.mubr.bf16.gmra.mxu0 %v2241_v53  ;;  %v1207_v5 = vsel %vm1195_vm5, %v8959_v33, %v1206_v48  ;;  %v2866_v4 = vshrl.u32 %v1215_v11, 16  ;;  %v2881_v12 = vor.u32 %v2880_v10, %v2877_v39 }
 0x232   : > { %6796 = vmatprep.mubr.msk.bf16.mxu0 %vm7581_vm0, %v10554_v49  ;;  %v2889_v56 = vor.u32 %v2888_v6, %v2885_v20  ;;  %v10656_v31 = vrot.slane %v7962_v45, 1  ;;  %v2869_v17 = vshll.u32 %v1215_v11, 16  ;;  %v2222_v59 = vor.u32 %v2221_v0, %v2218_v35 }
 0x233   : > { %v1222_v48 = vrot.slane %v8077_v26, 1  ;;  %v2858_v36 = vshrl.u32 %v1207_v5, 16  ;;  %v2861_v27 = vshll.u32 %v1207_v5, 16  ;;  %v2868_v16 = vrot.slane %v2866_v4, 2 }
 0x234   : > { %2626 = vmatmul.mubr.bf16.gmra.mxu1 %v2196_v50  ;;  %v1391_v40 = vsel %vm1384_vm1, %v10656_v31, %v1390_v14  ;;  %v2890_v46 = vsel %vm2849_vm6, %v2881_v12, %v2889_v56  ;;  %v1394_v50 = vrot.slane %v8157_v7, 1  ;;  %v1218_v45 = vor.u32 %v7984_v3, %v1214_v8 }
 0x235   : > { %2633 = vmatprep.mubr.bf16.mxu1 %v2232_v38  ;;  %v2905_v19 = vshrl.u32 %v1391_v40, 16  ;;  %v2908_v60 = vshll.u32 %v1391_v40, 16  ;;  %v1393_v38 = vsel %vm1384_vm1, %v1390_v14, %v1392_v9  ;;  %v2871_v39 = vrot.slane %v2869_v17, 3 }
 0x236   : > { %v2927_v10 = vshrl.u32 %v1393_v38, 16  ;;  %v2930_v20 = vshll.u32 %v1393_v38, 16  ;;  %v2223_v53 = vsel %vm1777_vm4, %v2195_v51, %v2222_v59  ;;  %v1223_v35 = vsel %vm1195_vm5, %v1218_v45, %v1222_v48 }
 0x237   : > { %v2907_v18 = vrot.slane %v2905_v19, 2  ;;  %v2910_v42 = vrot.slane %v2908_v60, 3  ;;  %v2860_v0 = vrot.slane %v2858_v36, 2  ;;  %v2863_v6 = vrot.slane %v2861_v27, 3  ;;  %v7293_v36 = vld [vmem:[#allocation8 + $0x238] sm:$0xff]  }
 0x238   : > { %v2929_v7 = vrot.slane %v2927_v10, 2  ;;  %v2932_v8 = vrot.slane %v2930_v20, 3  ;;  %v1396_v14 = vrot.slane %v8230_v23, 1  ;;  %v8990_v4 = vor.u32 %v2871_v39, %v2868_v16 }
 0x239   : > { %v2911_v11 = vor.u32 %v2910_v42, %v2907_v18  ;;  %6797 = vmatmul.mubr.bf16.gmra.mxu0 %v2240_v57  ;;  %v2896_v51 = vshrl.u32 %v1223_v35, 16  ;;  %v1395_v12 = vsel %vm1384_vm1, %v1392_v9, %v1394_v50  ;;  %v2899_v31 = vshll.u32 %v1223_v35, 16 }
 0x23a   : > { %6816 = vmatprep.mubr.msk.bf16.mxu0 %vm7581_vm0, %v10554_v49  ;;  %v2933_v57 = vor.u32 %v2932_v8, %v2929_v7  ;;  %v2949_v40 = vshrl.u32 %v1395_v12, 16  ;;  %v2952_v17 = vshll.u32 %v1395_v12, 16  ;;  %v2864_v19 = vor.u32 %v2863_v6, %v2860_v0 }
 0x23b   : > { %v8985_v5 = vsel %vm2849_vm6, %v2889_v56, %v2911_v11  ;;  %v1230_v56 = vrot.slane %v8144_v24, 1  ;;  %v2851_v60 = vrot.slane %v10557_v41, 3  ;;  %v2683_v23 = vpop.f32.mrf.mxu0  ;;  %v2853_v42 = vrot.slane %v7975_v62, 2 }
 0x23c   : > { %2634 = vmatmul.mubr.bf16.gmra.mxu1 %v2223_v53  ;;  %v8997_v27 = vsel %vm2849_vm6, %v2911_v11, %v2933_v57  ;;  %v2951_v18 = vrot.slane %v2949_v40, 2  ;;  %v2854_v9 = vrot.slane %v7972_v61, 3  ;;  %v1226_v16 = vor.u32 %v8037_v52, %v1222_v48  ;;  %v7296_v48 = vld [vmem:[#allocation8 + $0x230] sm:$0xff]  }
 0x23d   : > { %2641 = vmatprep.mubr.bf16.mxu1 %v2231_v15  ;;  %v2850_v15 = vrot.slane %v10557_v41, 2  ;;  %v2954_v45 = vrot.slane %v2952_v17, 3  ;;  %v2873_v38 = vsel %vm2849_vm6, %v2864_v19, %v8990_v4  ;;  %v2898_v39 = vrot.slane %v2896_v51, 2  ;;  %v6718_v20 = vpop.f32.mrf.mxu0 }
 0x23e   : > { %v2901_v10 = vrot.slane %v2899_v31, 3  ;;  %v1397_v53 = vsel %vm1384_vm1, %v1394_v50, %v1396_v14  ;;  %v1231_v11 = vsel %vm1195_vm5, %v1226_v16, %v1230_v56  ;;  %v1398_v61 = vrot.slane %v8321_v25, 1 }
 0x23f   : > { %v2955_v35 = vor.u32 %v2954_v45, %v2951_v18  ;;  %v2971_v0 = vshrl.u32 %v1397_v53, 16  ;;  %v2974_v62 = vshll.u32 %v1397_v53, 16  ;;  %v2686_v6 = vpop.f32.mrf.mxu0  ;;  %v2852_v7 = vor.u32 %v2851_v60, %v2850_v15  ;;  %v7292_v60 = vld [vmem:[#allocation8 + $0x1b8] sm:$0xff]   ;;  %v10657_v45 = vld [vmem:[#allocation20_spill] sm:$0xff]  ;;  %v7299_v53 = vld [vmem:[#allocation8 + $0x228] sm:$0xff]  }
 0x240   : > { %v2855_v8 = vor.u32 %v2854_v9, %v2853_v42  ;;  %v2918_v51 = vshrl.u32 %v1231_v11, 16  ;;  %v2921_v12 = vshll.u32 %v1231_v11, 16  ;;  %v1400_v17 = vrot.slane %v8358_v37, 1 }
 0x241   : > { %6817 = vmatmul.mubr.bf16.vlgmr.msra.gmra.mxu0 %v2890_v46  ;;  %v9010_v50 = vsel %vm2849_vm6, %v2933_v57, %v2955_v35  ;;  %v9013_v46 = vor.u32 %v2901_v10, %v2898_v39  ;;  %v2483_v25 = vpop.f32.mrf.mxu1  ;;  %v6719_v31 = vpop.f32.mrf.mxu0  ;;  %v2976_v40 = vrot.slane %v2974_v62, 3  ;;  %v1238_v19 = vrot.slane %v8215_v55, 1 }
 0x242   : > { %6901 = vmatpush3.bf16.msra.mxu0 %v7293_v36  ;;  %6820 = vmatprep.mubr.msk.bf16.mxu0 %vm7581_vm0, %v10554_v49  ;;  %v9017_v15 = vadd.f32 %v2683_v23, %v2483_v25  ;;  %v2891_v57 = vrot.slane %v7984_v3, 2  ;;  %v2892_v36 = vrot.slane %v7981_v2, 3  ;;  %v1399_v9 = vsel %vm1384_vm1, %v1396_v14, %v1398_v61 }
 0x243   : > { %6902 = vmatprep.subr.bf16.mxu0 %v10554_v49  ;;  %v2485_v18 = vpop.f32.mrf.mxu1  ;;  %v2856_v16 = vsel %vm2849_vm6, %v2852_v7, %v2855_v8  ;;  %v2993_v39 = vshrl.u32 %v1399_v9, 16  ;;  %v2996_v37 = vshll.u32 %v1399_v9, 16  ;;  %v2903_v23 = vsel %vm2849_vm6, %v8990_v4, %v9013_v46 }
 0x244   : > { %2642 = vmatmul.mubr.bf16.gmra.mxu1 %v2222_v59  ;;  %v2973_v59 = vrot.slane %v2971_v0, 2  ;;  %v2920_v3 = vrot.slane %v2918_v51, 2  ;;  %v2923_v10 = vrot.slane %v2921_v12, 3  ;;  %v9035_v4 = vor.u32 %v2892_v36, %v2891_v57  ;;  %v10659_v36 = vld [vmem:[#allocation24_spill] sm:$0xff] }
 0x245   : > { %3548 = vmatprep.mubr.bf16.mxu1 %v2873_v38  ;;  %v1234_v38 = vor.u32 %v10657_v45, %v1230_v56  ;;  %v2486_v20 = vpop.f32.mrf.mxu1  ;;  %v2691_v56 = vpop.f32.mrf.mxu0  ;;  %v2995_v0 = vrot.slane %v2993_v39, 2  ;;  %v2998_v62 = vrot.slane %v2996_v37, 3  ;;  %v1246_v18 = vrot.slane %v10659_v36, 1 }
 0x246   : > { %6903 = vmatpush3.bf16.msra.mxu0 %v7296_v48  ;;  %v2977_v42 = vor.u32 %v2976_v40, %v2973_v59  ;;  %v9033_v11 = vadd.f32 %v2686_v6, %v2486_v20  ;;  %v7294_v48 = vld [vmem:[#allocation8 + $0x1b0] sm:$0xff]   ;;  %v1401_v6 = vsel %vm1384_vm1, %v1398_v61, %v1400_v17  ;;  %v9042_v12 = vor.u32 %v2923_v10, %v2920_v3 }
 0x247   : > { %6904 = vmatprep.subr.bf16.mxu0 %v10554_v49  ;;  %v1239_v14 = vsel %vm1195_vm5, %v1234_v38, %v1238_v19  ;;  %v2488_v7 = vpop.f32.mrf.mxu1  ;;  %v2999_v51 = vor.u32 %v2998_v62, %v2995_v0  ;;  %v3015_v31 = vshrl.u32 %v1401_v6, 16  ;;  %v3018_v40 = vshll.u32 %v1401_v6, 16  ;;  %v10660_v3 = vld [vmem:[#allocation22_spill] sm:$0xff] }
 0x248   : > { %v9029_v2 = vsel %vm2849_vm6, %v2955_v35, %v2977_v42  ;;  %v10658_v35 = vld [vmem:[#allocation33_spill] sm:$0xff]  ;;  %v2940_v25 = vshrl.u32 %v1239_v14, 16  ;;  %v2943_v57 = vshll.u32 %v1239_v14, 16  ;;  %v2894_v38 = vsel %vm2849_vm6, %v2855_v8, %v9035_v4 }
 0x249   : > { %6821 = vmatmul.mubr.bf16.gmra.mxu0 %v8985_v5  ;;  %v1402_v59 = vrot.slane %v10658_v35, 1  ;;  %v6722_v5 = vpop.f32.mrf.mxu0  ;;  %v2913_v61 = vrot.slane %v8037_v52, 2  ;;  %v3017_v39 = vrot.slane %v3015_v31, 2  ;;  %v2914_v37 = vrot.slane %v8077_v26, 3  ;;  %v7305_v26 = vld [vmem:[#allocation8 + $0x218] sm:$0xff]  }
 0x24a   : > { %6824 = vmatprep.mubr.msk.bf16.mxu0 %vm7581_vm0, %v10554_v49  ;;  %6905 = vmatpush3.bf16.msra.mxu0 %v7299_v53  ;;  %v1242_v10 = vor.u32 %v10660_v3, %v1238_v19  ;;  %v3020_v53 = vrot.slane %v3018_v40, 3  ;;  %v2925_v8 = vsel %vm2849_vm6, %v9013_v46, %v9042_v12  ;;  %v2942_v14 = vrot.slane %v2940_v25, 2 }
 0x24b   : > { %v2694_v9 = vpop.f32.mrf.mxu0  ;;  %6906 = vmatprep.subr.bf16.mxu0 %v10554_v49  ;;  %v2945_v19 = vrot.slane %v2943_v57, 3  ;;  %v9068_v40 = vor.u32 %v2914_v37, %v2913_v61 }
 0x24c   : > { %3549 = vmatmul.mubr.bf16.vlgmr.msra.gmra.mxu1 %v2856_v16  ;;  %v9046_v16 = vsel %vm2849_vm6, %v2977_v42, %v2999_v51  ;;  %v1403_v42 = vsel %vm1384_vm1, %v1400_v17, %v1402_v59  ;;  %v2491_v52 = vpop.f32.mrf.mxu1  ;;  %v3021_v5 = vor.u32 %v3020_v53, %v3017_v39  ;;  %v10661_v17 = vld [vmem:[#allocation36_spill] sm:$0xff] }
 0x24d   : > { %4612 = vmatpush1.bf16.msra.mxu1 %v7292_v60  ;;  %3556 = vmatprep.mubr.bf16.mxu1 %v2903_v23  ;;  %v7302_v60 = vld [vmem:[#allocation8 + $0x220] sm:$0xff]   ;;  %v7295_v23 = vld [vmem:[#allocation8 + $0x1a8] sm:$0xff]   ;;  %v6723_v20 = vpop.f32.mrf.mxu0  ;;  %v3037_v0 = vshrl.u32 %v1403_v42, 16  ;;  %v3040_v62 = vshll.u32 %v1403_v42, 16  ;;  %v9063_v7 = vadd.f32 %v2691_v56, %v2491_v52  ;;  %v1404_v6 = vrot.slane %v10661_v17, 1 }
 0x24e   : > { %4613 = vmatprep.subr.bf16.mxu1 %v10557_v41  ;;  %6907 = vmatpush3.bf16.msra.mxu0 %v7302_v60  ;;  %v2493_v46 = vpop.f32.mrf.mxu1  ;;  %v7297_v60 = vld [vmem:[#allocation8 + $0x1a0] sm:$0xff]   ;;  %v9071_v57 = vsel %vm2849_vm6, %v2999_v51, %v3021_v5  ;;  %v7308_v20 = vld [vmem:[#allocation8 + $0x210] sm:$0xff]   ;;  %v9078_v37 = vor.u32 %v2945_v19, %v2942_v14  ;;  %v2935_v52 = vrot.slane %v10657_v45, 2  ;;  %v7298_v45 = vld [vmem:[#allocation8 + $0x198] sm:$0xff]  }
 0x24f   : > { %v3039_v25 = vrot.slane %v3037_v0, 2  ;;  %v3042_v31 = vrot.slane %v3040_v62, 3  ;;  %6908 = vmatprep.subr.bf16.mxu0 %v10554_v49  ;;  %v10662_v53 = vld [vmem:[#allocation40_spill] sm:$0xff]  ;;  %v2936_v0 = vrot.slane %v8144_v24, 3  ;;  %v1405_v14 = vsel %vm1384_vm1, %v1402_v59, %v1404_v6  ;;  %v10664_v19 = vld [vmem:[#allocation26_spill] sm:$0xff] }
 0x250   : > { %v2494_v39 = vpop.f32.mrf.mxu1  ;;  %v10511_v61 = vrot.slane %v10662_v53, 1  ;;  %v2947_v35 = vsel %vm2849_vm6, %v9042_v12, %v9078_v37 }
 0x251   : > { %4614 = vmatpush1.bf16.msra.mxu1 %v7294_v48  ;;  %6825 = vmatmul.mubr.bf16.gmra.mxu0 %v8997_v27  ;;  %v1247_v48 = vsel %vm1195_vm5, %v1242_v10, %v1246_v18  ;;  %v2699_v27 = vpop.f32.mrf.mxu0  ;;  %v9075_v10 = vor.u32 %v3042_v31, %v3039_v25  ;;  %v3059_v25 = vshrl.u32 %v1405_v14, 16  ;;  %v7311_v31 = vld [vmem:[#allocation8 + $0x208] sm:$0xff]  }
 0x252   : > { %4615 = vmatprep.subr.bf16.mxu1 %v10557_v41  ;;  %6828 = vmatprep.mubr.msk.bf16.mxu0 %vm7581_vm0, %v10554_v49  ;;  %v2962_v56 = vshrl.u32 %v1247_v48, 16  ;;  %v2496_v62 = vpop.f32.mrf.mxu1 }
 0x253   : > { %6909 = vmatpush3.bf16.msra.mxu0 %v7305_v26  ;;  %v6726_v51 = vpop.f32.mrf.mxu0  ;;  %v9088_v26 = vsel %vm2849_vm6, %v3021_v5, %v9075_v10  ;;  %v3062_v5 = vshll.u32 %v1405_v14, 16 }
 0x254   : > { %3557 = vmatmul.mubr.bf16.gmra.mxu1 %v2894_v38  ;;  %v2965_v38 = vshll.u32 %v1247_v48, 16  ;;  %6910 = vmatprep.subr.bf16.mxu0 %v10554_v49  ;;  %v1250_v48 = vor.u32 %v10664_v19, %v1246_v18  ;;  %v2964_v46 = vrot.slane %v2962_v56, 2  ;;  %v9103_v18 = vor.u32 %v2936_v0, %v2935_v52 }
 0x255   : > { %3564 = vmatprep.mubr.bf16.mxu1 %v2925_v8  ;;  %4616 = vmatpush1.bf16.msra.mxu1 %v7295_v23  ;;  %v10663_v23 = vld [vmem:[#allocation28_spill] sm:$0xff]  ;;  %v9081_v8 = vadd.f32 %v2694_v9, %v2494_v39  ;;  %v2916_v9 = vsel %vm2849_vm6, %v9035_v4, %v9068_v40  ;;  %v2702_v17 = vpop.f32.mrf.mxu0  ;;  %v3061_v56 = vrot.slane %v3059_v25, 2  ;;  %v1407_v39 = vsel %vm1384_vm1, %v1404_v6, %v10511_v61 }
 0x256   : > { %4617 = vmatprep.subr.bf16.mxu1 %v10557_v41  ;;  %v1254_v42 = vrot.slane %v10663_v23, 1  ;;  %v2967_v24 = vrot.slane %v2965_v38, 3  ;;  %v3064_v38 = vrot.slane %v3062_v5, 3  ;;  %v3081_v62 = vshrl.u32 %v1407_v39, 16  ;;  %v7314_v6 = vld [vmem:[#allocation8 + $0x200] sm:$0xff]   ;;  %v10666_v5 = vld [vmem:[#allocation31_spill] sm:$0xff] }
 0x257   : > { %6911 = vmatpush3.bf16.msra.mxu0 %v7308_v20  ;;  %v6727_v59 = vpop.f32.mrf.mxu0  ;;  %v10665_v20 = vld [vmem:[#allocation43_spill] sm:$0xff] }
 0x258   : > { %v1255_v4 = vsel %vm1195_vm5, %v1250_v48, %v1254_v42  ;;  %6912 = vmatprep.subr.bf16.mxu0 %v10554_v49  ;;  %v9114_v52 = vor.u32 %v2967_v24, %v2964_v46  ;;  %v3065_v25 = vor.u32 %v3064_v38, %v3061_v56  ;;  %v3084_v59 = vshll.u32 %v1407_v39, 16  ;;  %v10668_v38 = vld [vmem:[#allocation29_spill] sm:$0xff] }
 0x259   : > { %4618 = vmatpush1.bf16.msra.mxu1 %v7297_v60  ;;  %6829 = vmatmul.mubr.bf16.gmra.mxu0 %v9010_v50  ;;  %v2499_v60 = vpop.f32.mrf.mxu1  ;;  %v7300_v50 = vld [vmem:[#allocation8 + $0x190] sm:$0xff]   ;;  %v2984_v0 = vshrl.u32 %v1255_v4, 16  ;;  %v2987_v14 = vshll.u32 %v1255_v4, 16  ;;  %v2707_v48 = vpop.f32.mrf.mxu0  ;;  %v2938_v46 = vsel %vm2849_vm6, %v9068_v40, %v9103_v18  ;;  %v2957_v24 = vrot.slane %v10660_v3, 2 }
 0x25a   : > { %4619 = vmatprep.subr.bf16.mxu1 %v10557_v41  ;;  %6832 = vmatprep.mubr.msk.bf16.mxu0 %vm7581_vm0, %v10554_v49  ;;  %v9111_v51 = vadd.f32 %v2699_v27, %v2499_v60  ;;  %v3083_v27 = vrot.slane %v3081_v62, 2  ;;  %v2958_v56 = vrot.slane %v8215_v55, 3  ;;  %v1258_v39 = vor.u32 %v10668_v38, %v1254_v42  ;;  %v7301_v60 = vld [vmem:[#allocation8 + $0x188] sm:$0xff]  }
 0x25b   : > { %6913 = vmatpush3.bf16.msra.mxu0 %v7311_v31  ;;  %v9126_v31 = vsel %vm2849_vm6, %v9075_v10, %v3065_v25  ;;  %v3086_v61 = vrot.slane %v3084_v59, 3  ;;  %v2969_v40 = vsel %vm2849_vm6, %v9078_v37, %v9114_v52  ;;  %v2986_v3 = vrot.slane %v2984_v0, 2 }
 0x25c   : > { %3565 = vmatmul.mubr.bf16.gmra.mxu1 %v2916_v9  ;;  %v2501_v9 = vpop.f32.mrf.mxu1  ;;  %6914 = vmatprep.subr.bf16.mxu0 %v10554_v49  ;;  %v2989_v12 = vrot.slane %v2987_v14, 3  ;;  %v10669_v10 = vrot.slane %v10665_v20, 1  ;;  %v10670_v55 = vrot.slane %v10662_v53, 1  ;;  %v2959_v59 = vor.u32 %v2958_v56, %v2957_v24 }
 0x25d   : > { %3572 = vmatprep.mubr.bf16.mxu1 %v2947_v35  ;;  %4620 = vmatpush1.bf16.msra.mxu1 %v7298_v45  ;;  %v1262_v35 = vrot.slane %v10666_v5, 1  ;;  %v10667_v45 = vld [vmem:[#allocation47_spill] sm:$0xff]  ;;  %v6730_v9 = vpop.f32.mrf.mxu0  ;;  %v2979_v56 = vrot.slane %v10664_v19, 2 }
 0x25e   : > { %4621 = vmatprep.subr.bf16.mxu1 %v10557_v41  ;;  %v2502_v4 = vpop.f32.mrf.mxu1  ;;  %v1409_v42 = vsel %vm1384_vm1, %v10670_v55, %v10669_v10 }
 0x25f   : > { %v9130_v62 = vadd.f32 %v2702_v17, %v2502_v4  ;;  %v2710_v33 = vpop.f32.mrf.mxu0  ;;  %6915 = vmatpush3.bf16.msra.mxu0 %v7314_v6  ;;  %v1263_v17 = vsel %vm1195_vm5, %v1258_v39, %v1262_v35  ;;  %v3103_v37 = vshrl.u32 %v1409_v42, 16  ;;  %v3106_v0 = vshll.u32 %v1409_v42, 16  ;;  %v7303_v4 = vld [vmem:[#allocation8 + $0x180] sm:$0xff]  }
 0x260   : > { %v2504_v9 = vpop.f32.mrf.mxu1  ;;  %7000 = vmatprep.subr.bf16.mxu0 %v10554_v49  ;;  %v2980_v42 = vrot.slane %v10659_v36, 3 }
 0x261   : > { %4622 = vmatpush1.bf16.msra.mxu1 %v7300_v50  ;;  %6833 = vmatmul.mubr.bf16.gmra.mxu0 %v9029_v2  ;;  %v3087_v50 = vor.u32 %v3086_v61, %v3083_v27  ;;  %v6731_v14 = vpop.f32.mrf.mxu0  ;;  %v3105_v6 = vrot.slane %v3103_v37, 2  ;;  %v10671_v2 = vld [vmem:[#allocation51_spill] sm:$0xff]  ;;  %v3006_v61 = vshrl.u32 %v1263_v17, 16  ;;  %v3009_v27 = vshll.u32 %v1263_v17, 16  ;;  %v10672_v9 = vld [vmem:[#allocation34_spill] sm:$0xff] }
 0x262   : > { %4623 = vmatprep.subr.bf16.mxu1 %v10557_v41  ;;  %6836 = vmatprep.mubr.msk.bf16.mxu0 %vm7581_vm0, %v10554_v49  ;;  %v1412_v39 = vrot.slane %v10671_v2, 1  ;;  %v1270_v10 = vrot.slane %v10672_v9, 1  ;;  %v7304_v2 = vld [vmem:[#allocation8 + $0x1f8] sm:$0xff]  }
 0x263   : > { %v9146_v53 = vsel %vm2849_vm6, %v3065_v25, %v3087_v50  ;;  %v10674_v25 = vrot.slane %v10665_v20, 1  ;;  %v2507_v37 = vpop.f32.mrf.mxu1  ;;  %v3011_v19 = vrot.slane %v3009_v27, 3  ;;  %v10676_v27 = vrot.slane %v10667_v45, 1 }
 0x264   : > { %3573 = vmatmul.mubr.bf16.gmra.mxu1 %v2938_v46  ;;  %v3108_v46 = vrot.slane %v3106_v0, 3  ;;  %v2715_v0 = vpop.f32.mrf.mxu0 }
 0x265   : > { %3580 = vmatprep.mubr.bf16.mxu1 %v2969_v40  ;;  %4624 = vmatpush1.bf16.msra.mxu1 %v7301_v60  ;;  %v2990_v40 = vor.u32 %v2989_v12, %v2986_v3  ;;  %v10673_v60 = vrot.slane %v10667_v45, 1  ;;  %v2960_v12 = vsel %vm2849_vm6, %v9103_v18, %v2959_v59  ;;  %v9161_v3 = vadd.f32 %v2707_v48, %v2507_v37  ;;  %v10677_v37 = vld [vmem:[#allocation56_spill] sm:$0xff] }
 0x266   : > { %4625 = vmatprep.subr.bf16.mxu1 %v10557_v41  ;;  %v3109_v55 = vor.u32 %v3108_v46, %v3105_v6  ;;  %v10675_v6 = vld [vmem:[#allocation32_spill] sm:$0xff]  ;;  %v6734_v36 = vpop.f32.mrf.mxu0 }
 0x267   : > { %v1411_v24 = vsel %vm1384_vm1, %v10674_v25, %v10673_v60  ;;  %v1266_v46 = vor.u32 %v10675_v6, %v1262_v35  ;;  %v3008_v60 = vrot.slane %v3006_v61, 2  ;;  %v2509_v25 = vpop.f32.mrf.mxu1  ;;  %v2991_v18 = vsel %vm2849_vm6, %v9114_v52, %v2990_v40 }
 0x268   : > { %v3125_v14 = vshrl.u32 %v1411_v24, 16  ;;  %v3128_v17 = vshll.u32 %v1411_v24, 16  ;;  %v9165_v20 = vsel %vm2849_vm6, %v3087_v50, %v3109_v55  ;;  %v9172_v35 = vor.u32 %v2980_v42, %v2979_v56 }
 0x269   : > { %4626 = vmatpush1.bf16.msra.mxu1 %v7303_v4  ;;  %6837 = vmatmul.mubr.bf16.gmra.mxu0 %v9046_v16  ;;  %v1271_v48 = vsel %vm1195_vm5, %v1266_v46, %v1270_v10  ;;  %v2510_v50 = vpop.f32.mrf.mxu1  ;;  %v2718_v4 = vpop.f32.mrf.mxu0  ;;  %v1413_v24 = vsel %vm1384_vm1, %v10676_v27, %v1412_v39 }
 0x26a   : > { %v3127_v13 = vrot.slane %v3125_v14, 2  ;;  %v3130_v22 = vrot.slane %v3128_v17, 3  ;;  %4627 = vmatprep.subr.bf16.mxu1 %v10557_v41  ;;  %6840 = vmatprep.mubr.msk.bf16.mxu0 %vm7581_vm0, %v10554_v49  ;;  %v1414_v14 = vrot.slane %v10677_v37, 1  ;;  %v9180_v52 = vadd.f32 %v2710_v33, %v2510_v50  ;;  %v7306_v17 = vld [vmem:[#allocation8 + $0x1f0] sm:$0xff]   ;;  %v10680_v33 = vld [vmem:[#allocation60_spill] sm:$0xff]  ;;  %v10681_v37 = vld [vmem:[#allocation35_spill] sm:$0xff] }
 0x26b   : > { %v3147_v16 = vshrl.u32 %v1413_v24, 16  ;;  %v3028_v56 = vshrl.u32 %v1271_v48, 16  ;;  %v2512_v42 = vpop.f32.mrf.mxu1  ;;  %v6735_v46 = vpop.f32.mrf.mxu0 }
 0x26c   : > { %3581 = vmatmul.mubr.bf16.gmra.mxu1 %v2960_v12  ;;  %v3131_v61 = vor.u32 %v3130_v22, %v3127_v13  ;;  %10678 = vst [vmem:[#allocation20_spill] sm:$0xff] %v9180_v52  ;;  %v9182_v12 = vor.u32 %v3011_v19, %v3008_v60  ;;  %v3031_v22 = vshll.u32 %v1271_v48, 16  ;;  %v10679_v13 = vld [vmem:[#allocation38_spill] sm:$0xff]  ;;  %v3001_v60 = vrot.slane %v10668_v38, 2  ;;  %v7307_v46 = vld [vmem:[#allocation8 + $0x1e8] sm:$0xff]  }
 0x26d   : > { %3588 = vmatprep.mubr.bf16.mxu1 %v2991_v18  ;;  %4628 = vmatpush2.bf16.msra.mxu1 %v7304_v2  ;;  %v1278_v45 = vrot.slane %v10679_v13, 1  ;;  %v3149_v36 = vrot.slane %v3147_v16, 2  ;;  %v3150_v18 = vshll.u32 %v1413_v24, 16  ;;  %v2982_v2 = vsel %vm2849_vm6, %v2959_v59, %v9172_v35  ;;  %v2515_v27 = vpop.f32.mrf.mxu1 }
 0x26e   : > { %v9185_v25 = vsel %vm2849_vm6, %v3109_v55, %v3131_v61  ;;  %4629 = vmatprep.subr.bf16.mxu1 %v10557_v41  ;;  %v3002_v19 = vrot.slane %v10663_v23, 3  ;;  %v1274_v55 = vor.u32 %v10681_v37, %v1270_v10  ;;  %v1415_v48 = vsel %vm1384_vm1, %v1412_v39, %v1414_v14 }
 0x26f   : > { %v3152_v42 = vrot.slane %v3150_v18, 3  ;;  %v3013_v24 = vsel %vm2849_vm6, %v2990_v40, %v9182_v12  ;;  %v9198_v16 = vadd.f32 %v2715_v0, %v2515_v27  ;;  %v3169_v50 = vshrl.u32 %v1415_v48, 16  ;;  %v2517_v10 = vpop.f32.mrf.mxu1 }
 0x270   : > { %v3172_v54 = vshll.u32 %v1415_v48, 16  ;;  %v3030_v23 = vrot.slane %v3028_v56, 2  ;;  %v3033_v38 = vrot.slane %v3031_v22, 3  ;;  %v1279_v59 = vsel %vm1195_vm5, %v1274_v55, %v1278_v45  ;;  %v10684_v10 = vld [vmem:[#allocation42_spill] sm:$0xff] }
 0x271   : > { %4630 = vmatpush2.bf16.msra.mxu1 %v7306_v17  ;;  %10682 = vst [vmem:[#allocation33_spill] sm:$0xff] %v9198_v16  ;;  %6841 = vmatmul.mubr.bf16.gmra.mxu0 %v9071_v57  ;;  %v2723_v17 = vpop.f32.mrf.mxu0  ;;  %v3153_v39 = vor.u32 %v3152_v42, %v3149_v36  ;;  %v3171_v40 = vrot.slane %v3169_v50, 2  ;;  %v3003_v0 = vor.u32 %v3002_v19, %v3001_v60  ;;  %v2518_v18 = vpop.f32.mrf.mxu1  ;;  %v7309_v57 = vld [vmem:[#allocation8 + $0x1e0] sm:$0xff]   ;;  %v3050_v56 = vshrl.u32 %v1279_v59, 16 }
 0x272   : > { %4631 = vmatprep.subr.bf16.mxu1 %v10557_v41  ;;  %6844 = vmatprep.mubr.msk.bf16.mxu0 %vm7581_vm0, %v10554_v49  ;;  %v3053_v22 = vshll.u32 %v1279_v59, 16  ;;  %v9208_v55 = vadd.f32 %v2718_v4, %v2518_v18  ;;  %v3034_v36 = vor.u32 %v3033_v38, %v3030_v23  ;;  %v1286_v50 = vrot.slane %v10684_v10, 1  ;;  %v10686_v18 = vld [vmem:[#allocation39_spill] sm:$0xff] }
 0x273   : > { %v6738_v27 = vpop.f32.mrf.mxu0  ;;  %v9206_v48 = vsel %vm2849_vm6, %v3131_v61, %v3153_v39  ;;  %v2520_v42 = vpop.f32.mrf.mxu1  ;;  %v10685_v19 = vrot.slane %v10680_v33, 1  ;;  %v1418_v4 = vrot.slane %v8755_v32, 1  ;;  %v3004_v23 = vsel %vm2849_vm6, %v9172_v35, %v3003_v0 }
 0x274   : > { %3589 = vmatmul.mubr.bf16.gmra.mxu1 %v2982_v2  ;;  %v3174_v2 = vrot.slane %v3172_v54, 3  ;;  %10683 = vst [vmem:[#allocation24_spill] sm:$0xff] %v9208_v55  ;;  %v3023_v54 = vrot.slane %v10675_v6, 2  ;;  %v1282_v42 = vor.u32 %v10686_v18, %v1278_v45  ;;  %v3035_v32 = vsel %vm2849_vm6, %v9182_v12, %v3034_v36 }
 0x275   : > { %3596 = vmatprep.mubr.bf16.mxu1 %v3013_v24  ;;  %4632 = vmatpush2.bf16.msra.mxu1 %v7307_v46  ;;  %v2726_v24 = vpop.f32.mrf.mxu0  ;;  %v1417_v61 = vsel %vm1384_vm1, %v1414_v14, %v10685_v19  ;;  %v3024_v46 = vrot.slane %v10666_v5, 3  ;;  %v3052_v14 = vrot.slane %v3050_v56, 2  ;;  %v3055_v19 = vrot.slane %v3053_v22, 3  ;;  %v2523_v5 = vpop.f32.mrf.mxu1 }
 0x276   : > { %4633 = vmatprep.subr.bf16.mxu1 %v10557_v41  ;;  %v3175_v60 = vor.u32 %v3174_v2, %v3171_v40  ;;  %v3191_v27 = vshrl.u32 %v1417_v61, 16  ;;  %v3194_v59 = vshll.u32 %v1417_v61, 16  ;;  %v7310_v2 = vld [vmem:[#allocation8 + $0x1d8] sm:$0xff]   ;;  %v1287_v35 = vsel %vm1195_vm5, %v1282_v42, %v1286_v50 }
 0x277   : > { %v6739_v38 = vpop.f32.mrf.mxu0  ;;  %v9229_v45 = vor.u32 %v3024_v46, %v3023_v54  ;;  %v1420_v56 = vrot.slane %v8778_v29, 1  ;;  %v2525_v22 = vpop.f32.mrf.mxu1  ;;  %v10688_v12 = vrot.slane %v10680_v33, 1  ;;  %v3072_v54 = vshrl.u32 %v1287_v35, 16  ;;  %v10689_v29 = vld [vmem:[#allocation45_spill] sm:$0xff] }
 0x278   : > { %v9222_v40 = vsel %vm2849_vm6, %v3153_v39, %v3175_v60  ;;  %v3193_v6 = vrot.slane %v3191_v27, 2  ;;  %v3196_v55 = vrot.slane %v3194_v59, 3  ;;  %v9233_v39 = vadd.f32 %v2723_v17, %v2523_v5  ;;  %v7312_v27 = vld [vmem:[#allocation8 + $0x1d0] sm:$0xff]  }
 0x279   : > { %4634 = vmatpush2.bf16.msra.mxu1 %v7309_v57  ;;  %6845 = vmatmul.mubr.bf16.gmra.mxu0 %v9088_v26  ;;  %v2731_v61 = vpop.f32.mrf.mxu0  ;;  %v1419_v26 = vsel %vm1384_vm1, %v10688_v12, %v1418_v4  ;;  %v9239_v59 = vor.u32 %v3055_v19, %v3052_v14  ;;  %v3075_v46 = vshll.u32 %v1287_v35, 16  ;;  %v2526_v17 = vpop.f32.mrf.mxu1  ;;  %v1294_v38 = vrot.slane %v10689_v29, 1  ;;  %v10691_v35 = vld [vmem:[#allocation44_spill] sm:$0xff] }
 0x27a   : > { %4635 = vmatprep.subr.bf16.mxu1 %v10557_v41  ;;  %6848 = vmatprep.mubr.msk.bf16.mxu0 %vm7581_vm0, %v10554_v49  ;;  %10687 = vst [vmem:[#allocation22_spill] sm:$0xff] %v9233_v39  ;;  %v3197_v57 = vor.u32 %v3196_v55, %v3193_v6  ;;  %v3213_v42 = vshrl.u32 %v1419_v26, 16  ;;  %v3216_v6 = vshll.u32 %v1419_v26, 16  ;;  %v3045_v14 = vrot.slane %v10681_v37, 2  ;;  %v7313_v39 = vld [vmem:[#allocation8 + $0x1c8] sm:$0xff]  }
 0x27b   : > { %v6742_v55 = vpop.f32.mrf.mxu0  ;;  %v9250_v19 = vadd.f32 %v2726_v24, %v2526_v17  ;;  %v1290_v22 = vor.u32 %v10691_v35, %v1286_v50  ;;  %v3057_v26 = vsel %vm2849_vm6, %v3034_v36, %v9239_v59  ;;  %v3074_v33 = vrot.slane %v3072_v54, 2 }
 0x27c   : > { %3597 = vmatmul.mubr.bf16.gmra.mxu1 %v3004_v23  ;;  %v9242_v23 = vsel %vm2849_vm6, %v3175_v60, %v3197_v57  ;;  %v3046_v60 = vrot.slane %v10672_v9, 3  ;;  %v3215_v12 = vrot.slane %v3213_v42, 2  ;;  %v3218_v55 = vrot.slane %v3216_v6, 3  ;;  %v7315_v42 = vld [vmem:[#allocation8 + $0x1c0] sm:$0xff]  }
 0x27d   : > { %3604 = vmatprep.mubr.bf16.mxu1 %v3035_v32  ;;  %4636 = vmatpush2.bf16.msra.mxu1 %v7310_v2  ;;  %v3026_v2 = vsel %vm2849_vm6, %v3003_v0, %v9229_v45  ;;  %10690 = vst [vmem:[#allocation36_spill] sm:$0xff] %v9250_v19  ;;  %v2528_v32 = vpop.f32.mrf.mxu1  ;;  %v2734_v5 = vpop.f32.mrf.mxu0  ;;  %v3077_v16 = vrot.slane %v3075_v46, 3  ;;  %v1421_v0 = vsel %vm1384_vm1, %v1418_v4, %v1420_v56 }
 0x27e   : > { %4637 = vmatprep.subr.bf16.mxu1 %v10557_v41  ;;  %v1295_v37 = vsel %vm1195_vm5, %v1290_v22, %v1294_v38  ;;  %v3219_v24 = vor.u32 %v3218_v55, %v3215_v12  ;;  %v3235_v50 = vshrl.u32 %v1421_v0, 16  ;;  %v3238_v17 = vshll.u32 %v1421_v0, 16 }
 0x27f   : > { %v6743_v9 = vpop.f32.mrf.mxu0  ;;  %v3097_v32 = vshll.u32 %v1295_v37, 16  ;;  %v3078_v22 = vor.u32 %v3077_v16, %v3074_v33  ;;  %v10695_v33 = vld [vmem:[#allocation49_spill] sm:$0xff] }
 0x280   : > { %v9263_v54 = vsel %vm2849_vm6, %v3197_v57, %v3219_v24  ;;  %v3237_v4 = vrot.slane %v3235_v50, 2  ;;  %v3240_v46 = vrot.slane %v3238_v17, 3  ;;  %v10694_v57 = vrot.slane %v8831_v21, 1 }
 0x281   : > { %4638 = vmatpush2.bf16.msra.mxu1 %v7312_v27  ;;  %6849 = vmatmul.mubr.bf16.gmra.mxu0 %v9126_v31  ;;  %v2531_v36 = vpop.f32.mrf.mxu1  ;;  %v2739_v27 = vpop.f32.mrf.mxu0  ;;  %v3047_v31 = vor.u32 %v3046_v60, %v3045_v14  ;;  %v3067_v60 = vrot.slane %v10686_v18, 2  ;;  %v1298_v17 = vor.u32 %v10695_v33, %v1294_v38  ;;  %v3089_v21 = vrot.slane %v10691_v35, 2  ;;  %v10702_v35 = vld [vmem:[#allocation53_spill] sm:$0xff] }
 0x282   : > { %4639 = vmatprep.subr.bf16.mxu1 %v10557_v41  ;;  %6852 = vmatprep.mubr.msk.bf16.mxu0 %vm7581_vm0, %v10554_v49  ;;  %v9265_v6 = vadd.f32 %v2731_v61, %v2531_v36  ;;  %v3241_v9 = vor.u32 %v3240_v46, %v3237_v4  ;;  %v1423_v50 = vsel %vm1384_vm1, %v1420_v56, %v10694_v57 }
 0x283   : > { %v2533_v12 = vpop.f32.mrf.mxu1  ;;  %v6746_v55 = vpop.f32.mrf.mxu0  ;;  %v3257_v14 = vshrl.u32 %v1423_v50, 16  ;;  %v3260_v61 = vshll.u32 %v1423_v50, 16  ;;  %v3048_v56 = vsel %vm2849_vm6, %v9229_v45, %v3047_v31 }
 0x284   : > { %3605 = vmatmul.mubr.bf16.gmra.mxu1 %v3026_v2  ;;  %10692 = vst [vmem:[#allocation40_spill] sm:$0xff] %v9265_v6  ;;  %v3094_v2 = vshrl.u32 %v1295_v37, 16  ;;  %v3068_v37 = vrot.slane %v10679_v13, 3  ;;  %v9279_v36 = vsel %vm2849_vm6, %v3219_v24, %v3241_v9  ;;  %v3079_v13 = vsel %vm2849_vm6, %v9239_v59, %v3078_v22  ;;  %v10698_v59 = vld [vmem:[#allocation18_spill] sm:$0xff] }
 0x285   : > { %3612 = vmatprep.mubr.bf16.mxu1 %v3057_v26  ;;  %4640 = vmatpush2.bf16.msra.mxu1 %v7313_v39  ;;  %v10693_v26 = vld [vmem:[#allocation50_spill] sm:$0xff]  ;;  %v9273_v39 = vrot.slane %v8862_v28, 1  ;;  %v2742_v16 = vpop.f32.mrf.mxu0  ;;  %v3099_v28 = vrot.slane %v3097_v32, 3  ;;  %v3262_v12 = vrot.slane %v3260_v61, 3  ;;  %v3982_v55 = vrot.slane %v10698_v59, 1 }
 0x286   : > { %4641 = vmatprep.subr.bf16.mxu1 %v10557_v41  ;;  %v1302_v0 = vrot.slane %v10693_v26, 1  ;;  %v2534_v41 = vpop.f32.mrf.mxu1  ;;  %v3096_v4 = vrot.slane %v3094_v2, 2  ;;  %v3069_v45 = vor.u32 %v3068_v37, %v3067_v60  ;;  %v10697_v2 = vmov %v10694_v57  ;;  %v10700_v37 = vld [vmem:[#allocation19_spill] sm:$0xff] }
 0x287   : > { %v9283_v46 = vadd.f32 %v2734_v5, %v2534_v41  ;;  %v6747_v38 = vpop.f32.mrf.mxu0  ;;  %v1425_v32 = vsel %vm1384_vm1, %v10697_v2, %v9273_v39  ;;  %v10711_v19 = vrot.slane %v10700_v37, 1 }
 0x288   : > { %v2536_v18 = vpop.f32.mrf.mxu1  ;;  %v1303_v24 = vsel %vm1195_vm5, %v1298_v17, %v1302_v0  ;;  %v3279_v41 = vshrl.u32 %v1425_v32, 16  ;;  %v3282_v60 = vshll.u32 %v1425_v32, 16  ;;  %v10701_v38 = vld [vmem:[#allocation54_spill] sm:$0xff]  ;;  %v3090_v32 = vrot.slane %v10684_v10, 3 }
 0x289   : > { %4642 = vmatpush2.bf16.msra.mxu1 %v7315_v42  ;;  %10696 = vst [vmem:[#allocation28_spill] sm:$0xff] %v9283_v46  ;;  %6853 = vmatmul.mubr.bf16.gmra.mxu0 %v9146_v53  ;;  %v3259_v42 = vrot.slane %v3257_v14, 2  ;;  %v9297_v53 = vor.u32 %v3099_v28, %v3096_v4  ;;  %v3116_v50 = vshrl.u32 %v1303_v24, 16  ;;  %v3119_v61 = vshll.u32 %v1303_v24, 16  ;;  %v10704_v46 = vld [vmem:[#allocation17_spill] sm:$0xff] }
 0x28a   : > { %7100 = vmatprep.subr.bf16.mxu1 %v10554_v49  ;;  %6856 = vmatprep.mubr.msk.bf16.mxu0 %vm7581_vm0, %v10554_v49  ;;  %v2539_v57 = vpop.f32.mrf.mxu1  ;;  %v2747_v17 = vpop.f32.mrf.mxu0  ;;  %v3281_v4 = vrot.slane %v3279_v41, 2  ;;  %v3070_v28 = vsel %vm2849_vm6, %v3047_v31, %v3069_v45  ;;  %v3284_v2 = vrot.slane %v3282_v60, 3  ;;  %v3304_v24 = vshll.u32 %v9273_v39, 16 }
 0x28b   : > { %v3263_v5 = vor.u32 %v3262_v12, %v3259_v42  ;;  %v9299_v14 = vadd.f32 %v2739_v27, %v2539_v57  ;;  %v1310_v42 = vrot.slane %v10701_v38, 1  ;;  %v3301_v27 = vshrl.u32 %v9273_v39, 16 }
 0x28c   : > { %3613 = vmatmul.mubr.bf16.gmra.mxu1 %v3048_v56  ;;  %v2541_v18 = vpop.f32.mrf.mxu1  ;;  %v6750_v12 = vpop.f32.mrf.mxu0  ;;  %v3118_v57 = vrot.slane %v3116_v50, 2  ;;  %v3121_v41 = vrot.slane %v3119_v61, 3  ;;  %v3981_v39 = vrot.slane %v10704_v46, 1  ;;  %v3306_v50 = vrot.slane %v3304_v24, 3 }
 0x28d   : > { %3620 = vmatprep.mubr.bf16.mxu1 %v3079_v13  ;;  %10699 = vst [vmem:[#allocation26_spill] sm:$0xff] %v9299_v14  ;;  %v9302_v56 = vsel %vm2849_vm6, %v3241_v9, %v3263_v5  ;;  %v3101_v9 = vsel %vm2849_vm6, %v3078_v22, %v9297_v53  ;;  %v1306_v18 = vor.u32 %v10702_v35, %v1302_v0  ;;  %v3303_v14 = vrot.slane %v3301_v27, 2 }
 0x28e   : > { %v2542_v13 = vpop.f32.mrf.mxu1  ;;  %v2750_v60 = vpop.f32.mrf.mxu0  ;;  %v3285_v12 = vor.u32 %v3284_v2, %v3281_v4  ;;  %v3983_v61 = vsel %vm1384_vm1, %v3981_v39, %v3982_v55 }
 0x28f   : > { %v9315_v31 = vadd.f32 %v2742_v16, %v2542_v13  ;;  %v1311_v22 = vsel %vm1195_vm5, %v1306_v18, %v1310_v42  ;;  %v9324_v16 = vor.u32 %v3306_v50, %v3303_v14  ;;  %v3122_v13 = vor.u32 %v3121_v41, %v3118_v57  ;;  %v10706_v18 = vld [vmem:[#allocation57_spill] sm:$0xff] }
 0x290   : > { %v2544_v10 = vpop.f32.mrf.mxu1  ;;  %v6751_v0 = vpop.f32.mrf.mxu0  ;;  %v3138_v4 = vshrl.u32 %v1311_v22, 16  ;;  %v3141_v2 = vshll.u32 %v1311_v22, 16  ;;  %v1318_v24 = vrot.slane %v10706_v18, 1  ;;  %v3112_v57 = vrot.slane %v10689_v29, 3 }
 0x291   : > { %6857 = vmatmul.mubr.bf16.gmra.mxu0 %v9165_v20  ;;  %10703 = vst [vmem:[#allocation43_spill] sm:$0xff] %v9315_v31  ;;  %v3091_v20 = vor.u32 %v3090_v32, %v3089_v21  ;;  %v4085_v21 = vshll.u32 %v3983_v61, 16  ;;  %v3111_v32 = vrot.slane %v10695_v33, 2 }
 0x292   : > { %6860 = vmatprep.mubr.msk.bf16.mxu0 %vm7581_vm0, %v10554_v49  ;;  %v2755_v27 = vpop.f32.mrf.mxu0 }
 0x293   : > { %v3092_v22 = vsel %vm2849_vm6, %v3069_v45, %v3091_v20  ;;  %v4087_v6 = vrot.slane %v4085_v21, 1 }
 0x294   : > { %3621 = vmatmul.mubr.bf16.gmra.mxu1 %v3070_v28  ;;  %v9322_v28 = vsel %vm2849_vm6, %v3263_v5, %v3285_v12  ;;  %v9333_v5 = vsel %vm2849_vm6, %v3285_v12, %v9324_v16  ;;  %v6754_v41 = vpop.f32.mrf.mxu0  ;;  %v3123_v12 = vsel %vm2849_vm6, %v9297_v53, %v3122_v13 }
 0x295   : > { %3628 = vmatprep.mubr.bf16.mxu1 %v3101_v9  ;;  %v10705_v9 = vrot.slane %v10700_v37, 1  ;;  %v2547_v31 = vpop.f32.mrf.mxu1  ;;  %v3113_v41 = vor.u32 %v3112_v57, %v3111_v32  ;;  %v1326_v32 = vrot.slane %v8723_v47, 1 }
 0x296   : > { %v9335_v14 = vadd.f32 %v2747_v17, %v2547_v31  ;;  %v3140_v17 = vrot.slane %v3138_v4, 2  ;;  %v3143_v31 = vrot.slane %v3141_v2, 3  ;;  %v2758_v33 = vpop.f32.mrf.mxu0 }
 0x297   : > { %v3985_v10 = vsel %vm1384_vm1, %v3982_v55, %v10705_v9  ;;  %v2549_v50 = vpop.f32.mrf.mxu1  ;;  %v10708_v55 = vld [vmem:[#allocation55_spill] sm:$0xff]  ;;  %v4083_v9 = vshrl.u32 %v3983_v61, 16  ;;  %v10709_v61 = vld [vmem:[#allocation21_spill] sm:$0xff] }
 0x298   : > { %10707 = vst [vmem:[#allocation31_spill] sm:$0xff] %v9335_v14  ;;  %v4090_v39 = vshll.u32 %v3985_v10, 16  ;;  %v1314_v0 = vor.u32 %v10708_v55, %v1310_v42  ;;  %v10520_v21 = vrot.slane %v10709_v61, 1  ;;  %v6755_v53 = vpop.f32.mrf.mxu0  ;;  %v3144_v4 = vor.u32 %v3143_v31, %v3140_v17 }
 0x299   : > { %6861 = vmatmul.mubr.bf16.gmra.mxu0 %v9185_v25  ;;  %v2550_v29 = vpop.f32.mrf.mxu1  ;;  %v4088_v42 = vor.u32 %v4087_v6, %v4083_v9  ;;  %v3133_v17 = vrot.slane %v10702_v35, 2  ;;  %v3134_v31 = vrot.slane %v10693_v26, 3 }
 0x29a   : > { %v4092_v14 = vrot.slane %v4090_v39, 1  ;;  %6864 = vmatprep.mubr.msk.bf16.mxu0 %vm7581_vm0, %v10554_v49  ;;  %v1319_v45 = vsel %vm1195_vm5, %v1314_v0, %v1318_v24  ;;  %v9358_v6 = vsel %vm1384_vm1, %v10711_v19, %v10520_v21  ;;  %v3114_v0 = vsel %vm2849_vm6, %v3091_v20, %v3113_v41 }
 0x29b   : > { %v2552_v50 = vpop.f32.mrf.mxu1  ;;  %v3160_v2 = vshrl.u32 %v1319_v45, 16  ;;  %v3163_v39 = vshll.u32 %v1319_v45, 16  ;;  %v4106_v57 = vshll.u32 %v9358_v6, 16 }
 0x29c   : > { %3629 = vmatmul.mubr.bf16.gmra.mxu1 %v3092_v22  ;;  %v9348_v22 = vadd.f32 %v2750_v60, %v2550_v29  ;;  %v9351_v25 = vsel %vm1195_vm5, %v4088_v42, %v4092_v14  ;;  %v4102_v60 = vshrl.u32 %v3985_v10, 16  ;;  %v10712_v42 = vld [vmem:[#allocation59_spill] sm:$0xff]  ;;  %v3145_v10 = vsel %vm2849_vm6, %v3122_v13, %v3144_v4 }
 0x29d   : > { %3636 = vmatprep.mubr.bf16.mxu1 %v3123_v12  ;;  %v2763_v12 = vpop.f32.mrf.mxu0  ;;  %v1322_v53 = vor.u32 %v10712_v42, %v1318_v24  ;;  %v9368_v19 = vrot.slane %v4106_v57, 1  ;;  %v3162_v21 = vrot.slane %v3160_v2, 2  ;;  %v3165_v20 = vrot.slane %v3163_v39, 3 }
 0x29e   : > { %10710 = vst [vmem:[#allocation47_spill] sm:$0xff] %v9348_v22  ;;  %v2555_v9 = vpop.f32.mrf.mxu1  ;;  %v4104_v50 = vor.u32 %v4102_v60, %v4092_v14  ;;  %v3135_v14 = vor.u32 %v3134_v31, %v3133_v17  ;;  %v1334_v60 = vrot.slane %v8773_v58, 1 }
 0x29f   : > { %v6758_v29 = vpop.f32.mrf.mxu0  ;;  %v9365_v45 = vadd.f32 %v2755_v27, %v2555_v9  ;;  %v1327_v26 = vsel %vm1195_vm5, %v1322_v53, %v1326_v32  ;;  %v3156_v9 = vrot.slane %v10701_v38, 3 }
 0x2a0   : > { %v2557_v22 = vpop.f32.mrf.mxu1  ;;  %v9377_v35 = vsel %vm1195_vm5, %v4104_v50, %v9368_v19  ;;  %v3182_v39 = vshrl.u32 %v1327_v26, 16  ;;  %v3136_v57 = vsel %vm2849_vm6, %v3113_v41, %v3135_v14  ;;  %v1330_v29 = vor.u32 %v8729_v43, %v1326_v32 }
 0x2a1   : > { %6865 = vmatmul.mubr.bf16.gmra.mxu0 %v9206_v48  ;;  %v2766_v52 = vpop.f32.mrf.mxu0  ;;  %v3166_v48 = vor.u32 %v3165_v20, %v3162_v21  ;;  %v3185_v22 = vshll.u32 %v1327_v26, 16 }
 0x2a2   : > { %6868 = vmatprep.mubr.msk.bf16.mxu0 %vm7581_vm0, %v10554_v49  ;;  %v2558_v27 = vpop.f32.mrf.mxu1  ;;  %v1335_v41 = vsel %vm1195_vm5, %v1330_v29, %v1334_v60 }
 0x2a3   : > { %v6759_v24 = vpop.f32.mrf.mxu0  ;;  %v9379_v13 = vadd.f32 %v2758_v33, %v2558_v27  ;;  %v3167_v53 = vsel %vm2849_vm6, %v3144_v4, %v3166_v48  ;;  %v3184_v33 = vrot.slane %v3182_v39, 2  ;;  %v3187_v21 = vrot.slane %v3185_v22, 3 }
 0x2a4   : > { %3637 = vmatmul.mubr.bf16.gmra.mxu1 %v3114_v0  ;;  %v2560_v2 = vpop.f32.mrf.mxu1  ;;  %v3155_v0 = vrot.slane %v10708_v55, 2  ;;  %v3204_v20 = vshrl.u32 %v1335_v41, 16  ;;  %v3207_v4 = vshll.u32 %v1335_v41, 16  ;;  %v1342_v27 = vrot.slane %v8805_v30, 1 }
 0x2a5   : > { %3644 = vmatprep.mubr.bf16.mxu1 %v3145_v10  ;;  %v3188_v10 = vor.u32 %v3187_v21, %v3184_v33  ;;  %v3177_v22 = vrot.slane %v10712_v42, 2 }
 0x2a6   : > { %v3157_v38 = vor.u32 %v3156_v9, %v3155_v0  ;;  %v10713_v0 = vld [vmem:[#allocation63_spill] sm:$0xff]  ;;  %v3209_v33 = vrot.slane %v3207_v4, 3 }
 0x2a7   : > { %v1338_v9 = vor.u32 %v10713_v0, %v1334_v60  ;;  %v3189_v29 = vsel %vm2849_vm6, %v3166_v48, %v3188_v10 }
 0x2a8   : > { %v3158_v2 = vsel %vm2849_vm6, %v3135_v14, %v3157_v38 }
 0x2a9   : > { %6869 = vmatmul.mubr.bf16.gmra.mxu0 %v9222_v40  ;;  %v2563_v17 = vpop.f32.mrf.mxu1  ;;  %v2771_v31 = vpop.f32.mrf.mxu0  ;;  %v1343_v42 = vsel %vm1195_vm5, %v1338_v9, %v1342_v27 }
 0x2aa   : > { %6872 = vmatprep.mubr.msk.bf16.mxu0 %vm7581_vm0, %v10554_v49  ;;  %v9391_v55 = vadd.f32 %v2763_v12, %v2563_v17  ;;  %v3178_v12 = vrot.slane %v10706_v18, 3  ;;  %v3229_v48 = vshll.u32 %v1343_v42, 16 }
 0x2ab   : > { %v2565_v50 = vpop.f32.mrf.mxu1  ;;  %v6762_v32 = vpop.f32.mrf.mxu0 }
 0x2ac   : > { %3645 = vmatmul.mubr.bf16.gmra.mxu1 %v3136_v57  ;;  %v3179_v18 = vor.u32 %v3178_v12, %v3177_v22  ;;  %v3226_v50 = vshrl.u32 %v1343_v42, 16  ;;  %v10714_v22 = vld [vmem:[#allocation65_spill] sm:$0xff] }
 0x2ad   : > { %3652 = vmatprep.mubr.bf16.mxu1 %v3167_v53  ;;  %v2566_v26 = vpop.f32.mrf.mxu1  ;;  %v2774_v40 = vpop.f32.mrf.mxu0  ;;  %v3206_v53 = vrot.slane %v3204_v20, 2  ;;  %v1350_v20 = vrot.slane %v8848_v44, 1  ;;  %v1346_v12 = vor.u32 %v10714_v22, %v1342_v27 }
 0x2ae   : > { %v9394_v24 = vadd.f32 %v2766_v52, %v2566_v26  ;;  %v3180_v26 = vsel %vm2849_vm6, %v3157_v38, %v3179_v18 }
 0x2af   : > { %v2568_v39 = vpop.f32.mrf.mxu1  ;;  %v6763_v57 = vpop.f32.mrf.mxu0  ;;  %v3210_v41 = vor.u32 %v3209_v33, %v3206_v53  ;;  %v3231_v53 = vrot.slane %v3229_v48, 3  ;;  %v1351_v38 = vsel %vm1195_vm5, %v1346_v12, %v1350_v20 }
 0x2b0   : > { %v3199_v39 = vrot.slane %v8729_v43, 2  ;;  %v3248_v42 = vshrl.u32 %v1351_v38, 16 }
 0x2b1   : > { %6873 = vmatmul.mubr.bf16.gmra.mxu0 %v9242_v23  ;;  %v2571_v52 = vpop.f32.mrf.mxu1  ;;  %v2779_v14 = vpop.f32.mrf.mxu0  ;;  %v3211_v9 = vsel %vm2849_vm6, %v3188_v10, %v3210_v41 }
 0x2b2   : > { %6876 = vmatprep.mubr.msk.bf16.mxu0 %vm7581_vm0, %v10554_v49  ;;  %v9405_v21 = vadd.f32 %v2771_v31, %v2571_v52  ;;  %v3200_v31 = vrot.slane %v8723_v47, 3 }
 0x2b3   : > { %v2573_v17 = vpop.f32.mrf.mxu1  ;;  %v6766_v60 = vpop.f32.mrf.mxu0 }
 0x2b4   : > { %3653 = vmatmul.mubr.bf16.gmra.mxu1 %v3158_v2  ;;  %v3201_v33 = vor.u32 %v3200_v31, %v3199_v39  ;;  %v3251_v17 = vshll.u32 %v1351_v38, 16 }
 0x2b5   : > { %3660 = vmatprep.mubr.bf16.mxu1 %v3189_v29  ;;  %v2574_v32 = vpop.f32.mrf.mxu1  ;;  %v2782_v23 = vpop.f32.mrf.mxu0  ;;  %v3228_v29 = vrot.slane %v3226_v50, 2 }
 0x2b6   : > { %v9408_v4 = vadd.f32 %v2774_v40, %v2574_v32  ;;  %v3202_v50 = vsel %vm2849_vm6, %v3179_v18, %v3201_v33  ;;  %v3221_v32 = vrot.slane %v10713_v0, 2  ;;  %v3253_v12 = vrot.slane %v3251_v17, 3 }
 0x2b7   : > { %v2576_v2 = vpop.f32.mrf.mxu1  ;;  %v6767_v57 = vpop.f32.mrf.mxu0  ;;  %v3232_v52 = vor.u32 %v3231_v53, %v3228_v29 }
 0x2b8   : > { %v1354_v2 = vor.u32 %v8853_v34, %v1350_v20  ;;  %v3250_v57 = vrot.slane %v3248_v42, 2  ;;  %v3244_v42 = vrot.slane %v8805_v30, 3 }
 0x2b9   : > { %6877 = vmatmul.mubr.bf16.gmra.mxu0 %v9263_v54  ;;  %v1358_v54 = vrot.slane %v8931_v63, 1 }
 0x2ba   : > { %6880 = vmatprep.mubr.msk.bf16.mxu0 %vm7581_vm0, %v10554_v49  ;;  %v3254_v20 = vor.u32 %v3253_v12, %v3250_v57 }
 0x2bb   : > { %v2787_v40 = vpop.f32.mrf.mxu0  ;;  %v1359_v0 = vsel %vm1195_vm5, %v1354_v2, %v1358_v54 }
 0x2bc   : > { %3661 = vmatmul.mubr.bf16.gmra.mxu1 %v3180_v26  ;;  %v3222_v26 = vrot.slane %v8773_v58, 3  ;;  %v3270_v29 = vshrl.u32 %v1359_v0, 16  ;;  %v3273_v53 = vshll.u32 %v1359_v0, 16  ;;  %v3255_v17 = vsel %vm2849_vm6, %v3232_v52, %v3254_v20 }
 0x2bd   : > { %3668 = vmatprep.mubr.bf16.mxu1 %v3211_v9  ;;  %v2579_v43 = vpop.f32.mrf.mxu1  ;;  %v6770_v27 = vpop.f32.mrf.mxu0 }
 0x2be   : > { %v9419_v47 = vadd.f32 %v2779_v14, %v2579_v43  ;;  %v3233_v14 = vsel %vm2849_vm6, %v3210_v41, %v3232_v52  ;;  %v3223_v58 = vor.u32 %v3222_v26, %v3221_v32  ;;  %v3243_v27 = vrot.slane %v10714_v22, 2 }
 0x2bf   : > { %v2581_v10 = vpop.f32.mrf.mxu1  ;;  %v2790_v60 = vpop.f32.mrf.mxu0 }
 0x2c0   : > { %v3224_v38 = vsel %vm2849_vm6, %v3201_v33, %v3223_v58  ;;  %v3245_v33 = vor.u32 %v3244_v42, %v3243_v27  ;;  %v10715_v27 = vshll.u32 %v10704_v46, 16  ;;  %v3287_v42 = vrot.slane %v8885_v1, 2 }
 0x2c1   : > { %v2582_v48 = vpop.f32.mrf.mxu1  ;;  %6881 = vmatmul.mubr.bf16.gmra.mxu0 %v9279_v36  ;;  %v6771_v31 = vpop.f32.mrf.mxu0 }
 0x2c2   : > { %v9428_v39 = vadd.f32 %v2782_v23, %v2582_v48  ;;  %6884 = vmatprep.mubr.msk.bf16.mxu0 %vm7581_vm0, %v10554_v49  ;;  %v3275_v48 = vrot.slane %v3273_v53, 3  ;;  %v3246_v57 = vsel %vm2849_vm6, %v3223_v58, %v3245_v33 }
 0x2c3   : > { %v2584_v9 = vpop.f32.mrf.mxu1 }
 0x2c4   : > { %3669 = vmatmul.mubr.bf16.gmra.mxu1 %v3202_v50  ;;  %v3272_v50 = vrot.slane %v3270_v29, 2  ;;  %v3266_v9 = vrot.slane %v8848_v44, 3 }
 0x2c5   : > { %3676 = vmatprep.mubr.bf16.mxu1 %v3233_v14 }
 0x2c6   : > { %v2795_v36 = vpop.f32.mrf.mxu0  ;;  %v3276_v2 = vor.u32 %v3275_v48, %v3272_v50 }
 0x2c7   : > { %v2587_v18 = vpop.f32.mrf.mxu1 }
 0x2c8   : > { %v9433_v41 = vadd.f32 %v2787_v40, %v2587_v18  ;;  %v6774_v43 = vpop.f32.mrf.mxu0  ;;  %v1362_v40 = vor.u32 %v8885_v1, %v1358_v54  ;;  %v3277_v0 = vsel %vm2849_vm6, %v3254_v20, %v3276_v2  ;;  %v3916_v20 = vrot.slane %v10715_v27, 1 }
 0x2c9   : > { %v2589_v23 = vpop.f32.mrf.mxu1  ;;  %6885 = vmatmul.mubr.bf16.gmra.mxu0 %v9302_v56  ;;  %v10717_v1 = vshrl.u32 %v10704_v46, 16 }
 0x2ca   : > { %v2798_v26 = vpop.f32.mrf.mxu0  ;;  %6888 = vmatprep.mubr.msk.bf16.mxu0 %vm7581_vm0, %v10554_v49  ;;  %v3292_v14 = vshrl.u32 %v1362_v40, 16  ;;  %v3295_v52 = vshll.u32 %v1362_v40, 16 }
 0x2cb   : > { %v2590_v10 = vpop.f32.mrf.mxu1 }
 0x2cc   : > { %3677 = vmatmul.mubr.bf16.gmra.mxu1 %v3224_v38  ;;  %v9441_v32 = vadd.f32 %v2790_v60, %v2590_v10  ;;  %v6775_v30 = vpop.f32.mrf.mxu0  ;;  %v3265_v60 = vrot.slane %v8853_v34, 2  ;;  %v3294_v18 = vrot.slane %v3292_v14, 2  ;;  %v3297_v29 = vrot.slane %v3295_v52, 3 }
 0x2cd   : > { %3684 = vmatprep.mubr.bf16.mxu1 %v3255_v17  ;;  %v2592_v22 = vpop.f32.mrf.mxu1  ;;  %v3288_v17 = vrot.slane %v8931_v63, 3  ;;  %v10716_v10 = vshll.u32 %v10698_v59, 16  ;;  %v10718_v63 = vshll.u32 %v10700_v37, 16 }
 0x2ce   : > { %v3267_v34 = vor.u32 %v3266_v9, %v3265_v60  ;;  %v3298_v43 = vor.u32 %v3297_v29, %v3294_v18 }
 0x2cf   : > { %v2595_v31 = vpop.f32.mrf.mxu1  ;;  %v3918_v50 = vrot.slane %v10716_v10, 1  ;;  %v3921_v30 = vrot.slane %v10718_v63, 1 }
 0x2d0   : > { %v9445_v56 = vadd.f32 %v2795_v36, %v2595_v31  ;;  %v3299_v40 = vsel %vm2849_vm6, %v3276_v2, %v3298_v43  ;;  %v3289_v31 = vor.u32 %v3288_v17, %v3287_v42 }
 0x2d1   : > { %v2597_v12 = vpop.f32.mrf.mxu1  ;;  %v2803_v54 = vpop.f32.mrf.mxu0  ;;  %6889 = vmatmul.mubr.bf16.gmra.mxu0 %v9322_v28  ;;  %v3268_v28 = vsel %vm2849_vm6, %v3245_v33, %v3267_v34  ;;  %v3917_v33 = vor.u32 %v3916_v20, %v10717_v1 }
 0x2d2   : > { %6892 = vmatprep.mubr.msk.bf16.mxu0 %vm7581_vm0, %v10554_v49  ;;  %v3290_v29 = vsel %vm2849_vm6, %v3267_v34, %v3289_v31  ;;  %v10721_v34 = vshrl.u32 %v10700_v37, 16 }
 0x2d3   : > { %v2598_v53 = vpop.f32.mrf.mxu1  ;;  %v6778_v23 = vpop.f32.mrf.mxu0  ;;  %v9474_v2 = vsel %vm1195_vm5, %v3917_v33, %v3918_v50  ;;  %v7316_v33 = vld [vmem:[#allocation10 + $0x38] sm:$0xff]  }
 0x2d4   : > { %3685 = vmatmul.mubr.bf16.gmra.mxu1 %v3246_v57  ;;  %v9454_v58 = vadd.f32 %v2798_v26, %v2598_v53  ;;  %v4073_v18 = vshll.u32 %v9474_v2, 16  ;;  %v3923_v42 = vor.u32 %v3921_v30, %v10721_v34 }
 0x2d5   : > { %3692 = vmatprep.mubr.bf16.mxu1 %v3277_v0  ;;  %v2600_v36 = vpop.f32.mrf.mxu1  ;;  %v2806_v38 = vpop.f32.mrf.mxu0 }
 0x2d7   : > { %v6779_v44 = vpop.f32.mrf.mxu0 }
 0x2d9   : > { %v2811_v26 = vpop.f32.mrf.mxu0  ;;  %6893 = vmatmul.mubr.bf16.gmra.mxu0 %v9333_v5  ;;  %v10719_v5 = vshrl.u32 %v10698_v59, 16 }
 0x2da   : > { %6896 = vmatprep.mubr.msk.bf16.mxu0 %vm7581_vm0, %v10554_v49 }
 0x2db   : > { %v6782_v52 = vpop.f32.mrf.mxu0  ;;  %v3920_v57 = vor.u32 %v3918_v50, %v10719_v5 }
 0x2dc   : > { %v2603_v48 = vpop.f32.mrf.mxu1  ;;  %3693 = vmatmul.mubr.bf16.gmra.mxu1 %v3268_v28  ;;  %v4075_v28 = vrot.slane %v4073_v18, 1  ;;  %v10722_v52 = vld [vmem:[#allocation23_spill] sm:$0xff]  ;;  %v10724_v18 = vshrl.u32 %v10709_v61, 16 }
 0x2dd   : > { %v9465_v22 = vadd.f32 %v2803_v54, %v2603_v48  ;;  %3700 = vmatprep.mubr.bf16.mxu1 %v3299_v40  ;;  %v2814_v54 = vpop.f32.mrf.mxu0  ;;  %v9481_v9 = vsel %vm1195_vm5, %v3920_v57, %v3921_v30  ;;  %v3988_v5 = vrot.slane %v10722_v52, 1 }
 0x2de   : > { %v2605_v14 = vpop.f32.mrf.mxu1  ;;  %v4078_v59 = vshll.u32 %v9481_v9, 16 }
 0x2df   : > { %v6783_v0 = vpop.f32.mrf.mxu0 }
 0x2e0   : > { %v2606_v12 = vpop.f32.mrf.mxu1  ;;  %v4080_v50 = vrot.slane %v4078_v59, 1  ;;  %v7317_v0 = vld [vmem:[#allocation10 + $0x30] sm:$0xff]  }
 0x2e1   : > { %v9478_v60 = vadd.f32 %v2806_v38, %v2606_v12  ;;  %v2819_v23 = vpop.f32.mrf.mxu0  ;;  %6897 = vmatmul.mubr.bf16.gmra.mxu0 %v9324_v16  ;;  %v10720_v38 = vshll.u32 %v10709_v61, 16  ;;  %v4071_v16 = vshrl.u32 %v9474_v2, 16  ;;  %v10723_v12 = vshll.u32 %v10722_v52, 16 }
 0x2e2   : > { %v2608_v46 = vpop.f32.mrf.mxu1  ;;  %6916 = vmatprep.mubr.msk.bf16.mxu0 %vm7581_vm0, %v10554_v49 }
 0x2e3   : > { %v3924_v44 = vrot.slane %v10720_v38, 1  ;;  %v6786_v20 = vpop.f32.mrf.mxu0  ;;  %v4076_v1 = vor.u32 %v4075_v28, %v4071_v16  ;;  %v10725_v38 = vrot.slane %v10709_v61, 1 }
 0x2e4   : > { %v2611_v53 = vpop.f32.mrf.mxu1  ;;  %3701 = vmatmul.mubr.bf16.gmra.mxu1 %v3290_v29 }
 0x2e5   : > { %v9487_v36 = vadd.f32 %v2811_v26, %v2611_v53  ;;  %3708 = vmatprep.mubr.bf16.mxu1 %v3298_v43  ;;  %v2822_v10 = vpop.f32.mrf.mxu0  ;;  %v9499_v43 = vsel %vm1195_vm5, %v3923_v42, %v3924_v44  ;;  %v4081_v14 = vsel %vm1195_vm5, %v4076_v1, %v4080_v50  ;;  %v10726_v1 = vld [vmem:[#allocation25_spill] sm:$0xff] }
 0x2e6   : > { %v2613_v27 = vpop.f32.mrf.mxu1  ;;  %v4098_v30 = vshll.u32 %v9499_v43, 16 }
 0x2e7   : > { %v6787_v26 = vpop.f32.mrf.mxu0  ;;  %v9518_v27 = vsel %vm1384_vm1, %v10725_v38, %v3988_v5 }
 0x2e8   : > { %v2614_v17 = vpop.f32.mrf.mxu1  ;;  %v4100_v59 = vrot.slane %v4098_v30, 1  ;;  %v4122_v16 = vshll.u32 %v9518_v27, 16 }
 0x2e9   : > { %v9496_v48 = vadd.f32 %v2814_v54, %v2614_v17  ;;  %v2827_v37 = vpop.f32.mrf.mxu0  ;;  %6917 = vmatmul.mubr.bf16.vlgmr.msra.gmra.mxu0 %v9351_v25  ;;  %v3927_v54 = vrot.slane %v10723_v12, 1  ;;  %v3926_v25 = vor.u32 %v3924_v44, %v10724_v18  ;;  %v7318_v17 = vld [vmem:[#allocation10 + $0x28] sm:$0xff]   ;;  %v10728_v18 = vshrl.u32 %v10722_v52, 16 }
 0x2ea   : > { %v2616_v40 = vpop.f32.mrf.mxu1  ;;  %6920 = vmatprep.mubr.msk.bf16.mxu0 %vm7581_vm0, %v10554_v49  ;;  %7001 = vmatpush3.bf16.msra.mxu0 %v7316_v33 }
 0x2eb   : > { %7002 = vmatprep.subr.bf16.mxu0 %v10554_v49  ;;  %v9523_v28 = vsel %vm1195_vm5, %v3926_v25, %v3927_v54  ;;  %v3929_v25 = vor.u32 %v3927_v54, %v10728_v18 }
 0x2ec   : > { %v2619_v63 = vpop.f32.mrf.mxu1  ;;  %3709 = vmatmul.mubr.bf16.gmra.mxu1 %v3289_v31  ;;  %v6790_v31 = vpop.f32.mrf.mxu0 }
 0x2ed   : > { %v9505_v57 = vadd.f32 %v2819_v23, %v2619_v63  ;;  %4643 = vmatprep.mubr.bf16.mxu1 %v4081_v14  ;;  %v4094_v23 = vshrl.u32 %v9481_v9, 16  ;;  %v3990_v63 = vrot.slane %v10726_v1, 1  ;;  %v4124_v31 = vrot.slane %v4122_v16, 1 }
 0x2ee   : > { %v2621_v46 = vpop.f32.mrf.mxu1  ;;  %v2830_v53 = vpop.f32.mrf.mxu0  ;;  %7003 = vmatpush3.bf16.msra.mxu0 %v7317_v0 }
 0x2ef   : > { %v4096_v44 = vor.u32 %v4094_v23, %v4080_v50  ;;  %7004 = vmatprep.subr.bf16.mxu0 %v10554_v49  ;;  %v10727_v50 = vshll.u32 %v10726_v1, 16  ;;  %v7319_v46 = vld [vmem:[#allocation10 + $0x20] sm:$0xff]   ;;  %v4110_v23 = vshrl.u32 %v9499_v43, 16 }
 0x2f0   : > { %v2622_v29 = vpop.f32.mrf.mxu1  ;;  %v6791_v42 = vpop.f32.mrf.mxu0 }
 0x2f1   : > { %v9520_v20 = vadd.f32 %v2822_v10, %v2622_v29  ;;  %v4101_v61 = vsel %vm1195_vm5, %v4096_v44, %v4100_v59  ;;  %6921 = vmatmul.mubr.bf16.gmra.mxu0 %v9377_v35  ;;  %v4114_v10 = vshll.u32 %v9523_v28, 16  ;;  %v3930_v30 = vrot.slane %v10727_v50, 1 }
 0x2f2   : > { %v2624_v34 = vpop.f32.mrf.mxu1  ;;  %v2835_v26 = vpop.f32.mrf.mxu0  ;;  %6924 = vmatprep.mubr.msk.bf16.mxu0 %vm7581_vm0, %v10554_v49  ;;  %7005 = vmatpush3.bf16.msra.mxu0 %v7318_v17  ;;  %v4118_v35 = vshrl.u32 %v9358_v6, 16  ;;  %v4112_v44 = vor.u32 %v4110_v23, %v4100_v59  ;;  %v10729_v59 = vld [vmem:[#allocation27_spill] sm:$0xff] }
 0x2f3   : > { %7006 = vmatprep.subr.bf16.mxu0 %v10554_v49  ;;  %v4116_v38 = vrot.slane %v4114_v10, 1  ;;  %v9545_v34 = vsel %vm1384_vm1, %v3988_v5, %v3990_v63  ;;  %v9551_v42 = vsel %vm1195_vm5, %v3929_v25, %v3930_v30  ;;  %v10730_v50 = vshll.u32 %v10729_v59, 16 }
 0x2f4   : > { %v2627_v40 = vpop.f32.mrf.mxu1  ;;  %4644 = vmatmul.mubr.bf16.vlgmr.msra.gmra.mxu1 %v9474_v2  ;;  %v6794_v2 = vpop.f32.mrf.mxu0  ;;  %v4120_v6 = vor.u32 %v4118_v35, %v9368_v19  ;;  %v10731_v25 = vshrl.u32 %v10726_v1, 16 }
 0x2f5   : > { %v9532_v14 = vadd.f32 %v2827_v37, %v2627_v40  ;;  %4651 = vmatprep.mubr.bf16.mxu1 %v4101_v61  ;;  %7108 = vmatpush3.bf16.msra.mxu1 %v7316_v33  ;;  %v4138_v40 = vshll.u32 %v9545_v34, 16  ;;  %v4117_v19 = vsel %vm1195_vm5, %v4112_v44, %v4116_v38  ;;  %v4130_v61 = vshll.u32 %v9551_v42, 16 }
 0x2f6   : > { %v2629_v12 = vpop.f32.mrf.mxu1  ;;  %7101 = vmatprep.subr.bf16.mxu1 %v10554_v49  ;;  %v2838_v29 = vpop.f32.mrf.mxu0  ;;  %7007 = vmatpush3.bf16.msra.mxu0 %v7319_v46  ;;  %v4125_v16 = vsel %vm1195_vm5, %v4120_v6, %v4124_v31  ;;  %v4126_v6 = vshrl.u32 %v9523_v28, 16 }
 0x2f7   : > { %7008 = vmatprep.subr.bf16.mxu0 %v10554_v49  ;;  %v3933_v12 = vrot.slane %v10730_v50, 1  ;;  %v4140_v18 = vrot.slane %v4138_v40, 1  ;;  %v10732_v50 = vld [vmem:[#allocation30_spill] sm:$0xff] }
 0x2f8   : > { %v2630_v37 = vpop.f32.mrf.mxu1  ;;  %v6795_v54 = vpop.f32.mrf.mxu0  ;;  %v4128_v1 = vor.u32 %v4126_v6, %v4116_v38 }
 0x2f9   : > { %v9547_v33 = vadd.f32 %v2830_v53, %v2630_v37  ;;  %7109 = vmatpush3.bf16.msra.mxu1 %v7317_v0  ;;  %6925 = vmatmul.mubr.bf16.gmra.mxu0 %v4125_v16  ;;  %v3992_v0 = vrot.slane %v10729_v59, 1  ;;  %v3932_v37 = vor.u32 %v3930_v30, %v10731_v25 }
 0x2fa   : > { %v2632_v52 = vpop.f32.mrf.mxu1  ;;  %7102 = vmatprep.subr.bf16.mxu1 %v10554_v49  ;;  %v2843_v53 = vpop.f32.mrf.mxu0  ;;  %6928 = vmatprep.mubr.msk.bf16.mxu0 %vm7581_vm0, %v10554_v49 }
 0x2fb   : > { %v4132_v52 = vrot.slane %v4130_v61, 1  ;;  %v9573_v54 = vsel %vm1384_vm1, %v3990_v63, %v3992_v0 }
 0x2fc   : > { %v2635_v5 = vpop.f32.mrf.mxu1  ;;  %4652 = vmatmul.mubr.bf16.gmra.mxu1 %v9481_v9  ;;  %v6798_v35 = vpop.f32.mrf.mxu0  ;;  %v4134_v9 = vshrl.u32 %v9518_v27, 16 }
 0x2fd   : > { %v9561_v10 = vadd.f32 %v2835_v26, %v2635_v5  ;;  %4659 = vmatprep.mubr.bf16.mxu1 %v4117_v19  ;;  %7110 = vmatpush3.bf16.msra.mxu1 %v7318_v17  ;;  %v9578_v17 = vsel %vm1195_vm5, %v3932_v37, %v3933_v12  ;;  %v4154_v5 = vshll.u32 %v9573_v54, 16  ;;  %v7320_v19 = vld [vmem:[#allocation10 + $0x18] sm:$0xff]   ;;  %v4133_v63 = vsel %vm1195_vm5, %v4128_v1, %v4132_v52 }
 0x2fe   : > { %v2637_v2 = vpop.f32.mrf.mxu1  ;;  %7103 = vmatprep.subr.bf16.mxu1 %v10554_v49  ;;  %v2846_v23 = vpop.f32.mrf.mxu0  ;;  %v4136_v16 = vor.u32 %v4134_v9, %v4124_v31  ;;  %7009 = vmatpush3.bf16.msra.mxu0 %v7320_v19 }
 0x2ff   : > { %v3994_v2 = vrot.slane %v10732_v50, 1  ;;  %v4156_v37 = vrot.slane %v4154_v5, 1  ;;  %7010 = vmatprep.subr.bf16.mxu0 %v10554_v49 }
 0x300   : > { %v2638_v26 = vpop.f32.mrf.mxu1  ;;  %v6799_v40 = vpop.f32.mrf.mxu0  ;;  %v4141_v30 = vsel %vm1195_vm5, %v4136_v16, %v4140_v18  ;;  %v4142_v16 = vshrl.u32 %v9551_v42, 16 }
 0x301   : > { %v9575_v44 = vadd.f32 %v2838_v29, %v2638_v26  ;;  %7111 = vmatpush3.bf16.msra.mxu1 %v7319_v46  ;;  %6929 = vmatmul.mubr.bf16.gmra.mxu0 %v4141_v30  ;;  %v4146_v29 = vshll.u32 %v9578_v17, 16  ;;  %v10733_v46 = vshll.u32 %v10732_v50, 16  ;;  %v10734_v26 = vshrl.u32 %v10729_v59, 16 }
 0x302   : > { %v2640_v27 = vpop.f32.mrf.mxu1  ;;  %7104 = vmatprep.subr.bf16.mxu1 %v10554_v49  ;;  %v3750_v31 = vpop.f32.mrf.mxu0  ;;  %6932 = vmatprep.mubr.msk.bf16.mxu0 %vm7581_vm0, %v10554_v49  ;;  %v9600_v40 = vsel %vm1384_vm1, %v3992_v0, %v3994_v2  ;;  %v4144_v59 = vor.u32 %v4142_v16, %v4132_v52  ;;  %v10737_v16 = vshrl.u32 %v10732_v50, 16 }
 0x303   : > { %v3936_v35 = vrot.slane %v10733_v46, 1  ;;  %v3935_v23 = vor.u32 %v3933_v12, %v10734_v26  ;;  %v4148_v27 = vrot.slane %v4146_v29, 1 }
 0x304   : > { %v2643_v61 = vpop.f32.mrf.mxu1  ;;  %4660 = vmatmul.mubr.bf16.gmra.mxu1 %v9499_v43  ;;  %v6818_v25 = vpop.f32.mrf.mxu0  ;;  %v4150_v43 = vshrl.u32 %v9545_v34, 16 }
 0x305   : > { %v9587_v38 = vadd.f32 %v2843_v53, %v2643_v61  ;;  %4667 = vmatprep.mubr.bf16.mxu1 %v4133_v63  ;;  %7112 = vmatpush3.bf16.msra.mxu1 %v7320_v19  ;;  %v9603_v30 = vsel %vm1195_vm5, %v3935_v23, %v3936_v35  ;;  %v4170_v19 = vshll.u32 %v9600_v40, 16  ;;  %v4149_v63 = vsel %vm1195_vm5, %v4144_v59, %v4148_v27 }
 0x306   : > { %v2645_v9 = vpop.f32.mrf.mxu1  ;;  %7105 = vmatprep.subr.bf16.mxu1 %v10554_v49  ;;  %v3753_v6 = vpop.f32.mrf.mxu0  ;;  %v4152_v1 = vor.u32 %v4150_v43, %v4140_v18  ;;  %v4162_v0 = vshll.u32 %v9603_v30, 16  ;;  %v10735_v18 = vld [vmem:[#allocation37_spill] sm:$0xff]  ;;  %v4166_v23 = vshrl.u32 %v9573_v54, 16 }
 0x307   : > { %v3996_v46 = vrot.slane %v10735_v18, 1  ;;  %v10736_v52 = vshll.u32 %v10735_v18, 16 }
 0x308   : > { %v2646_v53 = vpop.f32.mrf.mxu1  ;;  %v6819_v5 = vpop.f32.mrf.mxu0  ;;  %v4157_v12 = vsel %vm1195_vm5, %v4152_v1, %v4156_v37  ;;  %v3938_v1 = vor.u32 %v3936_v35, %v10737_v16  ;;  %v4164_v59 = vrot.slane %v4162_v0, 1 }
 0x309   : > { %6933 = vmatmul.mubr.bf16.gmra.mxu0 %v4157_v12  ;;  %v3939_v25 = vrot.slane %v10736_v52, 1  ;;  %v4172_v53 = vrot.slane %v4170_v19, 1  ;;  %v9623_v12 = vsel %vm1384_vm1, %v3994_v2, %v3996_v46 }
 0x30a   : > { %v2647_v34 = vpop.f32.mrf.mxu1  ;;  %v3758_v29 = vpop.f32.mrf.mxu0  ;;  %6936 = vmatprep.mubr.msk.bf16.mxu0 %vm7581_vm0, %v10554_v49  ;;  %v4186_v35 = vshll.u32 %v9623_v12, 16 }
 0x30c   : > { %v3550_v61 = vpop.f32.mrf.mxu1  ;;  %4668 = vmatmul.mubr.bf16.gmra.mxu1 %v9523_v28  ;;  %v6822_v26 = vpop.f32.mrf.mxu0 }
 0x30d   : > { %v3551_v9 = vadd.f32 %v3550_v61, %v9017_v15  ;;  %4675 = vmatprep.mubr.bf16.mxu1 %v4149_v63  ;;  %v4158_v15 = vshrl.u32 %v9578_v17, 16  ;;  %v4168_v63 = vor.u32 %v4166_v23, %v4156_v37  ;;  %v10738_v37 = vld [vmem:[#allocation41_spill] sm:$0xff] }
 0x30e   : > { %v3552_v43 = vpop.f32.mrf.mxu1  ;;  %v3761_v5 = vpop.f32.mrf.mxu0  ;;  %v3998_v26 = vrot.slane %v10738_v37, 1 }
 0x30f   : > { %v9616_v28 = vadd.f32 %v3750_v31, %v3551_v9  ;;  %v9627_v31 = vsel %vm1195_vm5, %v3938_v1, %v3939_v25  ;;  %v4160_v19 = vor.u32 %v4158_v15, %v4148_v27  ;;  %v4173_v50 = vsel %vm1195_vm5, %v4168_v63, %v4172_v53 }
 0x310   : > { %v3553_v34 = vpop.f32.mrf.mxu1  ;;  %v6823_v54 = vpop.f32.mrf.mxu0  ;;  %v4188_v15 = vrot.slane %v4186_v35, 1 }
 0x311   : > { %v3554_v61 = vadd.f32 %v3553_v34, %v9033_v11  ;;  %v4165_v2 = vsel %vm1195_vm5, %v4160_v19, %v4164_v59  ;;  %6937 = vmatmul.mubr.bf16.gmra.mxu0 %v4173_v50  ;;  %v4178_v11 = vshll.u32 %v9627_v31, 16  ;;  %v4182_v34 = vshrl.u32 %v9600_v40, 16 }
 0x312   : > { %v3555_v9 = vpop.f32.mrf.mxu1  ;;  %v3766_v0 = vpop.f32.mrf.mxu0  ;;  %6940 = vmatprep.mubr.msk.bf16.mxu0 %vm7581_vm0, %v10554_v49  ;;  %v4174_v19 = vshrl.u32 %v9603_v30, 16 }
 0x313   : > { %v9629_v52 = vadd.f32 %v3753_v6, %v3554_v61  ;;  %v10739_v6 = vshll.u32 %v10738_v37, 16  ;;  %v10740_v61 = vshrl.u32 %v10735_v18, 16  ;;  %v7321_v9 = vld [vmem:[#allocation10 + $0x10] sm:$0xff]   ;;  %v4180_v50 = vrot.slane %v4178_v11, 1 }
 0x314   : > { %v3558_v43 = vpop.f32.mrf.mxu1  ;;  %4676 = vmatmul.mubr.bf16.gmra.mxu1 %v9551_v42  ;;  %v6826_v1 = vpop.f32.mrf.mxu0  ;;  %7011 = vmatpush3.bf16.msra.mxu0 %v7321_v9 }
 0x315   : > { %v3559_v23 = vadd.f32 %v3558_v43, %v9063_v7  ;;  %4683 = vmatprep.mubr.bf16.mxu1 %v4165_v2  ;;  %v3942_v27 = vrot.slane %v10739_v6, 1  ;;  %v3941_v63 = vor.u32 %v3939_v25, %v10740_v61  ;;  %v9649_v43 = vsel %vm1384_vm1, %v3996_v46, %v3998_v26  ;;  %7113 = vmatpush3.bf16.msra.mxu1 %v7321_v9 }
 0x316   : > { %v3560_v16 = vpop.f32.mrf.mxu1  ;;  %v3769_v7 = vpop.f32.mrf.mxu0  ;;  %v4184_v6 = vor.u32 %v4182_v34, %v4172_v53  ;;  %v4176_v25 = vor.u32 %v4174_v19, %v4164_v59  ;;  %7106 = vmatprep.subr.bf16.mxu1 %v10554_v49  ;;  %7012 = vmatprep.subr.bf16.mxu0 %v10554_v49  ;;  %v4202_v11 = vshll.u32 %v9649_v43, 16  ;;  %v10741_v59 = vld [vmem:[#allocation46_spill] sm:$0xff] }
 0x317   : > { %v9642_v42 = vadd.f32 %v3758_v29, %v3559_v23  ;;  %v9653_v29 = vsel %vm1195_vm5, %v3941_v63, %v3942_v27  ;;  %v4000_v1 = vrot.slane %v10741_v59, 1 }
 0x318   : > { %v3561_v54 = vpop.f32.mrf.mxu1  ;;  %v6827_v18 = vpop.f32.mrf.mxu0  ;;  %v4189_v46 = vsel %vm1195_vm5, %v4184_v6, %v4188_v15  ;;  %v4181_v53 = vsel %vm1195_vm5, %v4176_v25, %v4180_v50  ;;  %v4194_v16 = vshll.u32 %v9653_v29, 16  ;;  %v4204_v19 = vrot.slane %v4202_v11, 1 }
 0x319   : > { %v3562_v2 = vadd.f32 %v3561_v54, %v9081_v8  ;;  %6941 = vmatmul.mubr.bf16.gmra.mxu0 %v4189_v46  ;;  %v4198_v54 = vshrl.u32 %v9623_v12, 16  ;;  %v9677_v46 = vsel %vm1384_vm1, %v3998_v26, %v4000_v1 }
 0x31a   : > { %v3563_v40 = vpop.f32.mrf.mxu1  ;;  %v3774_v23 = vpop.f32.mrf.mxu0  ;;  %6944 = vmatprep.mubr.msk.bf16.mxu0 %vm7581_vm0, %v10554_v49  ;;  %v4196_v25 = vrot.slane %v4194_v16, 1 }
 0x31b   : > { %v9657_v35 = vadd.f32 %v3761_v5, %v3562_v2  ;;  %v10742_v5 = vshll.u32 %v10741_v59, 16  ;;  %v10743_v2 = vshrl.u32 %v10738_v37, 16 }
 0x31c   : > { %v3566_v8 = vpop.f32.mrf.mxu1  ;;  %4684 = vmatmul.mubr.bf16.gmra.mxu1 %v9578_v17  ;;  %v6830_v9 = vpop.f32.mrf.mxu0 }
 0x31d   : > { %v3567_v34 = vadd.f32 %v3566_v8, %v9111_v51  ;;  %4691 = vmatprep.mubr.bf16.mxu1 %v4181_v53  ;;  %v3945_v61 = vrot.slane %v10742_v5, 1  ;;  %v3944_v6 = vor.u32 %v3942_v27, %v10743_v2  ;;  %v4190_v51 = vshrl.u32 %v9627_v31, 16 }
 0x31e   : > { %v3568_v63 = vpop.f32.mrf.mxu1  ;;  %v3777_v18 = vpop.f32.mrf.mxu0  ;;  %v4200_v53 = vor.u32 %v4198_v54, %v4188_v15  ;;  %v4218_v27 = vshll.u32 %v9677_v46, 16  ;;  %v10744_v15 = vld [vmem:[#allocation48_spill] sm:$0xff] }
 0x31f   : > { %v9670_v17 = vadd.f32 %v3766_v0, %v3567_v34  ;;  %v9681_v0 = vsel %vm1195_vm5, %v3944_v6, %v3945_v61  ;;  %v4192_v11 = vor.u32 %v4190_v51, %v4180_v50  ;;  %v4002_v9 = vrot.slane %v10744_v15, 1 }
 0x320   : > { %v3569_v40 = vpop.f32.mrf.mxu1  ;;  %v6831_v12 = vpop.f32.mrf.mxu0  ;;  %v4205_v37 = vsel %vm1195_vm5, %v4200_v53, %v4204_v19  ;;  %v4220_v51 = vrot.slane %v4218_v27, 1 }
 0x321   : > { %v3570_v8 = vadd.f32 %v3569_v40, %v9130_v62  ;;  %v4197_v26 = vsel %vm1195_vm5, %v4192_v11, %v4196_v25  ;;  %6945 = vmatmul.mubr.bf16.gmra.mxu0 %v4205_v37  ;;  %v4210_v62 = vshll.u32 %v9681_v0, 16  ;;  %v4214_v40 = vshrl.u32 %v9649_v43, 16 }
 0x322   : > { %v3571_v34 = vpop.f32.mrf.mxu1  ;;  %v3782_v16 = vpop.f32.mrf.mxu0  ;;  %6948 = vmatprep.mubr.msk.bf16.mxu0 %vm7581_vm0, %v10554_v49  ;;  %v9703_v37 = vsel %vm1384_vm1, %v4000_v1, %v4002_v9 }
 0x323   : > { %v9683_v5 = vadd.f32 %v3769_v7, %v3570_v8  ;;  %v10745_v7 = vshll.u32 %v10744_v15, 16  ;;  %v10746_v8 = vshrl.u32 %v10741_v59, 16  ;;  %v4212_v11 = vrot.slane %v4210_v62, 1 }
 0x324   : > { %v3574_v63 = vpop.f32.mrf.mxu1  ;;  %4692 = vmatmul.mubr.bf16.gmra.mxu1 %v9603_v30  ;;  %v6834_v6 = vpop.f32.mrf.mxu0 }
 0x325   : > { %v3575_v54 = vadd.f32 %v3574_v63, %v9161_v3  ;;  %4699 = vmatprep.mubr.bf16.mxu1 %v4197_v26  ;;  %v3948_v50 = vrot.slane %v10745_v7, 1  ;;  %v3947_v53 = vor.u32 %v3945_v61, %v10746_v8  ;;  %v4206_v3 = vshrl.u32 %v9653_v29, 16  ;;  %v10747_v63 = vld [vmem:[#allocation20_spill] sm:$0xff]  ;;  %v7322_v6 = vld [vmem:[#allocation10 + $0x8] sm:$0xff]  }
 0x326   : > { %v3576_v2 = vpop.f32.mrf.mxu1  ;;  %v3785_v12 = vpop.f32.mrf.mxu0  ;;  %v4216_v7 = vor.u32 %v4214_v40, %v4204_v19  ;;  %v4234_v61 = vshll.u32 %v9703_v37, 16  ;;  %v10749_v40 = vld [vmem:[#allocation52_spill] sm:$0xff]  ;;  %7114 = vmatpush3.bf16.msra.mxu1 %v7322_v6  ;;  %7013 = vmatpush3.bf16.msra.mxu0 %v7322_v6 }
 0x327   : > { %v9696_v30 = vadd.f32 %v3774_v23, %v3575_v54  ;;  %v9707_v23 = vsel %vm1195_vm5, %v3947_v53, %v3948_v50  ;;  %v4208_v27 = vor.u32 %v4206_v3, %v4196_v25  ;;  %v4004_v53 = vrot.slane %v10749_v40, 1  ;;  %7107 = vmatprep.subr.bf16.mxu1 %v10554_v49  ;;  %7014 = vmatprep.subr.bf16.mxu0 %v10554_v49 }
 0x328   : > { %v3577_v34 = vpop.f32.mrf.mxu1  ;;  %v6835_v43 = vpop.f32.mrf.mxu0  ;;  %v4221_v59 = vsel %vm1195_vm5, %v4216_v7, %v4220_v51  ;;  %v4226_v19 = vshll.u32 %v9707_v23, 16  ;;  %v4230_v7 = vshrl.u32 %v9677_v46, 16 }
 0x329   : > { %v3578_v26 = vadd.f32 %v3577_v34, %v10747_v63  ;;  %v4213_v1 = vsel %vm1195_vm5, %v4208_v27, %v4212_v11  ;;  %6949 = vmatmul.mubr.bf16.gmra.mxu0 %v4221_v59  ;;  %v10750_v34 = vld [vmem:[#allocation33_spill] sm:$0xff]  ;;  %v10753_v43 = vshrl.u32 %v10744_v15, 16 }
 0x32a   : > { %v3579_v54 = vpop.f32.mrf.mxu1  ;;  %v3790_v8 = vpop.f32.mrf.mxu0  ;;  %6952 = vmatprep.mubr.msk.bf16.mxu0 %vm7581_vm0, %v10554_v49 }
 0x32b   : > { %v9709_v2 = vadd.f32 %v3777_v18, %v3578_v26  ;;  %v10751_v18 = vshll.u32 %v10749_v40, 16  ;;  %v4236_v54 = vrot.slane %v4234_v61, 1  ;;  %v3950_v27 = vor.u32 %v3948_v50, %v10753_v43 }
 0x32c   : > { %v3582_v62 = vpop.f32.mrf.mxu1  ;;  %4700 = vmatmul.mubr.bf16.gmra.mxu1 %v9627_v31  ;;  %v6838_v26 = vpop.f32.mrf.mxu0 }
 0x32d   : > { %10748 = vst [vmem:[#allocation29_spill] sm:$0xff] %v9709_v2  ;;  %v3583_v25 = vadd.f32 %v3582_v62, %v10750_v34  ;;  %4707 = vmatprep.mubr.bf16.mxu1 %v4213_v1  ;;  %v3951_v3 = vrot.slane %v10751_v18, 1  ;;  %v4222_v1 = vshrl.u32 %v9681_v0, 16  ;;  %v4228_v34 = vrot.slane %v4226_v19, 1  ;;  %v10761_v2 = vld [vmem:[#allocation36_spill] sm:$0xff] }
 0x32e   : > { %v3584_v63 = vpop.f32.mrf.mxu1  ;;  %v3793_v62 = vpop.f32.mrf.mxu0  ;;  %v9731_v18 = vsel %vm1384_vm1, %v4002_v9, %v4004_v53 }
 0x32f   : > { %v9722_v31 = vadd.f32 %v3782_v16, %v3583_v25  ;;  %v10754_v16 = vld [vmem:[#allocation24_spill] sm:$0xff]  ;;  %v4232_v25 = vor.u32 %v4230_v7, %v4220_v51  ;;  %v9735_v46 = vsel %vm1195_vm5, %v3950_v27, %v3951_v3  ;;  %v4224_v61 = vor.u32 %v4222_v1, %v4212_v11  ;;  %v10756_v7 = vld [vmem:[#allocation58_spill] sm:$0xff] }
 0x330   : > { %v3585_v59 = vpop.f32.mrf.mxu1  ;;  %v6839_v50 = vpop.f32.mrf.mxu0  ;;  %v4250_v43 = vshll.u32 %v9731_v18, 16  ;;  %v4242_v51 = vshll.u32 %v9735_v46, 16  ;;  %v4006_v27 = vrot.slane %v10756_v7, 1 }
 0x331   : > { %10752 = vst [vmem:[#allocation51_spill] sm:$0xff] %v9722_v31  ;;  %v3586_v6 = vadd.f32 %v3585_v59, %v10754_v16  ;;  %v4237_v26 = vsel %vm1195_vm5, %v4232_v25, %v4236_v54  ;;  %v4229_v9 = vsel %vm1195_vm5, %v4224_v61, %v4228_v34  ;;  %v10757_v59 = vld [vmem:[#allocation22_spill] sm:$0xff]  ;;  %v4246_v25 = vshrl.u32 %v9703_v37, 16 }
 0x332   : > { %v3587_v15 = vpop.f32.mrf.mxu1  ;;  %v3798_v19 = vpop.f32.mrf.mxu0  ;;  %6953 = vmatmul.mubr.bf16.gmra.mxu0 %v4237_v26  ;;  %v10760_v50 = vshrl.u32 %v10749_v40, 16 }
 0x333   : > { %v9737_v63 = vadd.f32 %v3785_v12, %v3586_v6  ;;  %6956 = vmatprep.mubr.msk.bf16.mxu0 %vm7581_vm0, %v10554_v49  ;;  %v10758_v12 = vshll.u32 %v10756_v7, 16  ;;  %v4252_v15 = vrot.slane %v4250_v43, 1 }
 0x334   : > { %v3590_v31 = vpop.f32.mrf.mxu1  ;;  %4708 = vmatmul.mubr.bf16.gmra.mxu1 %v9653_v29  ;;  %v6842_v6 = vpop.f32.mrf.mxu0  ;;  %v3953_v61 = vor.u32 %v3951_v3, %v10760_v50 }
 0x335   : > { %10755 = vst [vmem:[#allocation34_spill] sm:$0xff] %v9737_v63  ;;  %v3591_v16 = vadd.f32 %v3590_v31, %v10757_v59  ;;  %4715 = vmatprep.mubr.bf16.mxu1 %v4229_v9  ;;  %v3954_v11 = vrot.slane %v10758_v12, 1  ;;  %v4238_v31 = vshrl.u32 %v9707_v23, 16  ;;  %v4244_v9 = vrot.slane %v4242_v51, 1 }
 0x336   : > { %v3592_v1 = vpop.f32.mrf.mxu1  ;;  %v3801_v63 = vpop.f32.mrf.mxu0  ;;  %v9757_v59 = vsel %vm1384_vm1, %v4004_v53, %v4006_v27 }
 0x337   : > { %v9750_v29 = vadd.f32 %v3790_v8, %v3591_v16  ;;  %v4248_v1 = vor.u32 %v4246_v25, %v4236_v54  ;;  %v9761_v8 = vsel %vm1195_vm5, %v3953_v61, %v3954_v11  ;;  %v4240_v43 = vor.u32 %v4238_v31, %v4228_v34  ;;  %v10763_v54 = vld [vmem:[#allocation61_spill] sm:$0xff]  ;;  %v10764_v61 = vld [vmem:[#allocation40_spill] sm:$0xff] }
 0x338   : > { %v3593_v26 = vpop.f32.mrf.mxu1  ;;  %v6843_v37 = vpop.f32.mrf.mxu0  ;;  %v4266_v3 = vshll.u32 %v9757_v59, 16  ;;  %v4008_v25 = vrot.slane %v10763_v54, 1 }
 0x339   : > { %10759 = vst [vmem:[#allocation32_spill] sm:$0xff] %v9750_v29  ;;  %v3594_v12 = vadd.f32 %v3593_v26, %v10761_v2  ;;  %v4253_v40 = vsel %vm1195_vm5, %v4248_v1, %v4252_v15  ;;  %v4245_v53 = vsel %vm1195_vm5, %v4240_v43, %v4244_v9  ;;  %v4258_v2 = vshll.u32 %v9761_v8, 16  ;;  %v10768_v29 = vld [vmem:[#allocation28_spill] sm:$0xff] }
 0x33a   : > { %v3595_v16 = vpop.f32.mrf.mxu1  ;;  %v3806_v51 = vpop.f32.mrf.mxu0  ;;  %6957 = vmatmul.mubr.bf16.gmra.mxu0 %v4253_v40  ;;  %v4262_v1 = vshrl.u32 %v9731_v18, 16  ;;  %v10767_v37 = vshrl.u32 %v10756_v7, 16 }
 0x33b   : > { %v9763_v6 = vadd.f32 %v3793_v62, %v3594_v12  ;;  %6960 = vmatprep.mubr.msk.bf16.mxu0 %vm7581_vm0, %v10554_v49  ;;  %v10765_v62 = vshll.u32 %v10763_v54, 16  ;;  %v4268_v16 = vrot.slane %v4266_v3, 1 }
 0x33c   : > { %v3598_v50 = vpop.f32.mrf.mxu1  ;;  %4716 = vmatmul.mubr.bf16.gmra.mxu1 %v9681_v0  ;;  %v6846_v12 = vpop.f32.mrf.mxu0  ;;  %v3956_v43 = vor.u32 %v3954_v11, %v10767_v37 }
 0x33d   : > { %10762 = vst [vmem:[#allocation56_spill] sm:$0xff] %v9763_v6  ;;  %v3599_v26 = vadd.f32 %v3598_v50, %v10764_v61  ;;  %4723 = vmatprep.mubr.bf16.mxu1 %v4245_v53  ;;  %v3957_v34 = vrot.slane %v10765_v62, 1  ;;  %v4254_v50 = vshrl.u32 %v9735_v46, 16  ;;  %v4260_v53 = vrot.slane %v4258_v2, 1 }
 0x33e   : > { %v3600_v31 = vpop.f32.mrf.mxu1  ;;  %v3809_v6 = vpop.f32.mrf.mxu0  ;;  %v9783_v61 = vsel %vm1384_vm1, %v4006_v27, %v4008_v25 }
 0x33f   : > { %v9776_v0 = vadd.f32 %v3798_v19, %v3599_v26  ;;  %v4264_v31 = vor.u32 %v4262_v1, %v4252_v15  ;;  %v9787_v19 = vsel %vm1195_vm5, %v3956_v43, %v3957_v34  ;;  %v4256_v3 = vor.u32 %v4254_v50, %v4244_v9  ;;  %v10770_v15 = vld [vmem:[#allocation62_spill] sm:$0xff] }
 0x340   : > { %v3601_v40 = vpop.f32.mrf.mxu1  ;;  %v6847_v18 = vpop.f32.mrf.mxu0  ;;  %v4282_v11 = vshll.u32 %v9783_v61, 16  ;;  %v4010_v1 = vrot.slane %v10770_v15, 1  ;;  %v10771_v43 = vld [vmem:[#allocation26_spill] sm:$0xff] }
 0x341   : > { %10766 = vst [vmem:[#allocation38_spill] sm:$0xff] %v9776_v0  ;;  %v3602_v62 = vadd.f32 %v3601_v40, %v10768_v29  ;;  %v4269_v7 = vsel %vm1195_vm5, %v4264_v31, %v4268_v16  ;;  %v4261_v27 = vsel %vm1195_vm5, %v4256_v3, %v4260_v53  ;;  %v4274_v29 = vshll.u32 %v9787_v19, 16  ;;  %v10775_v0 = vld [vmem:[#allocation43_spill] sm:$0xff] }
 0x342   : > { %v3603_v26 = vpop.f32.mrf.mxu1  ;;  %v3814_v2 = vpop.f32.mrf.mxu0  ;;  %6961 = vmatmul.mubr.bf16.gmra.mxu0 %v4269_v7  ;;  %v4278_v31 = vshrl.u32 %v9757_v59, 16  ;;  %v10774_v18 = vshrl.u32 %v10763_v54, 16 }
 0x343   : > { %v9789_v12 = vadd.f32 %v3801_v63, %v3602_v62  ;;  %6964 = vmatprep.mubr.msk.bf16.mxu0 %vm7581_vm0, %v10554_v49  ;;  %v10772_v63 = vshll.u32 %v10770_v15, 16  ;;  %v4284_v26 = vrot.slane %v4282_v11, 1 }
 0x344   : > { %v3606_v37 = vpop.f32.mrf.mxu1  ;;  %4724 = vmatmul.mubr.bf16.gmra.mxu1 %v9707_v23  ;;  %v6850_v62 = vpop.f32.mrf.mxu0  ;;  %v3959_v3 = vor.u32 %v3957_v34, %v10774_v18 }
 0x345   : > { %10769 = vst [vmem:[#allocation60_spill] sm:$0xff] %v9789_v12  ;;  %v3607_v40 = vadd.f32 %v3606_v37, %v10771_v43  ;;  %4731 = vmatprep.mubr.bf16.mxu1 %v4261_v27  ;;  %v3960_v9 = vrot.slane %v10772_v63, 1  ;;  %v4270_v37 = vshrl.u32 %v9761_v8, 16  ;;  %v4276_v27 = vrot.slane %v4274_v29, 1 }
 0x346   : > { %v3608_v50 = vpop.f32.mrf.mxu1  ;;  %v3817_v12 = vpop.f32.mrf.mxu0  ;;  %v9809_v43 = vsel %vm1384_vm1, %v4008_v25, %v4010_v1 }
 0x347   : > { %v9802_v23 = vadd.f32 %v3806_v51, %v3607_v40  ;;  %v4280_v50 = vor.u32 %v4278_v31, %v4268_v16  ;;  %v9813_v51 = vsel %vm1195_vm5, %v3959_v3, %v3960_v9  ;;  %v7323_v40 = vld [vmem:[#allocation10] sm:$0xff]   ;;  %v4272_v62 = vor.u32 %v4270_v37, %v4260_v53  ;;  %v10778_v53 = vld [vmem:[#allocation31_spill] sm:$0xff] }
 0x348   : > { %v3609_v7 = vpop.f32.mrf.mxu1  ;;  %v6851_v11 = vpop.f32.mrf.mxu0  ;;  %v4298_v18 = vshll.u32 %v9809_v43, 16  ;;  %7115 = vmatpush3.bf16.msra.mxu1 %v7323_v40  ;;  %7015 = vmatpush3.bf16.msra.mxu0 %v7323_v40  ;;  %v4290_v29 = vshll.u32 %v9813_v51, 16  ;;  %v10777_v31 = vld [vmem:[#allocation64_spill] sm:$0xff]  ;;  %v4294_v40 = vshrl.u32 %v9783_v61, 16 }
 0x349   : > { %10773 = vst [vmem:[#allocation35_spill] sm:$0xff] %v9802_v23  ;;  %v3610_v63 = vadd.f32 %v3609_v7, %v10775_v0  ;;  %v4285_v34 = vsel %vm1195_vm5, %v4280_v50, %v4284_v26  ;;  %v4277_v0 = vsel %vm1195_vm5, %v4272_v62, %v4276_v27  ;;  %v4012_v3 = vrot.slane %v10777_v31, 1  ;;  %v10781_v23 = vld [vmem:[#allocation47_spill] sm:$0xff] }
 0x34a   : > { %v3611_v59 = vpop.f32.mrf.mxu1  ;;  %v3822_v16 = vpop.f32.mrf.mxu0  ;;  %6965 = vmatmul.mubr.bf16.gmra.mxu0 %v4285_v34  ;;  %v10779_v7 = vshll.u32 %v10777_v31, 16  ;;  %v10780_v11 = vshrl.u32 %v10770_v15, 16 }
 0x34b   : > { %v9815_v54 = vadd.f32 %v3809_v6, %v3610_v63  ;;  %6968 = vmatprep.mubr.msk.bf16.mxu0 %vm7581_vm0, %v10554_v49  ;;  %v4300_v59 = vrot.slane %v4298_v18, 1 }
 0x34c   : > { %v3614_v25 = vpop.f32.mrf.mxu1  ;;  %4732 = vmatmul.mubr.bf16.gmra.mxu1 %v9735_v46  ;;  %v3963_v37 = vrot.slane %v10779_v7, 1  ;;  %v6854_v50 = vpop.f32.mrf.mxu0  ;;  %v3962_v62 = vor.u32 %v3960_v9, %v10780_v11 }
 0x34d   : > { %10776 = vst [vmem:[#allocation42_spill] sm:$0xff] %v9815_v54  ;;  %v3615_v6 = vadd.f32 %v3614_v25, %v10778_v53  ;;  %4739 = vmatprep.mubr.bf16.mxu1 %v4277_v0  ;;  %v4286_v25 = vshrl.u32 %v9787_v19, 16  ;;  %v4292_v0 = vrot.slane %v4290_v29, 1  ;;  %v9835_v53 = vsel %vm1384_vm1, %v4010_v1, %v4012_v3 }
 0x34e   : > { %v3616_v63 = vpop.f32.mrf.mxu1  ;;  %v3825_v54 = vpop.f32.mrf.mxu0  ;;  %v4314_v9 = vshll.u32 %v9835_v53, 16 }
 0x34f   : > { %v9828_v46 = vadd.f32 %v3814_v2, %v3615_v6  ;;  %v4296_v63 = vor.u32 %v4294_v40, %v4284_v26  ;;  %v9839_v2 = vsel %vm1195_vm5, %v3962_v62, %v3963_v37  ;;  %v4288_v18 = vor.u32 %v4286_v25, %v4276_v27  ;;  %v10782_v26 = vld [vmem:[#allocation66_spill] sm:$0xff] }
 0x350   : > { %v3617_v34 = vpop.f32.mrf.mxu1  ;;  %v6855_v61 = vpop.f32.mrf.mxu0  ;;  %v4014_v40 = vrot.slane %v10782_v26, 1 }
 0x351   : > { %v3618_v7 = vadd.f32 %v3617_v34, %v10781_v23  ;;  %v4301_v15 = vsel %vm1195_vm5, %v4296_v63, %v4300_v59  ;;  %v4293_v1 = vsel %vm1195_vm5, %v4288_v18, %v4292_v0  ;;  %v4306_v23 = vshll.u32 %v9839_v2, 16 }
 0x352   : > { %v3619_v6 = vpop.f32.mrf.mxu1  ;;  %v3830_v29 = vpop.f32.mrf.mxu0  ;;  %6969 = vmatmul.mubr.bf16.gmra.mxu0 %v4301_v15  ;;  %v4316_v63 = vrot.slane %v4314_v9, 1 }
 0x353   : > { %v9841_v50 = vadd.f32 %v3817_v12, %v3618_v7  ;;  %6972 = vmatprep.mubr.msk.bf16.mxu0 %vm7581_vm0, %v10554_v49  ;;  %v10783_v12 = vshll.u32 %v10782_v26, 16  ;;  %v4310_v7 = vshrl.u32 %v9809_v43, 16  ;;  %v10784_v6 = vshrl.u32 %v10777_v31, 16 }
 0x354   : > { %v3622_v11 = vpop.f32.mrf.mxu1  ;;  %4740 = vmatmul.mubr.bf16.gmra.mxu1 %v9761_v8  ;;  %v6858_v25 = vpop.f32.mrf.mxu0 }
 0x355   : > { %v3623_v62 = vadd.f32 %v3622_v11, %v9365_v45  ;;  %4747 = vmatprep.mubr.bf16.mxu1 %v4293_v1  ;;  %v3966_v27 = vrot.slane %v10783_v12, 1  ;;  %v3965_v61 = vor.u32 %v3963_v37, %v10784_v6  ;;  %v4302_v45 = vshrl.u32 %v9813_v51, 16 }
 0x356   : > { %v3624_v34 = vpop.f32.mrf.mxu1  ;;  %v3833_v15 = vpop.f32.mrf.mxu0  ;;  %v4308_v11 = vrot.slane %v4306_v23, 1  ;;  %v9861_v1 = vsel %vm1384_vm1, %v4012_v3, %v4014_v40 }
 0x357   : > { %v9854_v8 = vadd.f32 %v3822_v16, %v3623_v62  ;;  %v4312_v34 = vor.u32 %v4310_v7, %v4300_v59  ;;  %v9865_v16 = vsel %vm1195_vm5, %v3965_v61, %v3966_v27  ;;  %v4304_v9 = vor.u32 %v4302_v45, %v4292_v0  ;;  %v10785_v59 = vld [vmem:[#allocation67_spill] sm:$0xff] }
 0x358   : > { %v3625_v18 = vpop.f32.mrf.mxu1  ;;  %v6859_v43 = vpop.f32.mrf.mxu0  ;;  %v4330_v37 = vshll.u32 %v9861_v1, 16  ;;  %v4016_v7 = vrot.slane %v10785_v59, 1 }
 0x359   : > { %v3626_v12 = vadd.f32 %v3625_v18, %v9379_v13  ;;  %v4317_v31 = vsel %vm1195_vm5, %v4312_v34, %v4316_v63  ;;  %v4309_v3 = vsel %vm1195_vm5, %v4304_v9, %v4308_v11  ;;  %v4322_v13 = vshll.u32 %v9865_v16, 16 }
 0x35a   : > { %v3627_v62 = vpop.f32.mrf.mxu1  ;;  %v3838_v23 = vpop.f32.mrf.mxu0  ;;  %6973 = vmatmul.mubr.bf16.gmra.mxu0 %v4317_v31  ;;  %v4332_v34 = vrot.slane %v4330_v37, 1 }
 0x35b   : > { %v9867_v25 = vadd.f32 %v3825_v54, %v3626_v12  ;;  %6976 = vmatprep.mubr.msk.bf16.mxu0 %vm7581_vm0, %v10554_v49  ;;  %v10786_v54 = vshll.u32 %v10785_v59, 16  ;;  %v4326_v12 = vshrl.u32 %v9835_v53, 16  ;;  %v10788_v62 = vshrl.u32 %v10782_v26, 16 }
 0x35c   : > { %v3630_v6 = vpop.f32.mrf.mxu1  ;;  %4748 = vmatmul.mubr.bf16.gmra.mxu1 %v9787_v19  ;;  %v6862_v45 = vpop.f32.mrf.mxu0 }
 0x35d   : > { %v3631_v61 = vadd.f32 %v3630_v6, %v9391_v55  ;;  %4755 = vmatprep.mubr.bf16.mxu1 %v4309_v3  ;;  %v3969_v0 = vrot.slane %v10786_v54, 1  ;;  %v3968_v43 = vor.u32 %v3966_v27, %v10788_v62  ;;  %v4318_v55 = vshrl.u32 %v9839_v2, 16 }
 0x35e   : > { %v3632_v18 = vpop.f32.mrf.mxu1  ;;  %v3841_v31 = vpop.f32.mrf.mxu0  ;;  %v4324_v6 = vrot.slane %v4322_v13, 1  ;;  %v9887_v3 = vsel %vm1384_vm1, %v4014_v40, %v4016_v7 }
 0x35f   : > { %v9880_v19 = vadd.f32 %v3830_v29, %v3631_v61  ;;  %v4328_v18 = vor.u32 %v4326_v12, %v4316_v63  ;;  %v9891_v29 = vsel %vm1195_vm5, %v3968_v43, %v3969_v0  ;;  %v10789_v61 = vld [vmem:[#allocation68_spill] sm:$0xff]  ;;  %v4320_v26 = vor.u32 %v4318_v55, %v4308_v11 }
 0x360   : > { %v3633_v9 = vpop.f32.mrf.mxu1  ;;  %v3973_v53 = vshll.u32 %v10789_v61, 16  ;;  %v6863_v45 = vpop.f32.mrf.mxu0  ;;  %v4346_v13 = vshll.u32 %v9887_v3, 16  ;;  %v4338_v63 = vshll.u32 %v9891_v29, 16  ;;  %v4018_v12 = vrot.slane %v10789_v61, 1 }
 0x361   : > { %10787 = vst [vmem:[#allocation39_spill] sm:$0xff] %v9880_v19  ;;  %v3634_v54 = vadd.f32 %v3633_v9, %v9394_v24  ;;  %v4333_v62 = vsel %vm1195_vm5, %v4328_v18, %v4332_v34  ;;  %v4325_v24 = vsel %vm1195_vm5, %v4320_v26, %v4324_v6  ;;  %v10790_v18 = vshrl.u32 %v10785_v59, 16 }
 0x362   : > { %v3635_v37 = vpop.f32.mrf.mxu1  ;;  %v3846_v40 = vpop.f32.mrf.mxu0  ;;  %6977 = vmatmul.mubr.bf16.gmra.mxu0 %v4333_v62  ;;  %v4334_v62 = vshrl.u32 %v9865_v16, 16 }
 0x363   : > { %v9894_v27 = vadd.f32 %v3833_v15, %v3634_v54  ;;  %6980 = vmatprep.mubr.msk.bf16.mxu0 %vm7581_vm0, %v10554_v49  ;;  %v3975_v15 = vrot.slane %v3973_v53, 1  ;;  %v4348_v54 = vrot.slane %v4346_v13, 1  ;;  %v3971_v37 = vor.u32 %v3969_v0, %v10790_v18 }
 0x364   : > { %v3638_v19 = vpop.f32.mrf.mxu1  ;;  %4756 = vmatmul.mubr.bf16.gmra.mxu1 %v9813_v51  ;;  %v6866_v9 = vpop.f32.mrf.mxu0  ;;  %v4342_v51 = vshrl.u32 %v9861_v1, 16 }
 0x365   : > { %v3639_v43 = vadd.f32 %v3638_v19, %v9405_v21  ;;  %4763 = vmatprep.mubr.bf16.mxu1 %v4325_v24  ;;  %v4340_v21 = vrot.slane %v4338_v63, 1  ;;  %v4019_v19 = vsel %vm1384_vm1, %v4016_v7, %v4018_v12 }
 0x366   : > { %v3640_v11 = vpop.f32.mrf.mxu1  ;;  %v3849_v26 = vpop.f32.mrf.mxu0  ;;  %v4344_v53 = vor.u32 %v4342_v51, %v4332_v34  ;;  %v4362_v9 = vshll.u32 %v4019_v19, 16 }
 0x367   : > { %v9905_v55 = vadd.f32 %v3838_v23, %v3639_v43  ;;  %v9914_v11 = vsel %vm1195_vm5, %v3971_v37, %v3975_v15  ;;  %v3977_v23 = vshrl.u32 %v10789_v61, 16  ;;  %v4336_v43 = vor.u32 %v4334_v62, %v4324_v6 }
 0x368   : > { %v3641_v45 = vpop.f32.mrf.mxu1  ;;  %v6867_v13 = vpop.f32.mrf.mxu0  ;;  %v4349_v0 = vsel %vm1195_vm5, %v4344_v53, %v4348_v54  ;;  %v4354_v34 = vshll.u32 %v9914_v11, 16  ;;  %v4358_v37 = vshrl.u32 %v9887_v3, 16 }
 0x369   : > { %v3642_v24 = vadd.f32 %v3641_v45, %v9408_v4  ;;  %v4341_v7 = vsel %vm1195_vm5, %v4336_v43, %v4340_v21 }
 0x36a   : > { %v3643_v1 = vpop.f32.mrf.mxu1  ;;  %v3854_v4 = vpop.f32.mrf.mxu0  ;;  %6981 = vmatmul.mubr.bf16.gmra.mxu0 %v4349_v0  ;;  %v4356_v53 = vrot.slane %v4354_v34, 1  ;;  %v4360_v43 = vor.u32 %v4358_v37, %v4348_v54  ;;  %v10792_v0 = vld [vmem:[#allocation70_spill] sm:$0xff] }
 0x36b   : > { %v9917_v59 = vadd.f32 %v3841_v31, %v3642_v24  ;;  %6984 = vmatprep.mubr.msk.bf16.mxu0 %vm7581_vm0, %v10554_v49  ;;  %v3979_v31 = vor.u32 %v3977_v23, %v3975_v15  ;;  %v4350_v24 = vshrl.u32 %v9891_v29, 16  ;;  %v10791_v1 = vld [vmem:[#allocation69_spill] sm:$0xff] }
 0x36c   : > { %v3646_v18 = vpop.f32.mrf.mxu1  ;;  %4764 = vmatmul.mubr.bf16.gmra.mxu1 %v9839_v2  ;;  %v6870_v61 = vpop.f32.mrf.mxu0  ;;  %v4364_v2 = vrot.slane %v4362_v9, 1 }
 0x36d   : > { %v3647_v63 = vadd.f32 %v3646_v18, %v9419_v47  ;;  %4771 = vmatprep.mubr.bf16.mxu1 %v4341_v7  ;;  %v4020_v47 = vsel %vm1384_vm1, %v4018_v12, %v10791_v1  ;;  %v9935_v15 = vsel %vm1195_vm5, %v3979_v31, %v10792_v0  ;;  %v4352_v18 = vor.u32 %v4350_v24, %v4340_v21 }
 0x36e   : > { %v3648_v6 = vpop.f32.mrf.mxu1  ;;  %v3857_v62 = vpop.f32.mrf.mxu0  ;;  %v4365_v9 = vsel %vm1195_vm5, %v4360_v43, %v4364_v2  ;;  %v4378_v7 = vshll.u32 %v4020_v47, 16 }
 0x36f   : > { %v9926_v51 = vadd.f32 %v3846_v40, %v3647_v63  ;;  %v4357_v12 = vsel %vm1195_vm5, %v4352_v18, %v4356_v53  ;;  %v4366_v6 = vshrl.u32 %v9914_v11, 16 }
 0x370   : > { %v3649_v45 = vpop.f32.mrf.mxu1  ;;  %v6871_v23 = vpop.f32.mrf.mxu0  ;;  %v4380_v37 = vrot.slane %v4378_v7, 1 }
 0x371   : > { %v3650_v13 = vadd.f32 %v3649_v45, %v9428_v39  ;;  %v4370_v39 = vshll.u32 %v9935_v15, 16 }
 0x372   : > { %v3651_v40 = vpop.f32.mrf.mxu1  ;;  %v3862_v34 = vpop.f32.mrf.mxu0  ;;  %6985 = vmatmul.mubr.bf16.gmra.mxu0 %v4365_v9  ;;  %v4390_v9 = vshrl.u32 %v4020_v47, 16 }
 0x373   : > { %v9937_v3 = vadd.f32 %v3849_v26, %v3650_v13  ;;  %6988 = vmatprep.mubr.msk.bf16.mxu0 %vm7581_vm0, %v10554_v49  ;;  %v4374_v26 = vshrl.u32 %v4019_v19, 16  ;;  %v4368_v13 = vor.u32 %v4366_v6, %v4356_v53  ;;  %v4372_v43 = vrot.slane %v4370_v39, 1 }
 0x374   : > { %v3654_v63 = vpop.f32.mrf.mxu1  ;;  %4772 = vmatmul.mubr.bf16.gmra.mxu1 %v9865_v16  ;;  %v6874_v31 = vpop.f32.mrf.mxu0  ;;  %v4382_v53 = vshrl.u32 %v9935_v15, 16 }
 0x375   : > { %v3655_v54 = vadd.f32 %v3654_v63, %v9433_v41  ;;  %4779 = vmatprep.mubr.bf16.mxu1 %v4357_v12  ;;  %v4376_v16 = vor.u32 %v4374_v26, %v4364_v2  ;;  %v4394_v63 = vshll.u32 %v10791_v1, 16 }
 0x376   : > { %v3656_v21 = vpop.f32.mrf.mxu1  ;;  %v3865_v24 = vpop.f32.mrf.mxu0  ;;  %v4384_v31 = vor.u32 %v4382_v53, %v4372_v43 }
 0x377   : > { %v9947_v61 = vadd.f32 %v3854_v4, %v3655_v54  ;;  %v4381_v19 = vsel %vm1195_vm5, %v4376_v16, %v4380_v37  ;;  %v4373_v4 = vsel %vm1195_vm5, %v4368_v13, %v4372_v43  ;;  %v4392_v54 = vor.u32 %v4390_v9, %v4380_v37 }
 0x378   : > { %v3657_v45 = vpop.f32.mrf.mxu1  ;;  %v6875_v23 = vpop.f32.mrf.mxu0  ;;  %v4401_v37 = vshrl.u32 %v10791_v1, 16 }
 0x379   : > { %v3658_v40 = vadd.f32 %v3657_v45, %v9441_v32  ;;  %v4386_v32 = vshll.u32 %v10792_v0, 16 }
 0x37a   : > { %v3659_v41 = vpop.f32.mrf.mxu1  ;;  %v3870_v2 = vpop.f32.mrf.mxu0  ;;  %6989 = vmatmul.mubr.bf16.gmra.mxu0 %v4381_v19 }
 0x37b   : > { %v9950_v18 = vadd.f32 %v3857_v62, %v3658_v40  ;;  %6992 = vmatprep.mubr.msk.bf16.mxu0 %vm7581_vm0, %v10554_v49  ;;  %v4388_v6 = vrot.slane %v4386_v32, 1 }
 0x37c   : > { %v3662_v12 = vpop.f32.mrf.mxu1  ;;  %4780 = vmatmul.mubr.bf16.gmra.mxu1 %v9891_v29  ;;  %v6878_v47 = vpop.f32.mrf.mxu0  ;;  %v4396_v29 = vrot.slane %v4394_v63, 1 }
 0x37d   : > { %v3663_v7 = vadd.f32 %v3662_v12, %v9445_v56  ;;  %4787 = vmatprep.mubr.bf16.mxu1 %v4373_v4 }
 0x37e   : > { %v3664_v62 = vpop.f32.mrf.mxu1  ;;  %v3873_v21 = vpop.f32.mrf.mxu0  ;;  %v4397_v56 = vsel %vm1195_vm5, %v4392_v54, %v4396_v29  ;;  %v4403_v12 = vor.u32 %v4401_v37, %v4396_v29 }
 0x37f   : > { %v9961_v39 = vadd.f32 %v3862_v34, %v3663_v7  ;;  %v4389_v34 = vsel %vm1195_vm5, %v4384_v31, %v4388_v6 }
 0x380   : > { %v3665_v26 = vpop.f32.mrf.mxu1  ;;  %v6879_v13 = vpop.f32.mrf.mxu0 }
 0x381   : > { %v3666_v16 = vadd.f32 %v3665_v26, %v9454_v58  ;;  %v4398_v58 = vshrl.u32 %v10792_v0, 16 }
 0x382   : > { %v3667_v45 = vpop.f32.mrf.mxu1  ;;  %v3878_v23 = vpop.f32.mrf.mxu0  ;;  %6993 = vmatmul.mubr.bf16.gmra.mxu0 %v4397_v56 }
 0x383   : > { %v9964_v40 = vadd.f32 %v3865_v24, %v3666_v16  ;;  %6996 = vmatprep.mubr.msk.bf16.mxu0 %vm7581_vm0, %v10554_v49  ;;  %v4400_v53 = vor.u32 %v4398_v58, %v4388_v6 }
 0x384   : > { %v3670_v41 = vpop.f32.mrf.mxu1  ;;  %4788 = vmatmul.mubr.bf16.gmra.mxu1 %v9914_v11  ;;  %v6882_v19 = vpop.f32.mrf.mxu0 }
 0x385   : > { %v3671_v43 = vadd.f32 %v3670_v41, %v9465_v22  ;;  %4795 = vmatprep.mubr.bf16.mxu1 %v4389_v34 }
 0x386   : > { %v3672_v24 = vpop.f32.mrf.mxu1  ;;  %v3881_v11 = vpop.f32.mrf.mxu0 }
 0x387   : > { %v9974_v9 = vadd.f32 %v3870_v2, %v3671_v43 }
 0x388   : > { %v3673_v63 = vpop.f32.mrf.mxu1  ;;  %v6883_v1 = vpop.f32.mrf.mxu0 }
 0x389   : > { %v3674_v4 = vadd.f32 %v3673_v63, %v9478_v60 }
 0x38a   : > { %v3675_v32 = vpop.f32.mrf.mxu1  ;;  %v3886_v62 = vpop.f32.mrf.mxu0  ;;  %6997 = vmatmul.mubr.bf16.gmra.mxu0 %v4403_v12 }
 0x38b   : > { %v9977_v7 = vadd.f32 %v3873_v21, %v3674_v4  ;;  %7016 = vmatprep.mubr.msk.bf16.mxu0 %vm7581_vm0, %v10554_v49 }
 0x38c   : > { %v3678_v22 = vpop.f32.mrf.mxu1  ;;  %4796 = vmatmul.mubr.bf16.gmra.mxu1 %v9935_v15  ;;  %v6886_v54 = vpop.f32.mrf.mxu0 }
 0x38d   : > { %v3679_v47 = vadd.f32 %v3678_v22, %v9487_v36  ;;  %4803 = vmatprep.mubr.bf16.mxu1 %v4400_v53 }
 0x38e   : > { %v3680_v2 = vpop.f32.mrf.mxu1  ;;  %v3889_v26 = vpop.f32.mrf.mxu0 }
 0x38f   : > { %v9983_v29 = vadd.f32 %v3878_v23, %v3679_v47 }
 0x390   : > { %v3681_v60 = vpop.f32.mrf.mxu1  ;;  %v6887_v6 = vpop.f32.mrf.mxu0 }
 0x391   : > { %v3682_v21 = vadd.f32 %v3681_v60, %v9496_v48 }
 0x392   : > { %v3683_v31 = vpop.f32.mrf.mxu1  ;;  %v3894_v36 = vpop.f32.mrf.mxu0 }
 0x393   : > { %v9986_v16 = vadd.f32 %v3881_v11, %v3682_v21 }
 0x394   : > { %v3686_v15 = vpop.f32.mrf.mxu1  ;;  %4804 = vmatmul.mubr.bf16.gmra.mxu1 %v10792_v0  ;;  %v6890_v56 = vpop.f32.mrf.mxu0 }
 0x395   : > { %v3687_v45 = vadd.f32 %v3686_v15, %v9505_v57  ;;  %7024 = vmatprep.mubr.msk.bf16.mxu1 %vm7581_vm0, %v10554_v49 }
 0x396   : > { %v3688_v13 = vpop.f32.mrf.mxu1  ;;  %v3897_v23 = vpop.f32.mrf.mxu0 }
 0x397   : > { %v9992_v41 = vadd.f32 %v3886_v62, %v3687_v45 }
 0x398   : > { %v3689_v34 = vpop.f32.mrf.mxu1  ;;  %v6891_v43 = vpop.f32.mrf.mxu0 }
 0x399   : > { %v3690_v48 = vadd.f32 %v3689_v34, %v9520_v20 }
 0x39a   : > { %v3691_v37 = vpop.f32.mrf.mxu1  ;;  %v3902_v0 = vpop.f32.mrf.mxu0 }
 0x39b   : > { %v9995_v58 = vadd.f32 %v3889_v26, %v3690_v48 }
 0x39c   : > { %v3694_v24 = vpop.f32.mrf.mxu1  ;;  %v6894_v63 = vpop.f32.mrf.mxu0 }
 0x39d   : > { %v3695_v19 = vadd.f32 %v3694_v24, %v9532_v14 }
 0x39e   : > { %v3696_v57 = vpop.f32.mrf.mxu1  ;;  %v3905_v4 = vpop.f32.mrf.mxu0 }
 0x39f   : > { %v9998_v11 = vadd.f32 %v3894_v36, %v3695_v19 }
 0x3a0   : > { %v3697_v12 = vpop.f32.mrf.mxu1  ;;  %v6895_v1 = vpop.f32.mrf.mxu0 }
 0x3a1   : > { %v3698_v53 = vadd.f32 %v3697_v12, %v9547_v33 }
 0x3a2   : > { %v3699_v32 = vpop.f32.mrf.mxu1  ;;  %v3910_v62 = vpop.f32.mrf.mxu0 }
 0x3a3   : > { %v10001_v22 = vadd.f32 %v3897_v23, %v3698_v53  ;;  %v10022_v32 = vld [vmem:[%s10378_s7] ss:$0 sm:$0xff] }
 0x3a4   : > { %v3702_v20 = vpop.f32.mrf.mxu1  ;;  %v6898_v54 = vpop.f32.mrf.mxu0 }
 0x3a5   : > { %v3703_v47 = vadd.f32 %v3702_v20, %v9561_v10 }
 0x3a6   : > { %v3704_v2 = vpop.f32.mrf.mxu1  ;;  %v3913_v26 = vpop.f32.mrf.mxu0 }
 0x3a7   : > { %v10004_v60 = vadd.f32 %v3902_v0, %v3703_v47 }
 0x3a8   : > { %v3705_v14 = vpop.f32.mrf.mxu1  ;;  %v6899_v6 = vpop.f32.mrf.mxu0 }
 0x3a9   : > { %v3706_v21 = vadd.f32 %v3705_v14, %v9575_v44  ;;  %v10015_v44 = vld [vmem:[%s10377_s6] ss:$0 sm:$0xff] }
 0x3aa   : > { %v3707_v31 = vpop.f32.mrf.mxu1  ;;  %v4845_v36 = vpop.f32.mrf.mxu0 }
 0x3ab   : > { %v10007_v15 = vadd.f32 %v3905_v4, %v3706_v21 }
 0x3ac   : > { %v3710_v33 = vpop.f32.mrf.mxu1  ;;  %v6918_v56 = vpop.f32.mrf.mxu0 }
 0x3ad   : > { %v3711_v45 = vadd.f32 %v3710_v33, %v9587_v38 }
 0x3ae   : > { %v3712_v13 = vpop.f32.mrf.mxu1  ;;  %v4848_v23 = vpop.f32.mrf.mxu0 }
 0x3af   : > { %v10010_v34 = vadd.f32 %v3910_v62, %v3711_v45 }
 0x3b0   : > { %v3713_v10 = vpop.f32.mrf.mxu1  ;;  %v6919_v37 = vpop.f32.mrf.mxu0 }
 0x3b2   : > { %v3714_v48 = vpop.f32.mrf.mxu1  ;;  %v4853_v24 = vpop.f32.mrf.mxu0 }
 0x3b4   : > { %v4645_v43 = vpop.f32.mrf.mxu1  ;;  %v6922_v57 = vpop.f32.mrf.mxu0 }
 0x3b5   : > { %v4846_v0 = vadd.f32 %v4845_v36, %v4645_v43 }
 0x3b6   : > { %v4647_v19 = vpop.f32.mrf.mxu1  ;;  %v4856_v12 = vpop.f32.mrf.mxu0 }
 0x3b7   : > { %v5011_v38 = vadd.f32 %v4846_v0, %v9616_v28 }
 0x3b8   : > { %v4648_v63 = vpop.f32.mrf.mxu1  ;;  %v6923_v20 = vpop.f32.mrf.mxu0 }
 0x3b9   : > { %v5059_v4 = vmul.f32 %v10015_v44, %v5011_v38  ;;  %v4849_v53 = vadd.f32 %v4848_v23, %v4648_v63 }
 0x3ba   : > { %v4650_v1 = vpop.f32.mrf.mxu1  ;;  %v4861_v2 = vpop.f32.mrf.mxu0 }
 0x3bb   : > { %v5012_v62 = vadd.f32 %v4849_v53, %v9629_v52  ;;  %v5107_v54 = vadd.f32 %v10022_v32, %v5059_v4 }
 0x3bc   : > { %v4653_v47 = vpop.f32.mrf.mxu1  ;;  %v6926_v21 = vpop.f32.mrf.mxu0 }
 0x3bd   : > { %v5060_v28 = vmul.f32 %v10015_v44, %v5012_v62  ;;  %v4854_v14 = vadd.f32 %v4853_v24, %v4653_v47  ;;  %v5148_v45 = vmax.f32 %v5107_v54, 0.0 }
 0x3be   : > { %v4655_v26 = vpop.f32.mrf.mxu1  ;;  %v4864_v36 = vpop.f32.mrf.mxu0 }
 0x3bf   : > { %v5108_v31 = vadd.f32 %v10022_v32, %v5060_v28  ;;  %v5013_v6 = vadd.f32 %v4854_v14, %v9642_v42 }
 0x3c0   : > { %v4656_v33 = vpop.f32.mrf.mxu1  ;;  %v6927_v23 = vpop.f32.mrf.mxu0 }
 0x3c1   : > { %v5149_v13 = vmax.f32 %v5108_v31, 0.0  ;;  %v5061_v56 = vmul.f32 %v10015_v44, %v5013_v6  ;;  %v4857_v52 = vadd.f32 %v4856_v12, %v4656_v33 }
 0x3c2   : > { %v4658_v10 = vpop.f32.mrf.mxu1  ;;  %v4869_v24 = vpop.f32.mrf.mxu0 }
 0x3c3   : > { %v5189_v48 = vpack.c.bf16 %v5149_v13, %v5148_v45  ;;  %v5014_v37 = vadd.f32 %v4857_v52, %v9657_v35  ;;  %v5109_v0 = vadd.f32 %v10022_v32, %v5061_v56 }
 0x3c4   : > { %v4661_v43 = vpop.f32.mrf.mxu1  ;;  %v6930_v38 = vpop.f32.mrf.mxu0 }
 0x3c5   : > { %v5062_v19 = vmul.f32 %v10015_v44, %v5014_v37  ;;  %v4862_v57 = vadd.f32 %v4861_v2, %v4661_v43  ;;  %7017 = vmatmul.mubr.bf16.vlgmr.msra.gmra.mxu0 %v5189_v48  ;;  %v5150_v35 = vmax.f32 %v5109_v0, 0.0  ;;  %v10793_v0 = vld [vmem:[#allocation29_spill] sm:$0xff] }
 0x3c6   : > { %v4663_v42 = vpop.f32.mrf.mxu1  ;;  %7020 = vmatprep.mubr.msk.bf16.mxu0 %vm7581_vm0, %v10554_v49  ;;  %v4872_v53 = vpop.f32.mrf.mxu0 }
 0x3c7   : > { %v5110_v63 = vadd.f32 %v10022_v32, %v5062_v19  ;;  %v5015_v12 = vadd.f32 %v4862_v57, %v9670_v17 }
 0x3c8   : > { %v4664_v4 = vpop.f32.mrf.mxu1  ;;  %v6931_v54 = vpop.f32.mrf.mxu0 }
 0x3c9   : > { %v5151_v1 = vmax.f32 %v5110_v63, 0.0  ;;  %v5063_v20 = vmul.f32 %v10015_v44, %v5015_v12  ;;  %v4865_v62 = vadd.f32 %v4864_v36, %v4664_v4 }
 0x3ca   : > { %v4666_v47 = vpop.f32.mrf.mxu1  ;;  %v4877_v26 = vpop.f32.mrf.mxu0 }
 0x3cb   : > { %v5016_v2 = vadd.f32 %v4865_v62, %v9683_v5  ;;  %v5190_v28 = vpack.c.bf16 %v5151_v1, %v5150_v35  ;;  %v5111_v21 = vadd.f32 %v10022_v32, %v5063_v20 }
 0x3cc   : > { %v4669_v14 = vpop.f32.mrf.mxu1  ;;  %v6934_v33 = vpop.f32.mrf.mxu0 }
 0x3cd   : > { %v5064_v31 = vmul.f32 %v10015_v44, %v5016_v2  ;;  %v4870_v6 = vadd.f32 %v4869_v24, %v4669_v14  ;;  %7021 = vmatmul.mubr.bf16.gmra.mxu0 %v5190_v28  ;;  %v5152_v52 = vmax.f32 %v5111_v21, 0.0 }
 0x3ce   : > { %v4671_v17 = vpop.f32.mrf.mxu1  ;;  %v4880_v56 = vpop.f32.mrf.mxu0 }
 0x3cf   : > { %v5112_v45 = vadd.f32 %v10022_v32, %v5064_v31  ;;  %v5017_v13 = vadd.f32 %v4870_v6, %v9696_v30 }
 0x3d0   : > { %v4672_v36 = vpop.f32.mrf.mxu1  ;;  %v6935_v37 = vpop.f32.mrf.mxu0 }
 0x3d1   : > { %v5153_v10 = vmax.f32 %v5112_v45, 0.0  ;;  %v5065_v5 = vmul.f32 %v10015_v44, %v5017_v13  ;;  %v4873_v23 = vadd.f32 %v4872_v53, %v4672_v36  ;;  %v10794_v53 = vld [vmem:[#allocation51_spill] sm:$0xff] }
 0x3d2   : > { %v4674_v48 = vpop.f32.mrf.mxu1  ;;  %v4885_v57 = vpop.f32.mrf.mxu0 }
 0x3d3   : > { %v5191_v43 = vpack.c.bf16 %v5153_v10, %v5152_v52  ;;  %v5018_v19 = vadd.f32 %v4873_v23, %v10793_v0  ;;  %v5113_v42 = vadd.f32 %v10022_v32, %v5065_v5  ;;  %v10796_v10 = vld [vmem:[#allocation32_spill] sm:$0xff] }
 0x3d4   : > { %v4677_v24 = vpop.f32.mrf.mxu1  ;;  %v6938_v12 = vpop.f32.mrf.mxu0 }
 0x3d5   : > { %v5066_v38 = vmul.f32 %v10015_v44, %v5018_v19  ;;  %v4878_v63 = vadd.f32 %v4877_v26, %v4677_v24  ;;  %7025 = vmatmul.mubr.bf16.vlgmr.msra.gmra.mxu1 %v5191_v43  ;;  %v5154_v62 = vmax.f32 %v5113_v42, 0.0  ;;  %v10795_v26 = vld [vmem:[#allocation34_spill] sm:$0xff] }
 0x3d6   : > { %v4679_v30 = vpop.f32.mrf.mxu1  ;;  %7028 = vmatprep.mubr.msk.bf16.mxu1 %vm7581_vm0, %v10554_v49  ;;  %v4888_v20 = vpop.f32.mrf.mxu0 }
 0x3d7   : > { %v5114_v4 = vadd.f32 %v10022_v32, %v5066_v38  ;;  %v5019_v35 = vadd.f32 %v4878_v63, %v10794_v53 }
 0x3d8   : > { %v4680_v1 = vpop.f32.mrf.mxu1  ;;  %v6939_v14 = vpop.f32.mrf.mxu0 }
 0x3d9   : > { %v5155_v47 = vmax.f32 %v5114_v4, 0.0  ;;  %v5067_v54 = vmul.f32 %v10015_v44, %v5019_v35  ;;  %v4881_v2 = vadd.f32 %v4880_v56, %v4680_v1 }
 0x3da   : > { %v4682_v28 = vpop.f32.mrf.mxu1  ;;  %v4893_v17 = vpop.f32.mrf.mxu0 }
 0x3db   : > { %v5020_v21 = vadd.f32 %v4881_v2, %v10795_v26  ;;  %v5192_v31 = vpack.c.bf16 %v5155_v47, %v5154_v62  ;;  %v5115_v33 = vadd.f32 %v10022_v32, %v5067_v54  ;;  %v10798_v47 = vld [vmem:[#allocation38_spill] sm:$0xff] }
 0x3dc   : > { %v4685_v6 = vpop.f32.mrf.mxu1  ;;  %v6942_v52 = vpop.f32.mrf.mxu0 }
 0x3dd   : > { %v5068_v45 = vmul.f32 %v10015_v44, %v5020_v21  ;;  %v4886_v13 = vadd.f32 %v4885_v57, %v4685_v6  ;;  %7029 = vmatmul.mubr.bf16.gmra.mxu1 %v5192_v31  ;;  %v5156_v37 = vmax.f32 %v5115_v33, 0.0  ;;  %v10797_v57 = vld [vmem:[#allocation56_spill] sm:$0xff] }
 0x3de   : > { %v4687_v36 = vpop.f32.mrf.mxu1  ;;  %7032 = vmatprep.mubr.msk.bf16.mxu1 %vm7581_vm0, %v10554_v49  ;;  %v4896_v48 = vpop.f32.mrf.mxu0 }
 0x3df   : > { %v5116_v56 = vadd.f32 %v10022_v32, %v5068_v45  ;;  %v5021_v5 = vadd.f32 %v4886_v13, %v10796_v10 }
 0x3e0   : > { %v4688_v23 = vpop.f32.mrf.mxu1  ;;  %v6943_v42 = vpop.f32.mrf.mxu0 }
 0x3e1   : > { %v5157_v43 = vmax.f32 %v5116_v56, 0.0  ;;  %v5069_v0 = vmul.f32 %v10015_v44, %v5021_v5  ;;  %v4889_v19 = vadd.f32 %v4888_v20, %v4688_v23 }
 0x3e2   : > { %v4690_v24 = vpop.f32.mrf.mxu1  ;;  %v4901_v12 = vpop.f32.mrf.mxu0 }
 0x3e3   : > { %v5022_v38 = vadd.f32 %v4889_v19, %v10797_v57  ;;  %v5193_v63 = vpack.c.bf16 %v5157_v43, %v5156_v37  ;;  %v5117_v4 = vadd.f32 %v10022_v32, %v5069_v0  ;;  %v10800_v43 = vld [vmem:[#allocation35_spill] sm:$0xff] }
 0x3e4   : > { %v4693_v30 = vpop.f32.mrf.mxu1  ;;  %v6946_v62 = vpop.f32.mrf.mxu0 }
 0x3e5   : > { %v5070_v53 = vmul.f32 %v10015_v44, %v5022_v38  ;;  %v4894_v35 = vadd.f32 %v4893_v17, %v4693_v30  ;;  %7033 = vmatmul.mubr.bf16.gmra.mxu1 %v5193_v63  ;;  %v5158_v14 = vmax.f32 %v5117_v4, 0.0  ;;  %v10799_v17 = vld [vmem:[#allocation60_spill] sm:$0xff] }
 0x3e6   : > { %v4695_v1 = vpop.f32.mrf.mxu1  ;;  %7036 = vmatprep.mubr.msk.bf16.mxu1 %vm7581_vm0, %v10554_v49  ;;  %v4904_v28 = vpop.f32.mrf.mxu0 }
 0x3e7   : > { %v5118_v20 = vadd.f32 %v10022_v32, %v5070_v53  ;;  %v5023_v54 = vadd.f32 %v4894_v35, %v10798_v47 }
 0x3e8   : > { %v4696_v2 = vpop.f32.mrf.mxu1  ;;  %v6947_v33 = vpop.f32.mrf.mxu0 }
 0x3e9   : > { %v5159_v26 = vmax.f32 %v5118_v20, 0.0  ;;  %v5071_v21 = vmul.f32 %v10015_v44, %v5023_v54  ;;  %v4897_v31 = vadd.f32 %v4896_v48, %v4696_v2 }
 0x3ea   : > { %v4698_v6 = vpop.f32.mrf.mxu1  ;;  %v4909_v52 = vpop.f32.mrf.mxu0 }
 0x3eb   : > { %v5024_v45 = vadd.f32 %v4897_v31, %v10799_v17  ;;  %v5194_v13 = vpack.c.bf16 %v5159_v26, %v5158_v14  ;;  %v5119_v56 = vadd.f32 %v10022_v32, %v5071_v21 }
 0x3ec   : > { %v4701_v36 = vpop.f32.mrf.mxu1  ;;  %v6950_v37 = vpop.f32.mrf.mxu0 }
 0x3ed   : > { %v5072_v10 = vmul.f32 %v10015_v44, %v5024_v45  ;;  %v4902_v5 = vadd.f32 %v4901_v12, %v4701_v36  ;;  %7037 = vmatmul.mubr.bf16.gmra.mxu1 %v5194_v13  ;;  %v5160_v42 = vmax.f32 %v5119_v56, 0.0  ;;  %v10801_v12 = vld [vmem:[#allocation42_spill] sm:$0xff] }
 0x3ee   : > { %v4703_v23 = vpop.f32.mrf.mxu1  ;;  %7040 = vmatprep.mubr.msk.bf16.mxu1 %vm7581_vm0, %v10554_v49  ;;  %v4912_v24 = vpop.f32.mrf.mxu0 }
 0x3ef   : > { %v5120_v48 = vadd.f32 %v10022_v32, %v5072_v10  ;;  %v5025_v0 = vadd.f32 %v4902_v5, %v10800_v43 }
 0x3f0   : > { %v4704_v19 = vpop.f32.mrf.mxu1  ;;  %v6951_v4 = vpop.f32.mrf.mxu0 }
 0x3f1   : > { %v5161_v57 = vmax.f32 %v5120_v48, 0.0  ;;  %v5073_v38 = vmul.f32 %v10015_v44, %v5025_v0  ;;  %v4905_v63 = vadd.f32 %v4904_v28, %v4704_v19 }
 0x3f2   : > { %v4706_v30 = vpop.f32.mrf.mxu1  ;;  %v4917_v62 = vpop.f32.mrf.mxu0 }
 0x3f3   : > { %v5026_v53 = vadd.f32 %v4905_v63, %v10801_v12  ;;  %v5195_v35 = vpack.c.bf16 %v5161_v57, %v5160_v42  ;;  %v5121_v20 = vadd.f32 %v10022_v32, %v5073_v38 }
 0x3f4   : > { %v4709_v1 = vpop.f32.mrf.mxu1  ;;  %v6954_v14 = vpop.f32.mrf.mxu0 }
 0x3f5   : > { %v5074_v47 = vmul.f32 %v10015_v44, %v5026_v53  ;;  %v4910_v54 = vadd.f32 %v4909_v52, %v4709_v1  ;;  %7041 = vmatmul.mubr.bf16.gmra.mxu1 %v5195_v35  ;;  %v5162_v6 = vmax.f32 %v5121_v20, 0.0  ;;  %v10802_v14 = vld [vmem:[#allocation39_spill] sm:$0xff] }
 0x3f6   : > { %v4711_v2 = vpop.f32.mrf.mxu1  ;;  %7044 = vmatprep.mubr.msk.bf16.mxu1 %vm7581_vm0, %v10554_v49  ;;  %v4920_v31 = vpop.f32.mrf.mxu0 }
 0x3f7   : > { %v5122_v28 = vadd.f32 %v10022_v32, %v5074_v47  ;;  %v5027_v26 = vadd.f32 %v4910_v54, %v9828_v46 }
 0x3f8   : > { %v4712_v21 = vpop.f32.mrf.mxu1  ;;  %v6955_v36 = vpop.f32.mrf.mxu0 }
 0x3f9   : > { %v5163_v33 = vmax.f32 %v5122_v28, 0.0  ;;  %v5075_v17 = vmul.f32 %v10015_v44, %v5027_v26  ;;  %v4913_v45 = vadd.f32 %v4912_v24, %v4712_v21 }
 0x3fa   : > { %v4714_v13 = vpop.f32.mrf.mxu1  ;;  %v4925_v5 = vpop.f32.mrf.mxu0 }
 0x3fb   : > { %v5028_v52 = vadd.f32 %v4913_v45, %v9841_v50  ;;  %v5196_v56 = vpack.c.bf16 %v5163_v33, %v5162_v6  ;;  %v5123_v23 = vadd.f32 %v10022_v32, %v5075_v17 }
 0x3fc   : > { %v4717_v10 = vpop.f32.mrf.mxu1  ;;  %v6958_v43 = vpop.f32.mrf.mxu0 }
 0x3fd   : > { %v5076_v37 = vmul.f32 %v10015_v44, %v5028_v52  ;;  %v4918_v48 = vadd.f32 %v4917_v62, %v4717_v10  ;;  %7045 = vmatmul.mubr.bf16.gmra.mxu1 %v5196_v56  ;;  %v5164_v42 = vmax.f32 %v5123_v23, 0.0 }
 0x3fe   : > { %v4719_v46 = vpop.f32.mrf.mxu1  ;;  %7048 = vmatprep.mubr.msk.bf16.mxu1 %vm7581_vm0, %v10554_v49  ;;  %v4928_v50 = vpop.f32.mrf.mxu0 }
 0x3ff   : > { %v5124_v0 = vadd.f32 %v10022_v32, %v5076_v37  ;;  %v5029_v19 = vadd.f32 %v4918_v48, %v9854_v8 }
 0x400   : > { %v4720_v24 = vpop.f32.mrf.mxu1  ;;  %v6959_v4 = vpop.f32.mrf.mxu0 }
 0x401   : > { %v5165_v57 = vmax.f32 %v5124_v0, 0.0  ;;  %v5077_v38 = vmul.f32 %v10015_v44, %v5029_v19  ;;  %v4921_v63 = vadd.f32 %v4920_v31, %v4720_v24 }
 0x402   : > { %v4722_v30 = vpop.f32.mrf.mxu1  ;;  %v4933_v1 = vpop.f32.mrf.mxu0 }
 0x403   : > { %v5030_v12 = vadd.f32 %v4921_v63, %v9867_v25  ;;  %v5197_v53 = vpack.c.bf16 %v5165_v57, %v5164_v42  ;;  %v5125_v62 = vadd.f32 %v10022_v32, %v5077_v38 }
 0x404   : > { %v4725_v35 = vpop.f32.mrf.mxu1  ;;  %v6962_v54 = vpop.f32.mrf.mxu0 }
 0x405   : > { %v5078_v20 = vmul.f32 %v10015_v44, %v5030_v12  ;;  %v4926_v47 = vadd.f32 %v4925_v5, %v4725_v35  ;;  %7049 = vmatmul.mubr.bf16.gmra.mxu1 %v5197_v53  ;;  %v5166_v21 = vmax.f32 %v5125_v62, 0.0 }
 0x406   : > { %v4727_v8 = vpop.f32.mrf.mxu1  ;;  %7052 = vmatprep.mubr.msk.bf16.mxu1 %vm7581_vm0, %v10554_v49  ;;  %v4936_v25 = vpop.f32.mrf.mxu0 }
 0x407   : > { %v5126_v2 = vadd.f32 %v10022_v32, %v5078_v20  ;;  %v5031_v28 = vadd.f32 %v4926_v47, %v10802_v14 }
 0x408   : > { %v4728_v26 = vpop.f32.mrf.mxu1  ;;  %v6963_v45 = vpop.f32.mrf.mxu0 }
 0x409   : > { %v5167_v31 = vmax.f32 %v5126_v2, 0.0  ;;  %v5079_v6 = vmul.f32 %v10015_v44, %v5031_v28  ;;  %v4929_v33 = vadd.f32 %v4928_v50, %v4728_v26 }
 0x40a   : > { %v4730_v17 = vpop.f32.mrf.mxu1  ;;  %v4941_v56 = vpop.f32.mrf.mxu0 }
 0x40b   : > { %v5032_v13 = vadd.f32 %v4929_v33, %v9894_v27  ;;  %v5198_v36 = vpack.c.bf16 %v5167_v31, %v5166_v21  ;;  %v5127_v10 = vadd.f32 %v10022_v32, %v5079_v6 }
 0x40c   : > { %v4733_v52 = vpop.f32.mrf.mxu1  ;;  %v6966_v48 = vpop.f32.mrf.mxu0 }
 0x40d   : > { %v5080_v5 = vmul.f32 %v10015_v44, %v5032_v13  ;;  %v4934_v23 = vadd.f32 %v4933_v1, %v4733_v52  ;;  %7053 = vmatmul.mubr.bf16.gmra.mxu1 %v5198_v36  ;;  %v5168_v19 = vmax.f32 %v5127_v10, 0.0 }
 0x40e   : > { %v4735_v37 = vpop.f32.mrf.mxu1  ;;  %7056 = vmatprep.mubr.msk.bf16.mxu1 %vm7581_vm0, %v10554_v49  ;;  %v4944_v27 = vpop.f32.mrf.mxu0 }
 0x40f   : > { %v5128_v46 = vadd.f32 %v10022_v32, %v5080_v5  ;;  %v5033_v43 = vadd.f32 %v4934_v23, %v9905_v55 }
 0x410   : > { %v4736_v0 = vpop.f32.mrf.mxu1  ;;  %v6967_v38 = vpop.f32.mrf.mxu0 }
 0x411   : > { %v5169_v24 = vmax.f32 %v5128_v46, 0.0  ;;  %v5081_v50 = vmul.f32 %v10015_v44, %v5033_v43  ;;  %v4937_v42 = vadd.f32 %v4936_v25, %v4736_v0 }
 0x412   : > { %v4738_v57 = vpop.f32.mrf.mxu1  ;;  %v4949_v12 = vpop.f32.mrf.mxu0 }
 0x413   : > { %v5034_v63 = vadd.f32 %v4937_v42, %v9917_v59  ;;  %v5199_v30 = vpack.c.bf16 %v5169_v24, %v5168_v19  ;;  %v5129_v53 = vadd.f32 %v10022_v32, %v5081_v50 }
 0x414   : > { %v4741_v4 = vpop.f32.mrf.mxu1  ;;  %v6970_v62 = vpop.f32.mrf.mxu0 }
 0x415   : > { %v5082_v35 = vmul.f32 %v10015_v44, %v5034_v63  ;;  %v4942_v1 = vadd.f32 %v4941_v56, %v4741_v4  ;;  %7057 = vmatmul.mubr.bf16.gmra.mxu1 %v5199_v30  ;;  %v5170_v54 = vmax.f32 %v5129_v53, 0.0 }
 0x416   : > { %v4743_v55 = vpop.f32.mrf.mxu1  ;;  %7060 = vmatprep.mubr.msk.bf16.mxu1 %vm7581_vm0, %v10554_v49  ;;  %v4952_v59 = vpop.f32.mrf.mxu0 }
 0x417   : > { %v5130_v20 = vadd.f32 %v10022_v32, %v5082_v35  ;;  %v5035_v47 = vadd.f32 %v4942_v1, %v9926_v51 }
 0x418   : > { %v4744_v8 = vpop.f32.mrf.mxu1  ;;  %v6971_v25 = vpop.f32.mrf.mxu0 }
 0x419   : > { %v5171_v2 = vmax.f32 %v5130_v20, 0.0  ;;  %v5083_v14 = vmul.f32 %v10015_v44, %v5035_v47  ;;  %v4945_v28 = vadd.f32 %v4944_v27, %v4744_v8 }
 0x41a   : > { %v4746_v26 = vpop.f32.mrf.mxu1  ;;  %v4957_v33 = vpop.f32.mrf.mxu0 }
 0x41b   : > { %v5036_v21 = vadd.f32 %v4945_v28, %v9937_v3  ;;  %v5200_v31 = vpack.c.bf16 %v5171_v2, %v5170_v54  ;;  %v5131_v17 = vadd.f32 %v10022_v32, %v5083_v14 }
 0x41c   : > { %v4749_v6 = vpop.f32.mrf.mxu1  ;;  %v6974_v36 = vpop.f32.mrf.mxu0 }
 0x41d   : > { %v5084_v45 = vmul.f32 %v10015_v44, %v5036_v21  ;;  %v4950_v13 = vadd.f32 %v4949_v12, %v4749_v6  ;;  %7061 = vmatmul.mubr.bf16.gmra.mxu1 %v5200_v31  ;;  %v5172_v5 = vmax.f32 %v5131_v17, 0.0 }
 0x41e   : > { %v4751_v51 = vpop.f32.mrf.mxu1  ;;  %7064 = vmatprep.mubr.msk.bf16.mxu1 %vm7581_vm0, %v10554_v49  ;;  %v4960_v3 = vpop.f32.mrf.mxu0 }
 0x41f   : > { %v5132_v52 = vadd.f32 %v10022_v32, %v5084_v45  ;;  %v5037_v56 = vadd.f32 %v4950_v13, %v9947_v61 }
 0x420   : > { %v4752_v10 = vpop.f32.mrf.mxu1  ;;  %v6975_v43 = vpop.f32.mrf.mxu0 }
 0x421   : > { %v5173_v23 = vmax.f32 %v5132_v52, 0.0  ;;  %v5085_v37 = vmul.f32 %v10015_v44, %v5037_v56  ;;  %v4953_v48 = vadd.f32 %v4952_v59, %v4752_v10 }
 0x422   : > { %v4754_v46 = vpop.f32.mrf.mxu1  ;;  %v4965_v24 = vpop.f32.mrf.mxu0 }
 0x423   : > { %v5038_v0 = vadd.f32 %v4953_v48, %v9950_v18  ;;  %v5201_v27 = vpack.c.bf16 %v5173_v23, %v5172_v5  ;;  %v5133_v50 = vadd.f32 %v10022_v32, %v5085_v37 }
 0x424   : > { %v4757_v19 = vpop.f32.mrf.mxu1  ;;  %v6978_v38 = vpop.f32.mrf.mxu0 }
 0x425   : > { %v5086_v42 = vmul.f32 %v10015_v44, %v5038_v0  ;;  %v4958_v57 = vadd.f32 %v4957_v33, %v4757_v19  ;;  %7065 = vmatmul.mubr.bf16.gmra.mxu1 %v5201_v27  ;;  %v5174_v12 = vmax.f32 %v5133_v50, 0.0 }
 0x426   : > { %v4759_v61 = vpop.f32.mrf.mxu1  ;;  %7068 = vmatprep.mubr.msk.bf16.mxu1 %vm7581_vm0, %v10554_v49  ;;  %v4968_v18 = vpop.f32.mrf.mxu0 }
 0x427   : > { %v5134_v63 = vadd.f32 %v10022_v32, %v5086_v42  ;;  %v5039_v30 = vadd.f32 %v4958_v57, %v9961_v39 }
 0x428   : > { %v4760_v4 = vpop.f32.mrf.mxu1  ;;  %v6979_v62 = vpop.f32.mrf.mxu0 }
 0x429   : > { %v5175_v53 = vmax.f32 %v5134_v63, 0.0  ;;  %v5087_v35 = vmul.f32 %v10015_v44, %v5039_v30  ;;  %v4961_v1 = vadd.f32 %v4960_v3, %v4760_v4 }
 0x42a   : > { %v4762_v55 = vpop.f32.mrf.mxu1  ;;  %v4973_v59 = vpop.f32.mrf.mxu0 }
 0x42b   : > { %v5040_v20 = vadd.f32 %v4961_v1, %v9964_v40  ;;  %v5202_v47 = vpack.c.bf16 %v5175_v53, %v5174_v12  ;;  %v5135_v54 = vadd.f32 %v10022_v32, %v5087_v35 }
 0x42c   : > { %v4765_v8 = vpop.f32.mrf.mxu1  ;;  %v6982_v28 = vpop.f32.mrf.mxu0 }
 0x42d   : > { %v5088_v2 = vmul.f32 %v10015_v44, %v5040_v20  ;;  %v4966_v14 = vadd.f32 %v4965_v24, %v4765_v8  ;;  %7069 = vmatmul.mubr.bf16.gmra.mxu1 %v5202_v47  ;;  %v5176_v31 = vmax.f32 %v5135_v54, 0.0 }
 0x42e   : > { %v4767_v39 = vpop.f32.mrf.mxu1  ;;  %7072 = vmatprep.mubr.msk.bf16.mxu1 %vm7581_vm0, %v10554_v49  ;;  %v4976_v40 = vpop.f32.mrf.mxu0 }
 0x42f   : > { %v5136_v26 = vadd.f32 %v10022_v32, %v5088_v2  ;;  %v5041_v25 = vadd.f32 %v4966_v14, %v9974_v9 }
 0x430   : > { %v4768_v21 = vpop.f32.mrf.mxu1  ;;  %v6983_v13 = vpop.f32.mrf.mxu0 }
 0x431   : > { %v5177_v6 = vmax.f32 %v5136_v26, 0.0  ;;  %v5089_v33 = vmul.f32 %v10015_v44, %v5041_v25  ;;  %v4969_v17 = vadd.f32 %v4968_v18, %v4768_v21 }
 0x432   : > { %v4770_v45 = vpop.f32.mrf.mxu1  ;;  %v4981_v56 = vpop.f32.mrf.mxu0 }
 0x433   : > { %v5042_v51 = vadd.f32 %v4969_v17, %v9977_v7  ;;  %v5203_v36 = vpack.c.bf16 %v5177_v6, %v5176_v31  ;;  %v5137_v10 = vadd.f32 %v10022_v32, %v5089_v33 }
 0x434   : > { %v4773_v52 = vpop.f32.mrf.mxu1  ;;  %v6986_v23 = vpop.f32.mrf.mxu0 }
 0x435   : > { %v5090_v3 = vmul.f32 %v10015_v44, %v5042_v51  ;;  %v4974_v5 = vadd.f32 %v4973_v59, %v4773_v52  ;;  %7073 = vmatmul.mubr.bf16.gmra.mxu1 %v5203_v36  ;;  %v5178_v43 = vmax.f32 %v5137_v10, 0.0 }
 0x436   : > { %v4775_v9 = vpop.f32.mrf.mxu1  ;;  %7076 = vmatprep.mubr.msk.bf16.mxu1 %vm7581_vm0, %v10554_v49  ;;  %v4984_v7 = vpop.f32.mrf.mxu0 }
 0x437   : > { %v5138_v37 = vadd.f32 %v10022_v32, %v5090_v3  ;;  %v5043_v48 = vadd.f32 %v4974_v5, %v9983_v29 }
 0x438   : > { %v4776_v46 = vpop.f32.mrf.mxu1  ;;  %v6987_v50 = vpop.f32.mrf.mxu0 }
 0x439   : > { %v5179_v0 = vmax.f32 %v5138_v37, 0.0  ;;  %v5091_v27 = vmul.f32 %v10015_v44, %v5043_v48  ;;  %v4977_v19 = vadd.f32 %v4976_v40, %v4776_v46 }
 0x43a   : > { %v4778_v24 = vpop.f32.mrf.mxu1  ;;  %v4989_v38 = vpop.f32.mrf.mxu0 }
 0x43b   : > { %v5044_v42 = vadd.f32 %v4977_v19, %v9986_v16  ;;  %v5204_v57 = vpack.c.bf16 %v5179_v0, %v5178_v43  ;;  %v5139_v63 = vadd.f32 %v10022_v32, %v5091_v27 }
 0x43c   : > { %v4781_v61 = vpop.f32.mrf.mxu1  ;;  %v6990_v18 = vpop.f32.mrf.mxu0 }
 0x43d   : > { %v5092_v30 = vmul.f32 %v10015_v44, %v5044_v42  ;;  %v4982_v4 = vadd.f32 %v4981_v56, %v4781_v61  ;;  %7077 = vmatmul.mubr.bf16.gmra.mxu1 %v5204_v57  ;;  %v5180_v1 = vmax.f32 %v5139_v63, 0.0 }
 0x43e   : > { %v4783_v29 = vpop.f32.mrf.mxu1  ;;  %7080 = vmatprep.mubr.msk.bf16.mxu1 %vm7581_vm0, %v10554_v49  ;;  %v4992_v16 = vpop.f32.mrf.mxu0 }
 0x43f   : > { %v5140_v12 = vadd.f32 %v10022_v32, %v5092_v30  ;;  %v5045_v53 = vadd.f32 %v4982_v4, %v9992_v41 }
 0x440   : > { %v4784_v35 = vpop.f32.mrf.mxu1  ;;  %v6991_v8 = vpop.f32.mrf.mxu0 }
 0x441   : > { %v5181_v55 = vmax.f32 %v5140_v12, 0.0  ;;  %v5093_v62 = vmul.f32 %v10015_v44, %v5045_v53  ;;  %v4985_v20 = vadd.f32 %v4984_v7, %v4784_v35 }
 0x442   : > { %v4786_v47 = vpop.f32.mrf.mxu1  ;;  %v4997_v14 = vpop.f32.mrf.mxu0 }
 0x443   : > { %v5046_v59 = vadd.f32 %v4985_v20, %v9995_v58  ;;  %v5205_v54 = vpack.c.bf16 %v5181_v55, %v5180_v1  ;;  %v5141_v39 = vadd.f32 %v10022_v32, %v5093_v62  ;;  %v7346_v47 = vld [vmem:[%s7811_s14] sm:$0xff]  }
 0x444   : > { %v4789_v2 = vpop.f32.mrf.mxu1  ;;  %v6994_v25 = vpop.f32.mrf.mxu0 }
 0x445   : > { %v5094_v28 = vmul.f32 %v10015_v44, %v5046_v59  ;;  %v4990_v26 = vadd.f32 %v4989_v38, %v4789_v2  ;;  %7081 = vmatmul.mubr.bf16.gmra.mxu1 %v5205_v54  ;;  %v5182_v6 = vmax.f32 %v5141_v39, 0.0  ;;  %v5571_v54 = vunpack.c.h.bf16 %v7346_v47 }
 0x446   : > { %v4791_v41 = vpop.f32.mrf.mxu1  ;;  %7084 = vmatprep.mubr.msk.bf16.mxu1 %vm7581_vm0, %v10554_v49  ;;  %v5000_v58 = vpop.f32.mrf.mxu0 }
 0x447   : > { %v5142_v21 = vadd.f32 %v10022_v32, %v5094_v28  ;;  %v5047_v40 = vadd.f32 %v4990_v26, %v9998_v11 }
 0x448   : > { %v4792_v31 = vpop.f32.mrf.mxu1  ;;  %v6995_v51 = vpop.f32.mrf.mxu0 }
 0x449   : > { %v5183_v33 = vmax.f32 %v5142_v21, 0.0  ;;  %v5095_v17 = vmul.f32 %v10015_v44, %v5047_v40  ;;  %v4993_v45 = vadd.f32 %v4992_v16, %v4792_v31  ;;  %v7347_v40 = vld [vmem:[%s7811_s14 + $0x8] sm:$0xff]  }
 0x44a   : > { %v4794_v13 = vpop.f32.mrf.mxu1  ;;  %v5005_v10 = vpop.f32.mrf.mxu0  ;;  %v5572_v31 = vunpack.c.l.bf16 %v7347_v40 }
 0x44b   : > { %v5048_v36 = vadd.f32 %v4993_v45, %v10001_v22  ;;  %v5206_v52 = vpack.c.bf16 %v5183_v33, %v5182_v6  ;;  %v5143_v3 = vadd.f32 %v10022_v32, %v5095_v17  ;;  %v5573_v45 = vunpack.c.h.bf16 %v7347_v40 }
 0x44c   : > { %v4797_v56 = vpop.f32.mrf.mxu1  ;;  %v6998_v23 = vpop.f32.mrf.mxu0 }
 0x44d   : > { %v5096_v5 = vmul.f32 %v10015_v44, %v5048_v36  ;;  %v4998_v9 = vadd.f32 %v4997_v14, %v4797_v56  ;;  %7085 = vmatmul.mubr.bf16.gmra.mxu1 %v5206_v52  ;;  %v5184_v7 = vmax.f32 %v5143_v3, 0.0 }
 0x44e   : > { %v4799_v11 = vpop.f32.mrf.mxu1  ;;  %7088 = vmatprep.mubr.msk.bf16.mxu1 %vm7581_vm0, %v10554_v49  ;;  %v5008_v22 = vpop.f32.mrf.mxu0 }
 0x44f   : > { %v5144_v37 = vadd.f32 %v10022_v32, %v5096_v5  ;;  %v5049_v48 = vadd.f32 %v4998_v9, %v10004_v60  ;;  %v7348_v11 = vld [vmem:[%s7811_s14 + $0x10] sm:$0xff]  }
 0x450   : > { %v4800_v46 = vpop.f32.mrf.mxu1  ;;  %v6999_v24 = vpop.f32.mrf.mxu0  ;;  %v5574_v23 = vunpack.c.l.bf16 %v7348_v11 }
 0x451   : > { %v5185_v43 = vmax.f32 %v5144_v37, 0.0  ;;  %v5097_v0 = vmul.f32 %v10015_v44, %v5049_v48  ;;  %v5001_v27 = vadd.f32 %v5000_v58, %v4800_v46 }
 0x452   : > { %v4802_v19 = vpop.f32.mrf.mxu1 }
 0x453   : > { %v5050_v50 = vadd.f32 %v5001_v27, %v10007_v15  ;;  %v5207_v42 = vpack.c.bf16 %v5185_v43, %v5184_v7  ;;  %v5145_v61 = vadd.f32 %v10022_v32, %v5097_v0  ;;  %v5575_v7 = vunpack.c.h.bf16 %v7348_v11 }
 0x454   : > { %v4805_v57 = vpop.f32.mrf.mxu1 }
 0x455   : > { %v5098_v38 = vmul.f32 %v10015_v44, %v5050_v50  ;;  %v5006_v63 = vadd.f32 %v5005_v10, %v4805_v57  ;;  %7089 = vmatmul.mubr.bf16.gmra.mxu1 %v5207_v42  ;;  %v5186_v18 = vmax.f32 %v5145_v61, 0.0 }
 0x456   : > { %v4807_v60 = vpop.f32.mrf.mxu1  ;;  %7092 = vmatprep.mubr.msk.bf16.mxu1 %vm7581_vm0, %v10554_v49 }
 0x457   : > { %v5146_v30 = vadd.f32 %v10022_v32, %v5098_v38  ;;  %v5051_v4 = vadd.f32 %v5006_v63, %v10010_v34  ;;  %v10186_v34 = vld [vmem:[%s10380_s9] ss:$0 sm:$0xff] }
 0x458   : > { %v4808_v29 = vpop.f32.mrf.mxu1  ;;  %v7349_v38 = vld [vmem:[%s7811_s14 + $0x18] sm:$0xff]  }
 0x459   : > { %v5187_v15 = vmax.f32 %v5146_v30, 0.0  ;;  %v5099_v12 = vmul.f32 %v10015_v44, %v5051_v4  ;;  %v10191_v44 = vld [vmem:[%s10381_s10] ss:$0 sm:$0xff]  ;;  %v5576_v63 = vunpack.c.l.bf16 %v7349_v38 }
 0x45a   : > { %v4809_v53 = vpop.f32.mrf.mxu1 }
 0x45b   : > { %v5147_v35 = vadd.f32 %v10022_v32, %v5099_v12  ;;  %v5208_v16 = vpack.c.bf16 %v5187_v15, %v5186_v18  ;;  %v5577_v18 = vunpack.c.h.bf16 %v7349_v38 }
 0x45d   : > { %7093 = vmatmul.mubr.bf16.gmra.mxu1 %v5208_v16  ;;  %v5188_v1 = vmax.f32 %v5147_v35, 0.0 }
 0x45e   : > { %7096 = vmatprep.mubr.msk.bf16.mxu1 %vm7581_vm0, %v10554_v49  ;;  %v5570_v49 = vunpack.c.l.bf16 %v7346_v47 }
 0x45f   : > { %v5209_v55 = vpack.c.bf16 %v5188_v1, %v5188_v1 }
 0x465   : > { %7097 = vmatmul.mubr.bf16.gmra.mxu1 %v5209_v55 }
 0x485   : > { %v5308_v62 = vpop.f32.mrf.mxu0 }
 0x486   : > { %v5481_v32 = vmul.f32 %v10186_v34, %v5308_v62 }
 0x487   : > { %v7018_v20 = vpop.f32.mrf.mxu0 }
 0x488   : > { %v5529_v8 = vadd.f32 %v10191_v44, %v5481_v32  ;;  %v7350_v20 = vld [vmem:[%s7811_s14 + $0x20] sm:$0xff]  }
 0x489   : > { %v5311_v59 = vpop.f32.mrf.mxu0  ;;  %v5578_v47 = vunpack.c.l.bf16 %v7350_v20 }
 0x48a   : > { %v5482_v2 = vmul.f32 %v10186_v34, %v5311_v59  ;;  %v5611_v39 = vadd.f32 %v5570_v49, %v5529_v8 }
 0x48b   : > { %v7019_v14 = vpop.f32.mrf.mxu0 }
 0x48c   : > { %v5530_v28 = vadd.f32 %v10191_v44, %v5482_v2  ;;  %v5652_v58 = vmax.f32 %v5611_v39, 0.0  ;;  %v5579_v2 = vunpack.c.h.bf16 %v7350_v20 }
 0x48d   : > { %v5316_v26 = vpop.f32.mrf.mxu0 }
 0x48e   : > { %v5612_v41 = vadd.f32 %v5571_v54, %v5530_v28  ;;  %v5483_v25 = vmul.f32 %v10186_v34, %v5316_v26 }
 0x48f   : > { %v7022_v21 = vpop.f32.mrf.mxu0 }
 0x490   : > { %v5653_v6 = vmax.f32 %v5612_v41, 0.0  ;;  %v5531_v33 = vadd.f32 %v10191_v44, %v5483_v25 }
 0x491   : > { %v5319_v17 = vpop.f32.mrf.mxu0 }
 0x492   : > { %v6320_v13 = vpack.c.bf16 %v5653_v6, %v5652_v58  ;;  %v5484_v51 = vmul.f32 %v10186_v34, %v5319_v17  ;;  %v5613_v52 = vadd.f32 %v5572_v31, %v5531_v33  ;;  %v7351_v58 = vld [vmem:[%s7811_s14 + $0x28] sm:$0xff]  }
 0x493   : > { %v7023_v36 = vpop.f32.mrf.mxu0  ;;  %v5580_v6 = vunpack.c.l.bf16 %v7351_v58 }
 0x494   : > { %6321 = vst [vmem:[%s10204_s28] sm:$0xff] %v6320_v13   ;;  %v5532_v56 = vadd.f32 %v10191_v44, %v5484_v51  ;;  %v5654_v37 = vmax.f32 %v5613_v52, 0.0  ;;  %v5581_v51 = vunpack.c.h.bf16 %v7351_v58 }
 0x495   : > { %v5324_v10 = vpop.f32.mrf.mxu1 }
 0x496   : > { %v5614_v3 = vadd.f32 %v5573_v45, %v5532_v56  ;;  %v5485_v5 = vmul.f32 %v10186_v34, %v5324_v10 }
 0x497   : > { %v7026_v9 = vpop.f32.mrf.mxu1 }
 0x498   : > { %v5655_v48 = vmax.f32 %v5614_v3, 0.0  ;;  %v5533_v46 = vadd.f32 %v10191_v44, %v5485_v5 }
 0x499   : > { %v5327_v22 = vpop.f32.mrf.mxu1 }
 0x49a   : > { %v6325_v43 = vpack.c.bf16 %v5655_v48, %v5654_v37  ;;  %v5486_v0 = vmul.f32 %v10186_v34, %v5327_v22  ;;  %v5615_v19 = vadd.f32 %v5574_v23, %v5533_v46  ;;  %v7352_v37 = vld [vmem:[%s7811_s14 + $0x30] sm:$0xff]  }
 0x49b   : > { %v7027_v27 = vpop.f32.mrf.mxu1  ;;  %v5582_v48 = vunpack.c.l.bf16 %v7352_v37 }
 0x49c   : > { %6436 = vst [vmem:[%s10204_s28 + $0x8] sm:$0xff] %v6325_v43   ;;  %v5534_v24 = vadd.f32 %v10191_v44, %v5486_v0  ;;  %v5656_v60 = vmax.f32 %v5615_v19, 0.0  ;;  %v5583_v0 = vunpack.c.h.bf16 %v7352_v37 }
 0x49d   : > { %v5332_v50 = vpop.f32.mrf.mxu1 }
 0x49e   : > { %v5616_v42 = vadd.f32 %v5575_v7, %v5534_v24  ;;  %v5487_v57 = vmul.f32 %v10186_v34, %v5332_v50 }
 0x49f   : > { %v7030_v61 = vpop.f32.mrf.mxu1 }
 0x4a0   : > { %v5657_v30 = vmax.f32 %v5616_v42, 0.0  ;;  %v5535_v4 = vadd.f32 %v10191_v44, %v5487_v57 }
 0x4a1   : > { %v5335_v29 = vpop.f32.mrf.mxu1 }
 0x4a2   : > { %v6330_v15 = vpack.c.bf16 %v5657_v30, %v5656_v60  ;;  %v5488_v12 = vmul.f32 %v10186_v34, %v5335_v29  ;;  %v5617_v35 = vadd.f32 %v5576_v63, %v5535_v4  ;;  %v7353_v60 = vld [vmem:[%s7811_s14 + $0x38] sm:$0xff]  }
 0x4a3   : > { %v7031_v53 = vpop.f32.mrf.mxu1  ;;  %v5584_v30 = vunpack.c.l.bf16 %v7353_v60 }
 0x4a4   : > { %6437 = vst [vmem:[%s10204_s28 + $0x10] sm:$0xff] %v6330_v15   ;;  %v5536_v16 = vadd.f32 %v10191_v44, %v5488_v12  ;;  %v5658_v49 = vmax.f32 %v5617_v35, 0.0  ;;  %v5585_v12 = vunpack.c.h.bf16 %v7353_v60 }
 0x4a5   : > { %v5340_v1 = vpop.f32.mrf.mxu1 }
 0x4a6   : > { %v5618_v55 = vadd.f32 %v5577_v18, %v5536_v16  ;;  %v5489_v62 = vmul.f32 %v10186_v34, %v5340_v1 }
 0x4a7   : > { %v7034_v32 = vpop.f32.mrf.mxu1 }
 0x4a8   : > { %v5659_v8 = vmax.f32 %v5618_v55, 0.0  ;;  %v5537_v59 = vadd.f32 %v10191_v44, %v5489_v62 }
 0x4a9   : > { %v5343_v54 = vpop.f32.mrf.mxu1 }
 0x4aa   : > { %v6335_v14 = vpack.c.bf16 %v5659_v8, %v5658_v49  ;;  %v5490_v39 = vmul.f32 %v10186_v34, %v5343_v54  ;;  %v5619_v26 = vadd.f32 %v5578_v47, %v5537_v59  ;;  %v7354_v49 = vld [vmem:[%s7811_s14 + $0x40] sm:$0xff]  }
 0x4ab   : > { %v7035_v28 = vpop.f32.mrf.mxu1  ;;  %v5586_v8 = vunpack.c.l.bf16 %v7354_v49 }
 0x4ac   : > { %6438 = vst [vmem:[%s10204_s28 + $0x18] sm:$0xff] %v6335_v14   ;;  %v5538_v41 = vadd.f32 %v10191_v44, %v5490_v39  ;;  %v5660_v33 = vmax.f32 %v5619_v26, 0.0  ;;  %v5587_v39 = vunpack.c.h.bf16 %v7354_v49 }
 0x4ad   : > { %v5348_v25 = vpop.f32.mrf.mxu1 }
 0x4ae   : > { %v5620_v21 = vadd.f32 %v5579_v2, %v5538_v41  ;;  %v5491_v40 = vmul.f32 %v10186_v34, %v5348_v25 }
 0x4af   : > { %v7038_v31 = vpop.f32.mrf.mxu1 }
 0x4b0   : > { %v5661_v17 = vmax.f32 %v5620_v21, 0.0  ;;  %v5539_v45 = vadd.f32 %v10191_v44, %v5491_v40 }
 0x4b1   : > { %v5351_v13 = vpop.f32.mrf.mxu1 }
 0x4b2   : > { %v6340_v36 = vpack.c.bf16 %v5661_v17, %v5660_v33  ;;  %v5492_v52 = vmul.f32 %v10186_v34, %v5351_v13  ;;  %v5621_v10 = vadd.f32 %v5580_v6, %v5539_v45  ;;  %v7355_v33 = vld [vmem:[%s7811_s14 + $0x48] sm:$0xff]  }
 0x4b3   : > { %v7039_v56 = vpop.f32.mrf.mxu1  ;;  %v5588_v17 = vunpack.c.l.bf16 %v7355_v33 }
 0x4b4   : > { %6439 = vst [vmem:[%s10204_s28 + $0x20] sm:$0xff] %v6340_v36   ;;  %v5540_v3 = vadd.f32 %v10191_v44, %v5492_v52  ;;  %v5662_v46 = vmax.f32 %v5621_v10, 0.0  ;;  %v5589_v52 = vunpack.c.h.bf16 %v7355_v33 }
 0x4b5   : > { %v5356_v5 = vpop.f32.mrf.mxu1 }
 0x4b6   : > { %v5622_v9 = vadd.f32 %v5581_v51, %v5540_v3  ;;  %v5493_v11 = vmul.f32 %v10186_v34, %v5356_v5 }
 0x4b7   : > { %v7042_v23 = vpop.f32.mrf.mxu1 }
 0x4b8   : > { %v5663_v22 = vmax.f32 %v5622_v9, 0.0  ;;  %v5541_v7 = vadd.f32 %v10191_v44, %v5493_v11 }
 0x4b9   : > { %v5359_v43 = vpop.f32.mrf.mxu1 }
 0x4ba   : > { %v6345_v27 = vpack.c.bf16 %v5663_v22, %v5662_v46  ;;  %v5494_v19 = vmul.f32 %v10186_v34, %v5359_v43  ;;  %v5623_v50 = vadd.f32 %v5582_v48, %v5541_v7  ;;  %v7356_v46 = vld [vmem:[%s7811_s14 + $0x50] sm:$0xff]  }
 0x4bb   : > { %v7043_v24 = vpop.f32.mrf.mxu1  ;;  %v5590_v22 = vunpack.c.l.bf16 %v7356_v46 }
 0x4bc   : > { %6440 = vst [vmem:[%s10204_s28 + $0x28] sm:$0xff] %v6345_v27   ;;  %v5542_v42 = vadd.f32 %v10191_v44, %v5494_v19  ;;  %v5664_v4 = vmax.f32 %v5623_v50, 0.0  ;;  %v5591_v19 = vunpack.c.h.bf16 %v7356_v46 }
 0x4bd   : > { %v5364_v57 = vpop.f32.mrf.mxu1 }
 0x4be   : > { %v5624_v61 = vadd.f32 %v5583_v0, %v5542_v42  ;;  %v5495_v38 = vmul.f32 %v10186_v34, %v5364_v57 }
 0x4bf   : > { %v7046_v63 = vpop.f32.mrf.mxu1 }
 0x4c0   : > { %v5665_v29 = vmax.f32 %v5624_v61, 0.0  ;;  %v5543_v18 = vadd.f32 %v10191_v44, %v5495_v38 }
 0x4c1   : > { %v5367_v15 = vpop.f32.mrf.mxu1 }
 0x4c2   : > { %v6350_v53 = vpack.c.bf16 %v5665_v29, %v5664_v4  ;;  %v5496_v35 = vmul.f32 %v10186_v34, %v5367_v15  ;;  %v5625_v1 = vadd.f32 %v5584_v30, %v5543_v18  ;;  %v7357_v4 = vld [vmem:[%s7811_s14 + $0x58] sm:$0xff]  }
 0x4c3   : > { %v7047_v16 = vpop.f32.mrf.mxu1  ;;  %v5592_v29 = vunpack.c.l.bf16 %v7357_v4 }
 0x4c4   : > { %6441 = vst [vmem:[%s10204_s28 + $0x30] sm:$0xff] %v6350_v53   ;;  %v5544_v55 = vadd.f32 %v10191_v44, %v5496_v35  ;;  %v5666_v59 = vmax.f32 %v5625_v1, 0.0  ;;  %v5593_v35 = vunpack.c.h.bf16 %v7357_v4 }
 0x4c5   : > { %v5372_v62 = vpop.f32.mrf.mxu1 }
 0x4c6   : > { %v5626_v32 = vadd.f32 %v5585_v12, %v5544_v55  ;;  %v5497_v20 = vmul.f32 %v10186_v34, %v5372_v62 }
 0x4c7   : > { %v7050_v47 = vpop.f32.mrf.mxu1 }
 0x4c8   : > { %v5667_v54 = vmax.f32 %v5626_v32, 0.0  ;;  %v5545_v2 = vadd.f32 %v10191_v44, %v5497_v20 }
 0x4c9   : > { %v5375_v14 = vpop.f32.mrf.mxu1 }
 0x4ca   : > { %v6355_v28 = vpack.c.bf16 %v5667_v54, %v5666_v59  ;;  %v5498_v26 = vmul.f32 %v10186_v34, %v5375_v14  ;;  %v5627_v25 = vadd.f32 %v5586_v8, %v5545_v2  ;;  %v7358_v59 = vld [vmem:[%s7811_s14 + $0x60] sm:$0xff]  }
 0x4cb   : > { %v7051_v41 = vpop.f32.mrf.mxu1  ;;  %v5594_v54 = vunpack.c.l.bf16 %v7358_v59 }
 0x4cc   : > { %6442 = vst [vmem:[%s10204_s28 + $0x38] sm:$0xff] %v6355_v28   ;;  %v5546_v21 = vadd.f32 %v10191_v44, %v5498_v26  ;;  %v5668_v45 = vmax.f32 %v5627_v25, 0.0  ;;  %v5595_v26 = vunpack.c.h.bf16 %v7358_v59 }
 0x4cd   : > { %v5380_v40 = vpop.f32.mrf.mxu1 }
 0x4ce   : > { %v5628_v31 = vadd.f32 %v5587_v39, %v5546_v21  ;;  %v5499_v58 = vmul.f32 %v10186_v34, %v5380_v40 }
 0x4cf   : > { %v7054_v6 = vpop.f32.mrf.mxu1 }
 0x4d0   : > { %v5669_v13 = vmax.f32 %v5628_v31, 0.0  ;;  %v5547_v51 = vadd.f32 %v10191_v44, %v5499_v58 }
 0x4d1   : > { %v5383_v36 = vpop.f32.mrf.mxu1 }
 0x4d2   : > { %v6360_v56 = vpack.c.bf16 %v5669_v13, %v5668_v45  ;;  %v5500_v10 = vmul.f32 %v10186_v34, %v5383_v36  ;;  %v5629_v5 = vadd.f32 %v5588_v17, %v5547_v51  ;;  %v7359_v45 = vld [vmem:[%s7811_s14 + $0x68] sm:$0xff]  }
 0x4d3   : > { %v7055_v3 = vpop.f32.mrf.mxu1  ;;  %v5596_v13 = vunpack.c.l.bf16 %v7359_v45 }
 0x4d4   : > { %6443 = vst [vmem:[%s10204_s28 + $0x40] sm:$0xff] %v6360_v56   ;;  %v5548_v9 = vadd.f32 %v10191_v44, %v5500_v10  ;;  %v5670_v7 = vmax.f32 %v5629_v5, 0.0  ;;  %v5597_v10 = vunpack.c.h.bf16 %v7359_v45 }
 0x4d5   : > { %v5388_v11 = vpop.f32.mrf.mxu1 }
 0x4d6   : > { %v5630_v23 = vadd.f32 %v5589_v52, %v5548_v9  ;;  %v5501_v37 = vmul.f32 %v10186_v34, %v5388_v11 }
 0x4d7   : > { %v7058_v48 = vpop.f32.mrf.mxu1 }
 0x4d8   : > { %v5671_v43 = vmax.f32 %v5630_v23, 0.0  ;;  %v5549_v0 = vadd.f32 %v10191_v44, %v5501_v37 }
 0x4d9   : > { %v5391_v27 = vpop.f32.mrf.mxu1 }
 0x4da   : > { %v6365_v24 = vpack.c.bf16 %v5671_v43, %v5670_v7  ;;  %v5502_v50 = vmul.f32 %v10186_v34, %v5391_v27  ;;  %v5631_v57 = vadd.f32 %v5590_v22, %v5549_v0  ;;  %v7360_v7 = vld [vmem:[%s7811_s14 + $0x70] sm:$0xff]  }
 0x4db   : > { %v7059_v42 = vpop.f32.mrf.mxu1  ;;  %v5598_v43 = vunpack.c.l.bf16 %v7360_v7 }
 0x4dc   : > { %6444 = vst [vmem:[%s10204_s28 + $0x48] sm:$0xff] %v6365_v24   ;;  %v5550_v61 = vadd.f32 %v10191_v44, %v5502_v50  ;;  %v5672_v18 = vmax.f32 %v5631_v57, 0.0  ;;  %v5599_v50 = vunpack.c.h.bf16 %v7360_v7 }
 0x4dd   : > { %v5396_v38 = vpop.f32.mrf.mxu1 }
 0x4de   : > { %v5632_v63 = vadd.f32 %v5591_v19, %v5550_v61  ;;  %v5503_v60 = vmul.f32 %v10186_v34, %v5396_v38 }
 0x4df   : > { %v7062_v30 = vpop.f32.mrf.mxu1 }
 0x4e0   : > { %v5673_v15 = vmax.f32 %v5632_v63, 0.0  ;;  %v5551_v12 = vadd.f32 %v10191_v44, %v5503_v60 }
 0x4e1   : > { %v5399_v53 = vpop.f32.mrf.mxu1 }
 0x4e2   : > { %v6370_v16 = vpack.c.bf16 %v5673_v15, %v5672_v18  ;;  %v5504_v1 = vmul.f32 %v10186_v34, %v5399_v53  ;;  %v5633_v62 = vadd.f32 %v5592_v29, %v5551_v12  ;;  %v7361_v18 = vld [vmem:[%s7811_s14 + $0x78] sm:$0xff]  }
 0x4e3   : > { %v7063_v55 = vpop.f32.mrf.mxu1  ;;  %v5600_v15 = vunpack.c.l.bf16 %v7361_v18 }
 0x4e4   : > { %6445 = vst [vmem:[%s10204_s28 + $0x50] sm:$0xff] %v6370_v16   ;;  %v5552_v32 = vadd.f32 %v10191_v44, %v5504_v1  ;;  %v5674_v2 = vmax.f32 %v5633_v62, 0.0  ;;  %v5601_v1 = vunpack.c.h.bf16 %v7361_v18 }
 0x4e5   : > { %v5404_v20 = vpop.f32.mrf.mxu1 }
 0x4e6   : > { %v5634_v47 = vadd.f32 %v5593_v35, %v5552_v32  ;;  %v5505_v49 = vmul.f32 %v10186_v34, %v5404_v20 }
 0x4e7   : > { %v7066_v8 = vpop.f32.mrf.mxu1 }
 0x4e8   : > { %v5675_v14 = vmax.f32 %v5634_v47, 0.0  ;;  %v5553_v39 = vadd.f32 %v10191_v44, %v5505_v49 }
 0x4e9   : > { %v5407_v28 = vpop.f32.mrf.mxu1 }
 0x4ea   : > { %v6375_v41 = vpack.c.bf16 %v5675_v14, %v5674_v2  ;;  %v5506_v25 = vmul.f32 %v10186_v34, %v5407_v28  ;;  %v5635_v40 = vadd.f32 %v5594_v54, %v5553_v39  ;;  %v7362_v2 = vld [vmem:[%s7811_s14 + $0x80] sm:$0xff]  }
 0x4eb   : > { %v7067_v21 = vpop.f32.mrf.mxu1  ;;  %v5602_v14 = vunpack.c.l.bf16 %v7362_v2 }
 0x4ec   : > { %6446 = vst [vmem:[%s10204_s28 + $0x58] sm:$0xff] %v6375_v41   ;;  %v5554_v31 = vadd.f32 %v10191_v44, %v5506_v25  ;;  %v5676_v51 = vmax.f32 %v5635_v40, 0.0  ;;  %v5603_v25 = vunpack.c.h.bf16 %v7362_v2 }
 0x4ed   : > { %v5412_v58 = vpop.f32.mrf.mxu1 }
 0x4ee   : > { %v5636_v6 = vadd.f32 %v5595_v26, %v5554_v31  ;;  %v5507_v33 = vmul.f32 %v10186_v34, %v5412_v58 }
 0x4ef   : > { %v7070_v17 = vpop.f32.mrf.mxu1 }
 0x4f0   : > { %v5677_v36 = vmax.f32 %v5636_v6, 0.0  ;;  %v5555_v52 = vadd.f32 %v10191_v44, %v5507_v33 }
 0x4f1   : > { %v5415_v56 = vpop.f32.mrf.mxu1 }
 0x4f2   : > { %v6380_v3 = vpack.c.bf16 %v5677_v36, %v5676_v51  ;;  %v5508_v5 = vmul.f32 %v10186_v34, %v5415_v56  ;;  %v5637_v11 = vadd.f32 %v5596_v13, %v5555_v52  ;;  %v7363_v51 = vld [vmem:[%s7811_s14 + $0x88] sm:$0xff]  }
 0x4f3   : > { %v7071_v9 = vpop.f32.mrf.mxu1  ;;  %v5604_v36 = vunpack.c.l.bf16 %v7363_v51 }
 0x4f4   : > { %6447 = vst [vmem:[%s10204_s28 + $0x60] sm:$0xff] %v6380_v3   ;;  %v5556_v23 = vadd.f32 %v10191_v44, %v5508_v5  ;;  %v5678_v0 = vmax.f32 %v5637_v11, 0.0  ;;  %v5605_v5 = vunpack.c.h.bf16 %v7363_v51 }
 0x4f5   : > { %v5420_v37 = vpop.f32.mrf.mxu1 }
 0x4f6   : > { %v5638_v48 = vadd.f32 %v5597_v10, %v5556_v23  ;;  %v5509_v46 = vmul.f32 %v10186_v34, %v5420_v37 }
 0x4f7   : > { %v7074_v22 = vpop.f32.mrf.mxu1 }
 0x4f8   : > { %v5679_v27 = vmax.f32 %v5638_v48, 0.0  ;;  %v5557_v19 = vadd.f32 %v10191_v44, %v5509_v46 }
 0x4f9   : > { %v5423_v24 = vpop.f32.mrf.mxu1 }
 0x4fa   : > { %v6385_v42 = vpack.c.bf16 %v5679_v27, %v5678_v0  ;;  %v5510_v57 = vmul.f32 %v10186_v34, %v5423_v24  ;;  %v5639_v38 = vadd.f32 %v5598_v43, %v5557_v19  ;;  %v7364_v0 = vld [vmem:[%s7811_s14 + $0x90] sm:$0xff]  }
 0x4fb   : > { %v7075_v61 = vpop.f32.mrf.mxu1  ;;  %v5606_v27 = vunpack.c.l.bf16 %v7364_v0 }
 0x4fc   : > { %6448 = vst [vmem:[%s10204_s28 + $0x68] sm:$0xff] %v6385_v42   ;;  %v5558_v63 = vadd.f32 %v10191_v44, %v5510_v57  ;;  %v5680_v12 = vmax.f32 %v5639_v38, 0.0  ;;  %v5607_v57 = vunpack.c.h.bf16 %v7364_v0 }
 0x4fd   : > { %v5428_v60 = vpop.f32.mrf.mxu1 }
 0x4fe   : > { %v5640_v30 = vadd.f32 %v5599_v50, %v5558_v63  ;;  %v5511_v4 = vmul.f32 %v10186_v34, %v5428_v60 }
 0x4ff   : > { %v7078_v29 = vpop.f32.mrf.mxu1 }
 0x500   : > { %v5681_v53 = vmax.f32 %v5640_v30, 0.0  ;;  %v5559_v35 = vadd.f32 %v10191_v44, %v5511_v4 }
 0x501   : > { %v5431_v16 = vpop.f32.mrf.mxu1 }
 0x502   : > { %v6390_v55 = vpack.c.bf16 %v5681_v53, %v5680_v12  ;;  %v5512_v62 = vmul.f32 %v10186_v34, %v5431_v16  ;;  %v5641_v20 = vadd.f32 %v5600_v15, %v5559_v35  ;;  %v7365_v12 = vld [vmem:[%s7811_s14 + $0x98] sm:$0xff]  }
 0x503   : > { %v7079_v32 = vpop.f32.mrf.mxu1  ;;  %v5608_v53 = vunpack.c.l.bf16 %v7365_v12 }
 0x504   : > { %6449 = vst [vmem:[%s10204_s28 + $0x70] sm:$0xff] %v6390_v55   ;;  %v5560_v47 = vadd.f32 %v10191_v44, %v5512_v62  ;;  %v5682_v39 = vmax.f32 %v5641_v20, 0.0  ;;  %v5609_v62 = vunpack.c.h.bf16 %v7365_v12 }
 0x505   : > { %v5436_v49 = vpop.f32.mrf.mxu1 }
 0x506   : > { %v5642_v8 = vadd.f32 %v5601_v1, %v5560_v47  ;;  %v5513_v59 = vmul.f32 %v10186_v34, %v5436_v49 }
 0x507   : > { %v7082_v54 = vpop.f32.mrf.mxu1 }
 0x508   : > { %v5683_v28 = vmax.f32 %v5642_v8, 0.0  ;;  %v5561_v26 = vadd.f32 %v10191_v44, %v5513_v59  ;;  %v7366_v54 = vld [vmem:[%s7811_s14 + $0xa0] sm:$0xf] }
 0x509   : > { %v5439_v41 = vpop.f32.mrf.mxu1  ;;  %v5610_v2 = vunpack.c.l.bf16 %v7366_v54 }
 0x50a   : > { %v6395_v21 = vpack.c.bf16 %v5683_v28, %v5682_v39  ;;  %v5514_v40 = vmul.f32 %v10186_v34, %v5439_v41  ;;  %v5643_v58 = vadd.f32 %v5602_v14, %v5561_v26 }
 0x50b   : > { %v7083_v31 = vpop.f32.mrf.mxu1 }
 0x50c   : > { %6450 = vst [vmem:[%s10204_s28 + $0x78] sm:$0xff] %v6395_v21   ;;  %v5562_v6 = vadd.f32 %v10191_v44, %v5514_v40  ;;  %v5684_v52 = vmax.f32 %v5643_v58, 0.0 }
 0x50d   : > { %v5444_v33 = vpop.f32.mrf.mxu1 }
 0x50e   : > { %v5644_v17 = vadd.f32 %v5603_v25, %v5562_v6  ;;  %v5515_v45 = vmul.f32 %v10186_v34, %v5444_v33 }
 0x50f   : > { %v7086_v13 = vpop.f32.mrf.mxu1 }
 0x510   : > { %v5685_v56 = vmax.f32 %v5644_v17, 0.0  ;;  %v5563_v10 = vadd.f32 %v10191_v44, %v5515_v45 }
 0x511   : > { %v5447_v3 = vpop.f32.mrf.mxu1 }
 0x512   : > { %v6400_v9 = vpack.c.bf16 %v5685_v56, %v5684_v52  ;;  %v5516_v11 = vmul.f32 %v10186_v34, %v5447_v3  ;;  %v5645_v37 = vadd.f32 %v5604_v36, %v5563_v10 }
 0x513   : > { %v7087_v23 = vpop.f32.mrf.mxu1 }
 0x514   : > { %6451 = vst [vmem:[%s10204_s28 + $0x80] sm:$0xff] %v6400_v9   ;;  %v5564_v48 = vadd.f32 %v10191_v44, %v5516_v11  ;;  %v5686_v19 = vmax.f32 %v5645_v37, 0.0 }
 0x515   : > { %v5452_v46 = vpop.f32.mrf.mxu1 }
 0x516   : > { %v5646_v22 = vadd.f32 %v5605_v5, %v5564_v48  ;;  %v5517_v7 = vmul.f32 %v10186_v34, %v5452_v46 }
 0x517   : > { %v7090_v43 = vpop.f32.mrf.mxu1 }
 0x518   : > { %v5687_v24 = vmax.f32 %v5646_v22, 0.0  ;;  %v5565_v50 = vadd.f32 %v10191_v44, %v5517_v7 }
 0x519   : > { %v5455_v42 = vpop.f32.mrf.mxu1 }
 0x51a   : > { %v6405_v61 = vpack.c.bf16 %v5687_v24, %v5686_v19  ;;  %v5518_v38 = vmul.f32 %v10186_v34, %v5455_v42  ;;  %v5647_v60 = vadd.f32 %v5606_v27, %v5565_v50 }
 0x51b   : > { %v7091_v63 = vpop.f32.mrf.mxu1 }
 0x51c   : > { %6452 = vst [vmem:[%s10204_s28 + $0x88] sm:$0xff] %v6405_v61   ;;  %v5566_v30 = vadd.f32 %v10191_v44, %v5518_v38  ;;  %v5688_v35 = vmax.f32 %v5647_v60, 0.0 }
 0x51d   : > { %v5460_v4 = vpop.f32.mrf.mxu1 }
 0x51e   : > { %v5648_v29 = vadd.f32 %v5607_v57, %v5566_v30  ;;  %v5519_v18 = vmul.f32 %v10186_v34, %v5460_v4 }
 0x51f   : > { %v7094_v15 = vpop.f32.mrf.mxu1 }
 0x520   : > { %v5689_v16 = vmax.f32 %v5648_v29, 0.0  ;;  %v5567_v1 = vadd.f32 %v10191_v44, %v5519_v18 }
 0x521   : > { %v5463_v55 = vpop.f32.mrf.mxu1 }
 0x522   : > { %v6410_v32 = vpack.c.bf16 %v5689_v16, %v5688_v35  ;;  %v5520_v20 = vmul.f32 %v10186_v34, %v5463_v55  ;;  %v5649_v49 = vadd.f32 %v5608_v53, %v5567_v1 }
 0x523   : > { %v7095_v47 = vpop.f32.mrf.mxu1 }
 0x524   : > { %6453 = vst [vmem:[%s10204_s28 + $0x90] sm:$0xff] %v6410_v32   ;;  %v5568_v8 = vadd.f32 %v10191_v44, %v5520_v20  ;;  %v5690_v26 = vmax.f32 %v5649_v49, 0.0 }
 0x525   : > { %v5468_v59 = vpop.f32.mrf.mxu1 }
 0x526   : > { %v5650_v14 = vadd.f32 %v5609_v62, %v5568_v8  ;;  %v5521_v39 = vmul.f32 %v10186_v34, %v5468_v59 }
 0x527   : > { %v7098_v28 = vpop.f32.mrf.mxu1 }
 0x528   : > { %v5691_v41 = vmax.f32 %v5650_v14, 0.0  ;;  %v5569_v25 = vadd.f32 %v10191_v44, %v5521_v39 }
 0x529   : > { %v5471_v21 = vpop.f32.mrf.mxu1 }
 0x52a   : > { %v6415_v40 = vpack.c.bf16 %v5691_v41, %v5690_v26  ;;  %v5651_v31 = vadd.f32 %v5610_v2, %v5569_v25 }
 0x52b   : > { %v7099_v58 = vpop.f32.mrf.mxu1 }
 0x52c   : > { %6454 = vst [vmem:[%s10204_s28 + $0x98] sm:$0xff] %v6415_v40   ;;  %v5692_v6 = vmax.f32 %v5651_v31, 0.0 }
 0x52e   : > { %v6236_v34 = vpack.c.bf16 %v5692_v6, %v5692_v6 }
 0x530   : > { %5898 = vst [vmem:[%s10204_s28 + $0xa0] sm:$0xf] %v6236_v34 }
 0x531   : > { %7512 = shalt.err (!%p7509_p5)
}
 0x532   : > { %s7513_s2 = scalar_lea.hbm %s10325_s13, 2624  ;;  %s7517_s22 = scalar_lea.hbm %s10382_s11, 5248 }
 0x533   : > { %p7514_p6 = scmp.ne.s32.totalorder %s10325_s13, %s7513_s2  ;;  %p7518_p9 = scmp.lt.s32.totalorder %s10325_s13, %s10382_s11 }
 0x534   : > { %p7519_p11 = scmp.lt.s32.totalorder %s7517_s22, %s7513_s2 }
 0x535   : > { %p7515_p4 = pnand %p7514_p6, %p10803_p12 }
 0x536   : > { %p7520_p3 = por %p7519_p11, %p7518_p9 }
 0x537   : > { %p7516_p8 = pneg %p7515_p4 }
 0x539   : > { %p7521_p10 = pnand %p7520_p3, %p7516_p8 }
 0x53b   : > { %7524 = shalt.err (!%p7521_p10)
}
 0x53c   : > { %s7585_s14 = smov 64   ;;  %s7586_s12 = smov 4  }
 0x53d   : > { %7138 = dma.vmem_to_hbm [thread:$0]  (%p10803_p12), %s10327_s1, 2624, %s10325_s13, %s5900_s8, %s7585_s14, %s7585_s14, %s7586_s12  }
 0x53e PF: > { %s5928_s21 = sand.u32 1, %s7559_s17   ;;  %p10804_p7 = scmp.ne.s32.totalorder %s10526_s24, 0 }
 0x53f   : > { %p10805_p1 = scmp.ge.s32.totalorder %s7571_s20, 2  ;;  %s5929_s5 = scalar_lea.sflag [#allocation4], %s5928_s21 }
 0x541   : > { %p7158_p13 = pnand %p10805_p1, %p10804_p7 }
 0x543   : > { %p7159_p0 = pneg %p7158_p13 }
 0x545   : > { %7554 = dma.done.wait (%p7159_p0), %s5929_s5, 2624  }
 0x546   : > { %7556 = vsyncadd (%p7159_p0), %s5929_s5, 4294964672  ;;  %s10806_s30 = sld [smem:[#allocation16_spill]]  ;;  %p26_p2 = scmp.ge.s32.totalorder %s7747_s27, 4  }
 0x547   : > { %s10807_s17 = smov %s7563_s18  ;;  %s10808_s18 = smov %s7567_s19 }
 0x548   : > { %s10810_s20 = smov %s7747_s27  ;;  %28 = sbr.rel (!%p26_p2) target bundleno = 12 (0xc), region = 127 }
 0x54c   : > { %s10809_s19 = smov %s10806_s30 }
 0x54d   :  { %5934 = vsyncpa [#allocation3], 1 }
 0x54e   :  { %5936 = vsyncpa [#allocation3 + $0x1], 1 }
 0x54f   :  { %5937 = vsyncpa [#allocation6], 1 }
 0x550   :  { %5938 = vsyncpa [#allocation9], 1 }
 0x551   :  { %5939 = vsyncpa [#allocation4], 1 }
 0x552   :  { %5941 = vsyncpa [#allocation4 + $0x1], 1 }

</bundles_post_ra>
